<compile_context>
chip_gen: v7x
topology: tpu7x:2x2x1
jax: 0.10.0
libtpu: 0.0.40
codegen_flags: <defaults>
</compile_context>

<pallas_src>
import functools

import jax
import jax.numpy as jnp
from jax.experimental import pallas as pl
from jax.experimental.pallas import tpu as pltpu


# ---------------------------------------------------------------------------
# In-kernel helpers (f32 math)
# ---------------------------------------------------------------------------
def _layernorm(x, gamma, eps=1e-5):
    """PyTorch-style channel LayerNorm: mean/var over the channel axis (last
    axis in token-major layout), unbiased=False, scaled by gamma (no bias).
    rsqrt goes to the EUP instead of VALU divide + sqrt."""
    mean = jnp.mean(x, axis=-1, keepdims=True)
    xc = x - mean
    var = jnp.mean(xc * xc, axis=-1, keepdims=True)
    return xc * jax.lax.rsqrt(var + eps) * gamma


def _gelu_tanh(x):
    """tanh-GELU: tanh lowers to the EUP (separate VLIW slot), replacing the
    ~10 VALU ops + exp + rcp of the erf rational approximation.  Max error vs
    exact erf-GELU ~3e-3, well inside the bf16-level tolerance used below."""
    c = 0.7978845608028654  # sqrt(2/pi)
    return 0.5 * x * (1.0 + jnp.tanh(c * (x + 0.044715 * x * x * x)))


# ---------------------------------------------------------------------------
# Pallas kernel: a block of `bb` batch elements per grid step
# ---------------------------------------------------------------------------
def _make_kernel(bb, n_tok, heads, dim_head):
    inner = heads * dim_head
    t_tok = bb * n_tok

    def kernel(x_ref, g1_ref, wqkv_ref, wout_ref,
               gf1_ref, wf1_ref, gf2_ref, wf2_ref, o_ref):
        # x_ref block: (bb * n_tok, C) token-major
        x = x_ref[...].astype(jnp.float32)
        residual = x

        # ---------------- Attention ----------------
        xn = _layernorm(x, g1_ref[...])                                   # (T, C) f32

        # Fused QKV projection: one lane-dense matmul, bf16 operands, f32 acc.
        # Softmax scale is pre-folded into the Q columns of wqkv.
        qkv = jnp.dot(xn.astype(jnp.bfloat16), wqkv_ref[...],
                      preferred_element_type=jnp.float32)                 # (T, 3*inner)

        # Split once into a batched (bb*heads, N, dh) layout (relayout done in
        # f32 -- most robust path -- then cast each operand to bf16 once).
        def split_heads(t):                                               # (T, inner) ->
            return (t.reshape(bb, n_tok, heads, dim_head)                 # (bb*heads, N, dh)
                     .transpose(0, 2, 1, 3)
                     .reshape(bb * heads, n_tok, dim_head))

        # Lane slices below are at multiples of inner (=256): tile-aligned.
        q3 = split_heads(qkv[:, 0 * inner:1 * inner]).astype(jnp.bfloat16)
        k3 = split_heads(qkv[:, 1 * inner:2 * inner]).astype(jnp.bfloat16)
        v3 = split_heads(qkv[:, 2 * inner:3 * inner]).astype(jnp.bfloat16)

        # Batched scores / softmax / PV over all (batch, head) pairs:
        # two 3-D dot_general streams instead of bb*heads tiny 2-D matmuls.
        sim = jnp.einsum('gqd,gkd->gqk', q3, k3,
                         preferred_element_type=jnp.float32)              # (G, N, N) f32
        sim = sim - jnp.max(sim, axis=-1, keepdims=True)
        p = jnp.exp(sim)
        attn = p * pl.reciprocal(jnp.sum(p, axis=-1, keepdims=True),
                                 approx=True)                             # EUP vrcp
        out = jnp.einsum('gqk,gkd->gqd', attn.astype(jnp.bfloat16), v3,
                         preferred_element_type=jnp.float32)              # (G, N, dh) f32

        # Head merge via one transpose+reshape back to token-major (no lane
        # concats), then a single (inner, C) output projection + residual.
        attn_cat = (out.reshape(bb, heads, n_tok, dim_head)
                       .transpose(0, 2, 1, 3)
                       .reshape(t_tok, inner))                            # (T, inner) f32
        attn_out = residual + jnp.dot(attn_cat.astype(jnp.bfloat16), wout_ref[...],
                                      preferred_element_type=jnp.float32)  # (T, C)

        # ---------------- FeedForward ----------------
        y = _layernorm(attn_out, gf1_ref[...])
        y = jnp.dot(y.astype(jnp.bfloat16), wf1_ref[...],
                    preferred_element_type=jnp.float32)                    # (T, 4C)
        y = _gelu_tanh(y)
        y = _layernorm(y, gf2_ref[...])
        y = jnp.dot(y.astype(jnp.bfloat16), wf2_ref[...],
                    preferred_element_type=jnp.float32)                    # (T, C)

        o_ref[...] = (y + attn_out).astype(o_ref.dtype)

    return kernel


_MAX_TOKENS_PER_STEP = 1024  # per-step token budget (size-based, device-agnostic)


def _choose_batch_block(batch, n_tok):
    """Size-based grid choice: small slabs fold into one grid step (launch /
    prologue overhead and duplicated weight DMAs dominate the ~MFLOP of
    compute); larger slabs split per batch so multi-TensorCore parts (v7x)
    can shard the "parallel" grid axis."""
    if batch * n_tok <= _MAX_TOKENS_PER_STEP:
        return batch
    for bb in range(batch, 0, -1):
        if batch % bb == 0 and bb * n_tok <= _MAX_TOKENS_PER_STEP:
            return bb
    return 1


# ---------------------------------------------------------------------------
# Wrapper: NCDHW <-> token-major plumbing, weight fusion, pallas_call
# ---------------------------------------------------------------------------
def transformer_block(x_ncdhw, params, *, heads, dim_head):
    g1, wq, wk, wv, wout, gf1, wf1, gf2, wf2 = params
    B, C, F, H, W = x_ncdhw.shape
    N = F * H * W
    inner = heads * dim_head
    scale = dim_head ** (-0.5)

    # NCDHW -> token-major (B*N, C)
    x_tok = jnp.transpose(x_ncdhw, (0, 2, 3, 4, 1)).reshape(B * N, C)

    # Fused QKV weight (C, 3*inner): columns ordered [q_h0..q_hH | k.. | v..],
    # softmax scale folded into the Q block; bf16 MXU operands.
    wqkv = jnp.concatenate(
        [(wq * scale).transpose(1, 0, 2).reshape(C, inner),
         wk.transpose(1, 0, 2).reshape(C, inner),
         wv.transpose(1, 0, 2).reshape(C, inner)],
        axis=-1).astype(jnp.bfloat16)                                      # (C, 3*inner)
    wout_f = wout.reshape(inner, C).astype(jnp.bfloat16)                   # (inner, C)
    wf1_bf = wf1.astype(jnp.bfloat16)                                      # (C, 4C)
    wf2_bf = wf2.astype(jnp.bfloat16)                                      # (4C, C)

    bb = _choose_batch_block(B, N)
    grid = (B // bb,)
    tb = bb * N                                                            # tokens per grid step

    kernel = _make_kernel(bb, N, heads, dim_head)

    out = pl.pallas_call(
        kernel,
        out_shape=jax.ShapeDtypeStruct((B * N, C), x_tok.dtype),
        grid_spec=pltpu.PrefetchScalarGridSpec(
            num_scalar_prefetch=0,
            grid=grid,
            in_specs=[
                pl.BlockSpec((tb, C), lambda i: (i, 0)),            # x tokens
                pl.BlockSpec((1, C), lambda i: (0, 0)),             # attn norm gamma
                pl.BlockSpec((C, 3 * inner), lambda i: (0, 0)),     # fused Wqkv^T (bf16)
                pl.BlockSpec((inner, C), lambda i: (0, 0)),         # fused Wout^T (bf16)
                pl.BlockSpec((1, C), lambda i: (0, 0)),             # ff norm1 gamma
                pl.BlockSpec((C, 4 * C), lambda i: (0, 0)),         # ff W1^T (bf16)
                pl.BlockSpec((1, 4 * C), lambda i: (0, 0)),         # ff norm2 gamma
                pl.BlockSpec((4 * C, C), lambda i: (0, 0)),         # ff W2^T (bf16)
            ],
            out_specs=pl.BlockSpec((tb, C), lambda i: (i, 0)),
        ),
        compiler_params=pltpu.CompilerParams(dimension_semantics=("parallel",)),
    )(x_tok, g1, wqkv, wout_f, gf1, wf1_bf, gf2, wf2_bf)

    # token-major -> NCDHW
    return jnp.transpose(out.reshape(B, F, H, W, C), (0, 4, 1, 2, 3))


# ---------------------------------------------------------------------------
# Pure-JAX f32 reference for verification
# ---------------------------------------------------------------------------
def _layernorm_ref(x, gamma, eps=1e-5):
    mean = jnp.mean(x, axis=-1, keepdims=True)
    var = jnp.mean((x - mean) ** 2, axis=-1, keepdims=True)
    return (x - mean) / jnp.sqrt(var + eps) * gamma


def reference_block(x_ncdhw, params, *, heads, dim_head):
    g1, wq, wk, wv, wout, gf1, wf1, gf2, wf2 = params
    B, C, F, H, W = x_ncdhw.shape
    N = F * H * W
    scale = dim_head ** (-0.5)
    x = jnp.transpose(x_ncdhw, (0, 2, 3, 4, 1)).reshape(B, N, C)

    resid = x
    xn = _layernorm_ref(x, g1)
    q = jnp.einsum('bnc,hcd->bhnd', xn, wq) * scale
    k = jnp.einsum('bnc,hcd->bhnd', xn, wk)
    v = jnp.einsum('bnc,hcd->bhnd', xn, wv)
    sim = jnp.einsum('bhid,bhjd->bhij', q, k)
    attn = jax.nn.softmax(sim, axis=-1)
    out = jnp.einsum('bhij,bhjd->bhid', attn, v)
    attn_out = jnp.einsum('bhnd,hdc->bnc', out, wout) + resid

    y = _layernorm_ref(attn_out, gf1)
    y = jnp.einsum('bnc,cm->bnm', y, wf1)
    y = jax.nn.gelu(y, approximate=False)   # exact erf GELU (nn.GELU default)
    y = _layernorm_ref(y, gf2)
    y = jnp.einsum('bnm,mc->bnc', y, wf2)
    out = y + attn_out
    return jnp.transpose(out.reshape(B, F, H, W, C), (0, 4, 1, 2, 3))


# ---------------------------------------------------------------------------
# Main
# ---------------------------------------------------------------------------
if __name__ == "__main__":
    # Small shapes consistent with the module's forward.
    B, DIM, F, H, W = 2, 32, 2, 4, 4     # x: (B, C, F, H, W)
    HEADS, DIM_HEAD = 4, 64              # Attention defaults
    INNER_FF = 4 * DIM                   # FeedForward mult=4.0

    key = jax.random.PRNGKey(0)
    ks = jax.random.split(key, 8)

    x = jax.random.normal(ks[0], (B, DIM, F, H, W), dtype=jnp.float32)

    # Deterministic synthetic parameters (shapes match the nn.Module __init__).
    w_scale = 0.05
    g1 = jnp.ones((1, DIM), jnp.float32)                                           # LayerNorm gamma (1,dim,1,1,1)
    wq = jax.random.normal(ks[1], (HEADS, DIM, DIM_HEAD), jnp.float32) * w_scale   # to_qkv (q part), per-head W^T
    wk = jax.random.normal(ks[2], (HEADS, DIM, DIM_HEAD), jnp.float32) * w_scale   # to_qkv (k part)
    wv = jax.random.normal(ks[3], (HEADS, DIM, DIM_HEAD), jnp.float32) * w_scale   # to_qkv (v part)
    wout = jax.random.normal(ks[4], (HEADS, DIM_HEAD, DIM), jnp.float32) * w_scale # to_out W^T split per head
    gf1 = jnp.ones((1, DIM), jnp.float32)                                          # FF LayerNorm(dim) gamma
    wf1 = jax.random.normal(ks[5], (DIM, INNER_FF), jnp.float32) * w_scale         # Conv3d(dim, 4*dim, 1) W^T
    gf2 = jnp.ones((1, INNER_FF), jnp.float32)                                     # FF LayerNorm(4*dim) gamma
    wf2 = jax.random.normal(ks[6], (INNER_FF, DIM), jnp.float32) * w_scale         # Conv3d(4*dim, dim, 1) W^T

    params = (g1, wq, wk, wv, wout, gf1, wf1, gf2, wf2)

    run = jax.jit(functools.partial(transformer_block, heads=HEADS, dim_head=DIM_HEAD))
    y_kernel = jax.block_until_ready(run(x, params))

    y_ref = jax.block_until_ready(
        reference_block(x, params, heads=HEADS, dim_head=DIM_HEAD))

    assert y_kernel.shape == (B, DIM, F, H, W)
    # Kernel uses bf16 MXU operands (f32 accumulation), EUP approx reciprocal,
    # and tanh-GELU, so compare against the exact f32 reference with a
    # bf16-appropriate tolerance.
    assert bool(jnp.allclose(y_kernel, y_ref, atol=2e-2, rtol=2e-2)), (
        "Pallas kernel does not match JAX reference")

    print("KERNEL_OK")
</pallas_src>

<mosaic_0001>
module attributes {stable_mosaic.version = 11 : i64} {
  func.func @kernel(%arg0: i32, %arg1: memref<64x32xf32, #tpu.memory_space<vmem>>, %arg2: memref<1x32xf32, #tpu.memory_space<vmem>>, %arg3: memref<32x768xbf16, #tpu.memory_space<vmem>>, %arg4: memref<256x32xbf16, #tpu.memory_space<vmem>>, %arg5: memref<1x32xf32, #tpu.memory_space<vmem>>, %arg6: memref<32x128xbf16, #tpu.memory_space<vmem>>, %arg7: memref<1x128xf32, #tpu.memory_space<vmem>>, %arg8: memref<128x32xbf16, #tpu.memory_space<vmem>>, %arg9: memref<64x32xf32, #tpu.memory_space<vmem>>) attributes {dimension_semantics = [#tpu.dimension_semantics<parallel>], iteration_bounds = array<i64: 1>, scalar_prefetch = 0 : i64, scratch_operands = 0 : i64, tpu.core_type = #tpu.core_type<tc>, window_params = [{transform_indices = @transform_0, window_bounds = array<i64: 64, 32>}, {pipeline_mode = #tpu.pipeline_mode<synchronous>, transform_indices = @transform_1, window_bounds = array<i64: 1, 32>}, {pipeline_mode = #tpu.pipeline_mode<synchronous>, transform_indices = @transform_2, window_bounds = array<i64: 32, 768>}, {pipeline_mode = #tpu.pipeline_mode<synchronous>, transform_indices = @transform_3, window_bounds = array<i64: 256, 32>}, {pipeline_mode = #tpu.pipeline_mode<synchronous>, transform_indices = @transform_4, window_bounds = array<i64: 1, 32>}, {pipeline_mode = #tpu.pipeline_mode<synchronous>, transform_indices = @transform_5, window_bounds = array<i64: 32, 128>}, {pipeline_mode = #tpu.pipeline_mode<synchronous>, transform_indices = @transform_6, window_bounds = array<i64: 1, 128>}, {pipeline_mode = #tpu.pipeline_mode<synchronous>, transform_indices = @transform_7, window_bounds = array<i64: 128, 32>}, {transform_indices = @transform_8, window_bounds = array<i64: 64, 32>}]} {
    %c0 = arith.constant 0 : index
    %c0_0 = arith.constant 0 : index
    %0 = vector.load %arg1[%c0, %c0_0] : memref<64x32xf32, #tpu.memory_space<vmem>>, vector<64x32xf32>
    %c0_1 = arith.constant 0 : index
    %c0_2 = arith.constant 0 : index
    %1 = vector.load %arg2[%c0_1, %c0_2] : memref<1x32xf32, #tpu.memory_space<vmem>>, vector<1x32xf32>
    %cst = arith.constant dense<0.000000e+00> : vector<64xf32>
    %2 = vector.multi_reduction <add>, %0, %cst [1] : vector<64x32xf32> to vector<64xf32>
    %3 = vector.shape_cast %2 : vector<64xf32> to vector<64x1xf32>
    %cst_3 = arith.constant 3.200000e+01 : f32
    %4 = vector.broadcast %cst_3 : f32 to vector<64x1xf32>
    %5 = arith.divf %3, %4 : vector<64x1xf32>
    %6 = vector.broadcast %5 : vector<64x1xf32> to vector<64x32xf32>
    %7 = arith.subf %0, %6 : vector<64x32xf32>
    %8 = arith.mulf %7, %7 : vector<64x32xf32>
    %cst_4 = arith.constant dense<0.000000e+00> : vector<64xf32>
    %9 = vector.multi_reduction <add>, %8, %cst_4 [1] : vector<64x32xf32> to vector<64xf32>
    %10 = vector.shape_cast %9 : vector<64xf32> to vector<64x1xf32>
    %cst_5 = arith.constant 3.200000e+01 : f32
    %11 = vector.broadcast %cst_5 : f32 to vector<64x1xf32>
    %12 = arith.divf %10, %11 : vector<64x1xf32>
    %cst_6 = arith.constant 9.99999974E-6 : f32
    %13 = vector.broadcast %cst_6 : f32 to vector<64x1xf32>
    %14 = arith.addf %12, %13 : vector<64x1xf32>
    %15 = math.rsqrt %14 : vector<64x1xf32>
    %16 = vector.broadcast %15 : vector<64x1xf32> to vector<64x32xf32>
    %17 = arith.mulf %7, %16 : vector<64x32xf32>
    %18 = vector.broadcast %1 : vector<1x32xf32> to vector<64x32xf32>
    %19 = arith.mulf %17, %18 : vector<64x32xf32>
    %20 = arith.truncf %19 : vector<64x32xf32> to vector<64x32xbf16>
    %c0_7 = arith.constant 0 : index
    %c0_8 = arith.constant 0 : index
    %21 = vector.load %arg3[%c0_7, %c0_8] : memref<32x768xbf16, #tpu.memory_space<vmem>>, vector<32x768xbf16>
    %cst_9 = arith.constant dense<0.000000e+00> : vector<64x768xf32>
    %22 = tpu.matmul %20, %21, %cst_9 {dimension_numbers = #tpu.dot_dimension_numbers<[1], [0], [0], [1], [0, 0, 1, 1], [], []>} : vector<64x32xbf16>, vector<32x768xbf16>, vector<64x768xf32> -> vector<64x768xf32>
    %23 = vector.extract_strided_slice %22 {offsets = [0, 0], sizes = [64, 256], strides = [1, 1]} : vector<64x768xf32> to vector<64x256xf32>
    %24 = vector.shape_cast %23 : vector<64x256xf32> to vector<2x32x4x64xf32>
    %25 = tpu.transpose %24, [0, 2, 1, 3] : vector<2x32x4x64xf32> -> vector<2x4x32x64xf32>
    %26 = vector.shape_cast %25 : vector<2x4x32x64xf32> to vector<8x32x64xf32>
    %27 = arith.truncf %26 : vector<8x32x64xf32> to vector<8x32x64xbf16>
    %28 = vector.extract_strided_slice %22 {offsets = [0, 256], sizes = [64, 256], strides = [1, 1]} : vector<64x768xf32> to vector<64x256xf32>
    %29 = vector.shape_cast %28 : vector<64x256xf32> to vector<2x32x4x64xf32>
    %30 = tpu.transpose %29, [0, 2, 1, 3] : vector<2x32x4x64xf32> -> vector<2x4x32x64xf32>
    %31 = vector.shape_cast %30 : vector<2x4x32x64xf32> to vector<8x32x64xf32>
    %32 = arith.truncf %31 : vector<8x32x64xf32> to vector<8x32x64xbf16>
    %33 = vector.extract_strided_slice %22 {offsets = [0, 512], sizes = [64, 256], strides = [1, 1]} : vector<64x768xf32> to vector<64x256xf32>
    %34 = vector.shape_cast %33 : vector<64x256xf32> to vector<2x32x4x64xf32>
    %35 = tpu.transpose %34, [0, 2, 1, 3] : vector<2x32x4x64xf32> -> vector<2x4x32x64xf32>
    %36 = vector.shape_cast %35 : vector<2x4x32x64xf32> to vector<8x32x64xf32>
    %37 = arith.truncf %36 : vector<8x32x64xf32> to vector<8x32x64xbf16>
    "tpu.trace_start"() <{level = 10 : i32, message = "gqd,gkd->gqk"}> : () -> ()
    %cst_10 = arith.constant dense<0.000000e+00> : vector<8x32x32xf32>
    %38 = tpu.matmul %27, %32, %cst_10 {dimension_numbers = #tpu.dot_dimension_numbers<[2], [2], [1], [1], [0, 0, 0, 1, 1, 1], [0], [0]>} : vector<8x32x64xbf16>, vector<8x32x64xbf16>, vector<8x32x32xf32> -> vector<8x32x32xf32>
    "tpu.trace_stop"() : () -> ()
    %cst_11 = arith.constant dense<0xFF800000> : vector<8x32xf32>
    %39 = vector.multi_reduction <maximumf>, %38, %cst_11 [2] : vector<8x32x32xf32> to vector<8x32xf32>
    %40 = vector.shape_cast %39 : vector<8x32xf32> to vector<8x32x1xf32>
    %41 = vector.broadcast %40 : vector<8x32x1xf32> to vector<8x32x32xf32>
    %42 = arith.subf %38, %41 : vector<8x32x32xf32>
    %43 = math.exp %42 : vector<8x32x32xf32>
    %cst_12 = arith.constant dense<0.000000e+00> : vector<8x32xf32>
    %44 = vector.multi_reduction <add>, %43, %cst_12 [2] : vector<8x32x32xf32> to vector<8x32xf32>
    %45 = vector.shape_cast %44 : vector<8x32xf32> to vector<8x32x1xf32>
    %46 = tpu.reciprocal %45 {approx = true} : vector<8x32x1xf32> -> vector<8x32x1xf32>
    %47 = vector.broadcast %46 : vector<8x32x1xf32> to vector<8x32x32xf32>
    %48 = arith.mulf %43, %47 : vector<8x32x32xf32>
    %49 = arith.truncf %48 : vector<8x32x32xf32> to vector<8x32x32xbf16>
    "tpu.trace_start"() <{level = 10 : i32, message = "gqk,gkd->gqd"}> : () -> ()
    %cst_13 = arith.constant dense<0.000000e+00> : vector<8x32x64xf32>
    %50 = tpu.matmul %49, %37, %cst_13 {dimension_numbers = #tpu.dot_dimension_numbers<[2], [1], [1], [2], [0, 0, 0, 1, 1, 2], [0], [0]>} : vector<8x32x32xbf16>, vector<8x32x64xbf16>, vector<8x32x64xf32> -> vector<8x32x64xf32>
    "tpu.trace_stop"() : () -> ()
    %51 = vector.shape_cast %50 : vector<8x32x64xf32> to vector<2x4x32x64xf32>
    %52 = tpu.transpose %51, [0, 2, 1, 3] : vector<2x4x32x64xf32> -> vector<2x32x4x64xf32>
    %53 = vector.shape_cast %52 : vector<2x32x4x64xf32> to vector<64x256xf32>
    %54 = arith.truncf %53 : vector<64x256xf32> to vector<64x256xbf16>
    %c0_14 = arith.constant 0 : index
    %c0_15 = arith.constant 0 : index
    %55 = vector.load %arg4[%c0_14, %c0_15] : memref<256x32xbf16, #tpu.memory_space<vmem>>, vector<256x32xbf16>
    %cst_16 = arith.constant dense<0.000000e+00> : vector<64x32xf32>
    %56 = tpu.matmul %54, %55, %cst_16 {dimension_numbers = #tpu.dot_dimension_numbers<[1], [0], [0], [1], [0, 0, 1, 1], [], []>} : vector<64x256xbf16>, vector<256x32xbf16>, vector<64x32xf32> -> vector<64x32xf32>
    %57 = arith.addf %0, %56 : vector<64x32xf32>
    %c0_17 = arith.constant 0 : index
    %c0_18 = arith.constant 0 : index
    %58 = vector.load %arg5[%c0_17, %c0_18] : memref<1x32xf32, #tpu.memory_space<vmem>>, vector<1x32xf32>
    %cst_19 = arith.constant dense<0.000000e+00> : vector<64xf32>
    %59 = vector.multi_reduction <add>, %57, %cst_19 [1] : vector<64x32xf32> to vector<64xf32>
    %60 = vector.shape_cast %59 : vector<64xf32> to vector<64x1xf32>
    %cst_20 = arith.constant 3.200000e+01 : f32
    %61 = vector.broadcast %cst_20 : f32 to vector<64x1xf32>
    %62 = arith.divf %60, %61 : vector<64x1xf32>
    %63 = vector.broadcast %62 : vector<64x1xf32> to vector<64x32xf32>
    %64 = arith.subf %57, %63 : vector<64x32xf32>
    %65 = arith.mulf %64, %64 : vector<64x32xf32>
    %cst_21 = arith.constant dense<0.000000e+00> : vector<64xf32>
    %66 = vector.multi_reduction <add>, %65, %cst_21 [1] : vector<64x32xf32> to vector<64xf32>
    %67 = vector.shape_cast %66 : vector<64xf32> to vector<64x1xf32>
    %cst_22 = arith.constant 3.200000e+01 : f32
    %68 = vector.broadcast %cst_22 : f32 to vector<64x1xf32>
    %69 = arith.divf %67, %68 : vector<64x1xf32>
    %cst_23 = arith.constant 9.99999974E-6 : f32
    %70 = vector.broadcast %cst_23 : f32 to vector<64x1xf32>
    %71 = arith.addf %69, %70 : vector<64x1xf32>
    %72 = math.rsqrt %71 : vector<64x1xf32>
    %73 = vector.broadcast %72 : vector<64x1xf32> to vector<64x32xf32>
    %74 = arith.mulf %64, %73 : vector<64x32xf32>
    %75 = vector.broadcast %58 : vector<1x32xf32> to vector<64x32xf32>
    %76 = arith.mulf %74, %75 : vector<64x32xf32>
    %77 = arith.truncf %76 : vector<64x32xf32> to vector<64x32xbf16>
    %c0_24 = arith.constant 0 : index
    %c0_25 = arith.constant 0 : index
    %78 = vector.load %arg6[%c0_24, %c0_25] : memref<32x128xbf16, #tpu.memory_space<vmem>>, vector<32x128xbf16>
    %cst_26 = arith.constant dense<0.000000e+00> : vector<64x128xf32>
    %79 = tpu.matmul %77, %78, %cst_26 {dimension_numbers = #tpu.dot_dimension_numbers<[1], [0], [0], [1], [0, 0, 1, 1], [], []>} : vector<64x32xbf16>, vector<32x128xbf16>, vector<64x128xf32> -> vector<64x128xf32>
    %cst_27 = arith.constant 5.000000e-01 : f32
    %80 = vector.broadcast %cst_27 : f32 to vector<64x128xf32>
    %81 = arith.mulf %80, %79 : vector<64x128xf32>
    %cst_28 = arith.constant 4.471500e-02 : f32
    %82 = vector.broadcast %cst_28 : f32 to vector<64x128xf32>
    %83 = arith.mulf %82, %79 : vector<64x128xf32>
    %84 = arith.mulf %83, %79 : vector<64x128xf32>
    %85 = arith.mulf %84, %79 : vector<64x128xf32>
    %86 = arith.addf %79, %85 : vector<64x128xf32>
    %cst_29 = arith.constant 0.797884583 : f32
    %87 = vector.broadcast %cst_29 : f32 to vector<64x128xf32>
    %88 = arith.mulf %87, %86 : vector<64x128xf32>
    %89 = math.tanh %88 : vector<64x128xf32>
    %cst_30 = arith.constant 1.000000e+00 : f32
    %90 = vector.broadcast %cst_30 : f32 to vector<64x128xf32>
    %91 = arith.addf %90, %89 : vector<64x128xf32>
    %92 = arith.mulf %81, %91 : vector<64x128xf32>
    %c0_31 = arith.constant 0 : index
    %c0_32 = arith.constant 0 : index
    %93 = vector.load %arg7[%c0_31, %c0_32] : memref<1x128xf32, #tpu.memory_space<vmem>>, vector<1x128xf32>
    %cst_33 = arith.constant dense<0.000000e+00> : vector<64xf32>
    %94 = vector.multi_reduction <add>, %92, %cst_33 [1] : vector<64x128xf32> to vector<64xf32>
    %95 = vector.shape_cast %94 : vector<64xf32> to vector<64x1xf32>
    %cst_34 = arith.constant 1.280000e+02 : f32
    %96 = vector.broadcast %cst_34 : f32 to vector<64x1xf32>
    %97 = arith.divf %95, %96 : vector<64x1xf32>
    %98 = vector.broadcast %97 : vector<64x1xf32> to vector<64x128xf32>
    %99 = arith.subf %92, %98 : vector<64x128xf32>
    %100 = arith.mulf %99, %99 : vector<64x128xf32>
    %cst_35 = arith.constant dense<0.000000e+00> : vector<64xf32>
    %101 = vector.multi_reduction <add>, %100, %cst_35 [1] : vector<64x128xf32> to vector<64xf32>
    %102 = vector.shape_cast %101 : vector<64xf32> to vector<64x1xf32>
    %cst_36 = arith.constant 1.280000e+02 : f32
    %103 = vector.broadcast %cst_36 : f32 to vector<64x1xf32>
    %104 = arith.divf %102, %103 : vector<64x1xf32>
    %cst_37 = arith.constant 9.99999974E-6 : f32
    %105 = vector.broadcast %cst_37 : f32 to vector<64x1xf32>
    %106 = arith.addf %104, %105 : vector<64x1xf32>
    %107 = math.rsqrt %106 : vector<64x1xf32>
    %108 = vector.broadcast %107 : vector<64x1xf32> to vector<64x128xf32>
    %109 = arith.mulf %99, %108 : vector<64x128xf32>
    %110 = vector.broadcast %93 : vector<1x128xf32> to vector<64x128xf32>
    %111 = arith.mulf %109, %110 : vector<64x128xf32>
    %112 = arith.truncf %111 : vector<64x128xf32> to vector<64x128xbf16>
    %c0_38 = arith.constant 0 : index
    %c0_39 = arith.constant 0 : index
    %113 = vector.load %arg8[%c0_38, %c0_39] : memref<128x32xbf16, #tpu.memory_space<vmem>>, vector<128x32xbf16>
    %cst_40 = arith.constant dense<0.000000e+00> : vector<64x32xf32>
    %114 = tpu.matmul %112, %113, %cst_40 {dimension_numbers = #tpu.dot_dimension_numbers<[1], [0], [0], [1], [0, 0, 1, 1], [], []>} : vector<64x128xbf16>, vector<128x32xbf16>, vector<64x32xf32> -> vector<64x32xf32>
    %115 = arith.addf %114, %57 : vector<64x32xf32>
    %c0_41 = arith.constant 0 : index
    %c0_42 = arith.constant 0 : index
    %116 = vector.load %arg9[%c0_41, %c0_42] : memref<64x32xf32, #tpu.memory_space<vmem>>, vector<64x32xf32>
    tpu.vector_store %arg9[%c0_41, %c0_42], %115 {strides = array<i32>} : memref<64x32xf32, #tpu.memory_space<vmem>>, vector<64x32xf32>,
    return
  }
  func.func @transform_0(%arg0: i32) -> (i32, i32) {
    %c0_i32 = arith.constant 0 : i32
    %c0_i32_0 = arith.constant 0 : i32
    return %arg0, %c0_i32 : i32, i32
  }
  func.func @transform_1(%arg0: i32) -> (i32, i32) {
    %c0_i32 = arith.constant 0 : i32
    %c0_i32_0 = arith.constant 0 : i32
    %c0_i32_1 = arith.constant 0 : i32
    return %c0_i32, %c0_i32_0 : i32, i32
  }
  func.func @transform_2(%arg0: i32) -> (i32, i32) {
    %c0_i32 = arith.constant 0 : i32
    %c0_i32_0 = arith.constant 0 : i32
    %c0_i32_1 = arith.constant 0 : i32
    return %c0_i32, %c0_i32_0 : i32, i32
  }
  func.func @transform_3(%arg0: i32) -> (i32, i32) {
    %c0_i32 = arith.constant 0 : i32
    %c0_i32_0 = arith.constant 0 : i32
    %c0_i32_1 = arith.constant 0 : i32
    return %c0_i32, %c0_i32_0 : i32, i32
  }
  func.func @transform_4(%arg0: i32) -> (i32, i32) {
    %c0_i32 = arith.constant 0 : i32
    %c0_i32_0 = arith.constant 0 : i32
    %c0_i32_1 = arith.constant 0 : i32
    return %c0_i32, %c0_i32_0 : i32, i32
  }
  func.func @transform_5(%arg0: i32) -> (i32, i32) {
    %c0_i32 = arith.constant 0 : i32
    %c0_i32_0 = arith.constant 0 : i32
    %c0_i32_1 = arith.constant 0 : i32
    return %c0_i32, %c0_i32_0 : i32, i32
  }
  func.func @transform_6(%arg0: i32) -> (i32, i32) {
    %c0_i32 = arith.constant 0 : i32
    %c0_i32_0 = arith.constant 0 : i32
    %c0_i32_1 = arith.constant 0 : i32
    return %c0_i32, %c0_i32_0 : i32, i32
  }
  func.func @transform_7(%arg0: i32) -> (i32, i32) {
    %c0_i32 = arith.constant 0 : i32
    %c0_i32_0 = arith.constant 0 : i32
    %c0_i32_1 = arith.constant 0 : i32
    return %c0_i32, %c0_i32_0 : i32, i32
  }
  func.func @transform_8(%arg0: i32) -> (i32, i32) {
    %c0_i32 = arith.constant 0 : i32
    %c0_i32_0 = arith.constant 0 : i32
    return %arg0, %c0_i32 : i32, i32
  }
}

</mosaic_0001>

<bundles_post_ra>
// kernel: transformer_block.1
= control target key start
LH: loop header
LB: loop body
LE: loop exit
PB: predicated region body
PF: predicated region fallthrough
CT: control target
= control target key end

     0   :  { %vm40_vm0 = vcmask 261120   ;;  %s11053_s0 = inlined_call_operand.vmem [shape: f32[64,32], index: 0, kind: input, shape index: {}]   ;;  %s11054_s1 = inlined_call_operand.vmem [shape: f32[1,32], index: 1, kind: input, shape index: {}]   ;;  %s11055_s2 = inlined_call_operand.vmem [shape: bf16[32,768], index: 2, kind: input, shape index: {}]   ;;  %s11056_s3 = inlined_call_operand.vmem [shape: bf16[256,32], index: 3, kind: input, shape index: {}]   ;;  %s11057_s4 = inlined_call_operand.vmem [shape: f32[1,32], index: 4, kind: input, shape index: {}]   ;;  %s11058_s5 = inlined_call_operand.vmem [shape: bf16[32,128], index: 5, kind: input, shape index: {}]   ;;  %s11059_s6 = inlined_call_operand.vmem [shape: f32[1,128], index: 6, kind: input, shape index: {}]   ;;  %s11060_s7 = inlined_call_operand.vmem [shape: bf16[128,32], index: 7, kind: input, shape index: {}]   ;;  %s11061_s8 = inlined_call_operand.hbm [shape: f32[64,32], index: 8, kind: output, shape index: {}]  }
   0x1   :  { %v31_v0 = vld [vmem:[%s11053_s0] sm:$0xff]  ;;  %v33_v1 = vld [vmem:[%s11053_s0 + $0x10] sm:$0xff]  ;;  %v32_v2 = vld [vmem:[%s11053_s0 + $0x8] sm:$0xff] }
   0x2   :  { %v41_v3 = vsel %vm40_vm0, %v31_v0, 0.0  ;;  %v47_v4 = vsel %vm40_vm0, %v33_v1, 0.0  ;;  %v34_v5 = vld [vmem:[%s11053_s0 + $0x18] sm:$0xff]  ;;  %v35_v6 = vld [vmem:[%s11053_s0 + $0x20] sm:$0xff]  ;;  %v36_v7 = vld [vmem:[%s11053_s0 + $0x28] sm:$0xff]  ;;  %v44_v10 = vsel %vm40_vm0, %v32_v2, 0.0 }
   0x3   :  { %42 = vadd.xlane.f32.xlu0 %v41_v3  ;;  %48 = vadd.xlane.f32.xlu1 %v47_v4  ;;  %v37_v8 = vld [vmem:[%s11053_s0 + $0x30] sm:$0xff]  ;;  %v38_v9 = vld [vmem:[%s11053_s0 + $0x38] sm:$0xff]  ;;  %v50_v11 = vsel %vm40_vm0, %v34_v5, 0.0  ;;  %v53_v12 = vsel %vm40_vm0, %v35_v6, 0.0  ;;  %v56_v13 = vsel %vm40_vm0, %v36_v7, 0.0 }
   0x4   :  { %v59_v14 = vsel %vm40_vm0, %v37_v8, 0.0  ;;  %v62_v15 = vsel %vm40_vm0, %v38_v9, 0.0 }
   0x7   :  { %45 = vadd.xlane.f32.xlu0 %v44_v10  ;;  %51 = vadd.xlane.f32.xlu1 %v50_v11 }
   0xb   :  { %54 = vadd.xlane.f32.xlu0 %v53_v12  ;;  %57 = vadd.xlane.f32.xlu1 %v56_v13 }
   0xf   :  { %60 = vadd.xlane.f32.xlu0 %v59_v14  ;;  %63 = vadd.xlane.f32.xlu1 %v62_v15 }
  0x10   :  { %13 = vsyncpa [#allocation3], 0  ;;  %v7696_v56 = vld [vmem:[%s11055_s2 + $0x4] ss:$24 sps:$4 sm:$0xff]   ;;  %v7700_v58 = vld [vmem:[%s11055_s2] ss:$24 sps:$4 sm:$0xff]  }
  0x11   :  { %v7698_v57 = vld [vmem:[%s11055_s2 + $0xc] ss:$24 sps:$4 sm:$0xff]   ;;  %v7701_v59 = vld [vmem:[%s11055_s2 + $0x8] ss:$24 sps:$4 sm:$0xff]   ;;  %248 = vmatprep.subr.bf16.mxu0 %v7696_v56  ;;  %v7704_v61 = vld [vmem:[%s11055_s2 + $0x3c] ss:$24 sps:$4 sm:$0xff]  }
  0x12   :  { %321 = vmatprep.subr.bf16.mxu1 %v7698_v57  ;;  %249 = vmatpush1.bf16.msra.mxu0 %v7700_v58  ;;  %v7702_v60 = vld [vmem:[%s11055_s2 + $0x34] ss:$24 sps:$4 sm:$0xff]   ;;  %v7706_v62 = vld [vmem:[%s11055_s2 + $0x30] ss:$24 sps:$4 sm:$0xff]   ;;  %vm3971_vm1 = vcmask 523264  }
  0x13   :  { %322 = vmatpush1.bf16.msra.mxu1 %v7701_v59  ;;  %v7707_v63 = vld [vmem:[%s11055_s2 + $0x38] ss:$24 sps:$4 sm:$0xff]   ;;  %250 = vmatprep.subr.bf16.mxu0 %v7702_v60 }
  0x14   :  { %323 = vmatprep.subr.bf16.mxu1 %v7704_v61 }
  0x16   :  { %251 = vmatpush1.bf16.msra.mxu0 %v7706_v62 }
  0x17   :  { %324 = vmatpush1.bf16.msra.mxu1 %v7707_v63 }
  0x90   :  { %v43_v16 = vpop.xlane.xlu0 %42  ;;  %v49_v17 = vpop.xlane.xlu1 %48 }
  0x91   :  { %v66_v18 = vmul.f32 0.03125, %v43_v16  ;;  %v68_v19 = vmul.f32 0.03125, %v49_v17 }
  0x93   :  { %v8048_v20 = vsub.f32 %v31_v0, %v66_v18  ;;  %v8050_v21 = vsub.f32 %v33_v1, %v68_v19  ;;  %v7964_v0 = vmov 0   ;;  %v7710_v1 = vld [vmem:[%s11055_s2 + $0x14] ss:$24 sps:$4 sm:$0xff]  }
  0x94   :  { %v46_v22 = vpop.xlane.xlu0 %45  ;;  %v52_v23 = vpop.xlane.xlu1 %51  ;;  %280 = vmatprep.mubr.bf16.mxu0 %v7964_v0  ;;  %353 = vmatprep.mubr.bf16.mxu1 %v7964_v0 }
  0x95   :  { %v67_v24 = vmul.f32 0.03125, %v46_v22  ;;  %v69_v25 = vmul.f32 0.03125, %v52_v23  ;;  %v82_v26 = vmul.f32 %v8048_v20, %v8048_v20  ;;  %v84_v27 = vmul.f32 %v8050_v21, %v8050_v21  ;;  %394 = vmatprep.subr.bf16.mxu0 %v7710_v1 }
  0x97   :  { %v8056_v28 = vsub.f32 %v32_v2, %v67_v24  ;;  %v8058_v29 = vsub.f32 %v34_v5, %v69_v25  ;;  %v90_v30 = vsel %vm40_vm0, %v82_v26, 0.0  ;;  %v96_v33 = vsel %vm40_vm0, %v84_v27, 0.0 }
  0x98   :  { %91 = vadd.xlane.f32.xlu0 %v90_v30  ;;  %v55_v31 = vpop.xlane.xlu0 %54  ;;  %v58_v32 = vpop.xlane.xlu1 %57  ;;  %v7194_v30 = vld [vmem:[%s11054_s1] ss:$0 sm:$0xff] }
  0x99   :  { %v70_v34 = vmul.f32 0.03125, %v55_v31  ;;  %v71_v35 = vmul.f32 0.03125, %v58_v32  ;;  %v83_v36 = vmul.f32 %v8056_v28, %v8056_v28  ;;  %v85_v37 = vmul.f32 %v8058_v29, %v8058_v29 }
  0x9b   :  { %v8066_v38 = vsub.f32 %v35_v6, %v70_v34  ;;  %v8068_v39 = vsub.f32 %v36_v7, %v71_v35  ;;  %v93_v40 = vsel %vm40_vm0, %v83_v36, 0.0  ;;  %v99_v43 = vsel %vm40_vm0, %v85_v37, 0.0 }
  0x9c   :  { %97 = vadd.xlane.f32.xlu0 %v96_v33  ;;  %94 = vadd.xlane.f32.xlu1 %v93_v40  ;;  %v61_v41 = vpop.xlane.xlu0 %60  ;;  %v64_v42 = vpop.xlane.xlu1 %63 }
  0x9d   :  { %v72_v44 = vmul.f32 0.03125, %v61_v41  ;;  %v73_v45 = vmul.f32 0.03125, %v64_v42  ;;  %v86_v46 = vmul.f32 %v8066_v38, %v8066_v38  ;;  %v87_v47 = vmul.f32 %v8068_v39, %v8068_v39 }
  0x9f   :  { %v8076_v48 = vsub.f32 %v37_v8, %v72_v44  ;;  %v8078_v49 = vsub.f32 %v38_v9, %v73_v45  ;;  %v102_v50 = vsel %vm40_vm0, %v86_v46, 0.0  ;;  %v105_v51 = vsel %vm40_vm0, %v87_v47, 0.0  ;;  %v7711_v44 = vld [vmem:[%s11055_s2 + $0x40] ss:$24 sps:$4 sm:$0xff]  }
  0xa0   :  { %100 = vadd.xlane.f32.xlu1 %v99_v43  ;;  %103 = vadd.xlane.f32.xlu0 %v102_v50  ;;  %v7713_v43 = vld [vmem:[%s11055_s2 + $0x44] ss:$24 sps:$4 sm:$0xff]  }
  0xa1   :  { %v88_v52 = vmul.f32 %v8076_v48, %v8076_v48  ;;  %v89_v53 = vmul.f32 %v8078_v49, %v8078_v49 }
  0xa3   :  { %v108_v54 = vsel %vm40_vm0, %v88_v52, 0.0  ;;  %v111_v55 = vsel %vm40_vm0, %v89_v53, 0.0 }
  0xa4   :  { %106 = vadd.xlane.f32.xlu1 %v105_v51  ;;  %109 = vadd.xlane.f32.xlu0 %v108_v54 }
  0xa8   :  { %112 = vadd.xlane.f32.xlu1 %v111_v55 }
 0x125   :  { %v92_v2 = vpop.xlane.xlu0 %91 }
 0x126   :  { %v114_v3 = vmul.f32 0.03125, %v92_v2 }
 0x128   :  { %v122_v4 = vadd.f32 1e-05, %v114_v3 }
 0x129   :  { %v95_v5 = vpop.xlane.xlu1 %94  ;;  %v98_v6 = vpop.xlane.xlu0 %97 }
 0x12a   :  { %7740 = vrsqrt.f32 %v122_v4  ;;  %v115_v7 = vmul.f32 0.03125, %v95_v5  ;;  %v116_v8 = vmul.f32 0.03125, %v98_v6 }
 0x12c   :  { %v123_v9 = vadd.f32 1e-05, %v115_v7  ;;  %v124_v10 = vadd.f32 1e-05, %v116_v8 }
 0x12d   :  { %v101_v11 = vpop.xlane.xlu1 %100  ;;  %v104_v13 = vpop.xlane.xlu0 %103 }
 0x12e   :  { %7742 = vrsqrt.f32 %v123_v9  ;;  %v117_v12 = vmul.f32 0.03125, %v101_v11  ;;  %v118_v16 = vmul.f32 0.03125, %v104_v13 }
 0x12f   :  { %7744 = vrsqrt.f32 %v124_v10 }
 0x130   :  { %v125_v14 = vadd.f32 1e-05, %v117_v12  ;;  %v126_v23 = vadd.f32 1e-05, %v118_v16  ;;  %v7967_v16 = vmov 1934713408  }
 0x131   :  { %v107_v15 = vpop.xlane.xlu1 %106  ;;  %v110_v24 = vpop.xlane.xlu0 %109 }
 0x132   :  { %7746 = vrsqrt.f32 %v125_v14  ;;  %v119_v17 = vmul.f32 0.03125, %v107_v15  ;;  %v120_v32 = vmul.f32 0.03125, %v110_v24  ;;  %v7966_v24 = vmov 1983009808  }
 0x133   :  { %v566_v15 = vunpack.c.l.s4 %v7967_v16 }
 0x134   :  { %v7741_v18 = vpop.eup %7740  ;;  %v127_v19 = vadd.f32 1e-05, %v119_v17  ;;  %v128_v42 = vadd.f32 1e-05, %v120_v32 }
 0x135   :  { %v113_v22 = vpop.xlane.xlu1 %112  ;;  %v138_v25 = vmul.f32 %v7741_v18, %v8048_v20  ;;  %v7708_v20 = vld [vmem:[%s11055_s2 + $0x10] ss:$24 sps:$4 sm:$0xff]   ;;  %s7965_s2 = smov 64   ;;  %v567_v9 = vunpack.c.0.s8 %v566_v15 }
 0x136   :  { %7748 = vrsqrt.f32 %v127_v19  ;;  %v121_v27 = vmul.f32 0.03125, %v113_v22 }
 0x137   :  { %7750 = vrsqrt.f32 %v126_v23  ;;  %v152_v34 = vmul.f32 %v7194_v30, %v138_v25  ;;  %v534_v25 = vunpack.c.l.s4 %v7966_v24 }
 0x138   :  { %v7743_v26 = vpop.eup %7742  ;;  %v129_v37 = vadd.f32 1e-05, %v121_v27 }
 0x139   :  { %v139_v31 = vmul.f32 %v7743_v26, %v8056_v28  ;;  %v7745_v33 = vpop.eup %7744  ;;  %v535_v27 = vunpack.c.0.s8 %v534_v25 }
 0x13a   :  { %v140_v28 = vmul.f32 %v7745_v33, %v8050_v21  ;;  %7752 = vrsqrt.f32 %v129_v37 }
 0x13b   :  { %v153_v35 = vmul.f32 %v7194_v30, %v139_v31  ;;  %7754 = vrsqrt.f32 %v128_v42 }
 0x13c   :  { %v7747_v36 = vpop.eup %7746  ;;  %v154_v46 = vmul.f32 %v7194_v30, %v140_v28 }
 0x13d   :  { %v160_v40 = vpack.c.bf16 %v153_v35, %v152_v34  ;;  %v141_v41 = vmul.f32 %v7747_v36, %v8058_v29  ;;  %v536_v35 = vlaneseq }
 0x13f   :  { %7207 = vmatmul.mubr.msk.bf16.vlgmr.msra.gmra.mrb[0].mxu0 %vm40_vm0, %v160_v40  ;;  %7211 = vmatmul.mubr.msk.bf16.vlgmr.msra.gmra.mrb[0].mxu1 %vm40_vm0, %v160_v40  ;;  %v155_v29 = vmul.f32 %v7194_v30, %v141_v41  ;;  %v537_v17 = vshrl.u32 %v536_v35, 7 }
 0x140   :  { %290 = vmatprep.mubr.bf16.mxu0 %v7964_v0  ;;  %363 = vmatprep.mubr.bf16.mxu1 %v7964_v0  ;;  %v7749_v45 = vpop.eup %7748 }
 0x141   :  { %395 = vmatpush1.bf16.msra.mxu0 %v7708_v20  ;;  %v7751_v47 = vpop.eup %7750  ;;  %v161_v50 = vpack.c.bf16 %v155_v29, %v154_v46  ;;  %v143_v51 = vmul.f32 %v7749_v45, %v8068_v39  ;;  %v8443_v14 = vsub.s32 %v535_v27, %v537_v17  ;;  %v8457_v7 = vsub.s32 %v567_v9, %v537_v17 }
 0x142   :  { %396 = vmatprep.subr.bf16.mxu0 %v7713_v43  ;;  %v142_v21 = vmul.f32 %v7751_v47, %v8066_v38 }
 0x143   :  { %v157_v52 = vmul.f32 %v7194_v30, %v143_v51  ;;  %11128 = vst [vmem:[#allocation9_spill] sm:$0xff] %v8443_v14 }
 0x144   :  { %v7753_v53 = vpop.eup %7752  ;;  %v156_v54 = vmul.f32 %v7194_v30, %v142_v21 }
 0x145   :  { %397 = vmatpush1.bf16.msra.mxu0 %v7711_v44  ;;  %v7755_v55 = vpop.eup %7754  ;;  %v145_v57 = vmul.f32 %v7753_v53, %v8078_v49 }
 0x146   :  { %v162_v56 = vpack.c.bf16 %v157_v52, %v156_v54  ;;  %v144_v39 = vmul.f32 %v7755_v55, %v8076_v48 }
 0x147   :  { %7208 = vmatmul.mubr.msk.bf16.gmra.mrb[4].mxu0 %vm40_vm0, %v161_v50  ;;  %7212 = vmatmul.mubr.msk.bf16.gmra.mrb[4].mxu1 %vm40_vm0, %v161_v50  ;;  %v159_v38 = vmul.f32 %v7194_v30, %v145_v57 }
 0x148   :  { %300 = vmatprep.mubr.bf16.mxu0 %v7964_v0  ;;  %373 = vmatprep.mubr.bf16.mxu1 %v7964_v0  ;;  %v158_v58 = vmul.f32 %v7194_v30, %v144_v39 }
 0x14a   :  { %v163_v59 = vpack.c.bf16 %v159_v38, %v158_v58 }
 0x14f   :  { %7209 = vmatmul.mubr.msk.bf16.gmra.mrb[8].mxu0 %vm40_vm0, %v162_v56  ;;  %7213 = vmatmul.mubr.msk.bf16.gmra.mrb[8].mxu1 %vm40_vm0, %v162_v56 }
 0x150   :  { %310 = vmatprep.mubr.bf16.mxu0 %v7964_v0  ;;  %383 = vmatprep.mubr.bf16.mxu1 %v7964_v0 }
 0x157   :  { %7210 = vmatmul.mubr.msk.bf16.gmra.mrb[12].mxu0 %vm40_vm0, %v163_v59  ;;  %7214 = vmatmul.mubr.msk.bf16.gmra.mrb[12].mxu1 %vm40_vm0, %v163_v59 }
 0x158   :  { %426 = vmatprep.mubr.bf16.mxu0 %v7964_v0 }
 0x15f   :  { %7215 = vmatmul.mubr.msk.bf16.vlgmr.msra.gmra.mrb[16].mxu0 %vm40_vm0, %v160_v40 }
 0x160   :  { %436 = vmatprep.mubr.bf16.mxu0 %v7964_v0 }
 0x167   :  { %7216 = vmatmul.mubr.msk.bf16.gmra.mrb[20].mxu0 %vm40_vm0, %v161_v50 }
 0x168   :  { %446 = vmatprep.mubr.bf16.mxu0 %v7964_v0 }
 0x16f   :  { %7217 = vmatmul.mubr.msk.bf16.gmra.mrb[24].mxu0 %vm40_vm0, %v162_v56 }
 0x170   :  { %456 = vmatprep.mubr.bf16.mxu0 %v7964_v0 }
 0x177   :  { %7218 = vmatmul.mubr.msk.bf16.gmra.mrb[28].mxu0 %vm40_vm0, %v163_v59 }
 0x212   :  { %v8159_v48 = vpop.f32.mrb[0].mxu0  ;;  %v8161_v49 = vpop.f32.mrb[0].mxu1 }
 0x213   :  { %1643 = vrot.lane.b32.xlu0 %v8161_v49, %s7965_s2  ;;  %v8165_v60 = vpop.f32.mrb[1].mxu0  ;;  %v8167_v61 = vpop.f32.mrb[1].mxu1 }
 0x214   :  { %v531_v62 = vcombine.low %v8159_v48, %v8165_v60  ;;  %v532_v63 = vcombine.high %v8159_v48, %v8165_v60  ;;  %v1699_v0 = vcombine.low %v8161_v49, %v8167_v61  ;;  %v1700_v1 = vcombine.high %v8161_v49, %v8167_v61  ;;  %1675 = vrot.lane.b32.xlu1 %v8167_v61, %s7965_s2  ;;  %v8179_v2 = vpop.f32.mrb[2].mxu0  ;;  %v8181_v3 = vpop.f32.mrb[2].mxu1 }
 0x215   :  { %v8183_v4 = vpop.f32.mrb[3].mxu0  ;;  %v8185_v5 = vpop.f32.mrb[3].mxu1 }
 0x216   :  { %v599_v6 = vcombine.low %v8179_v2, %v8183_v4  ;;  %v8449_v8 = vrot.slane %v531_v62, %v8443_v14  ;;  %v8455_v24 = vrot.slane %v532_v63, %v8443_v14  ;;  %v1707_v16 = vrot.slane %v1699_v0, %v8443_v14 }
 0x217   :  { %475 = vrot.lane.b32.xlu0 %v8159_v48, %s7965_s2  ;;  %v1714_v15 = vrot.slane %v1700_v1, %v8443_v14  ;;  %v11129_v48 = vcombine.high %v8179_v2, %v8183_v4  ;;  %v11130_v63 = vcombine.low %v8181_v3, %v8185_v5  ;;  %v11131_v49 = vcombine.high %v8181_v3, %v8185_v5 }
 0x218   :  { %1645 = vrot.lane.b32.xlu1 %v8181_v3, %s7965_s2  ;;  %v8471_v62 = vrot.slane %v599_v6, %v8443_v14 }
 0x219   :  { %v8483_v0 = vrot.slane %v11130_v63, %v8443_v14  ;;  %v8489_v61 = vrot.slane %v11131_v49, %v8443_v14 }
 0x21a   :  { %v8199_v10 = vpop.f32.mrb[4].mxu0  ;;  %v8201_v11 = vpop.f32.mrb[4].mxu1 }
 0x21b   :  { %1647 = vrot.lane.b32.xlu0 %v8201_v11, %s7965_s2  ;;  %v8205_v12 = vpop.f32.mrb[5].mxu0  ;;  %v8207_v13 = vpop.f32.mrb[5].mxu1 }
 0x21c   :  { %477 = vrot.lane.b32.xlu1 %v8179_v2, %s7965_s2  ;;  %v8219_v18 = vpop.f32.mrb[6].mxu0  ;;  %v8221_v19 = vpop.f32.mrb[6].mxu1  ;;  %v11132_v1 = vcombine.low %v8199_v10, %v8205_v12  ;;  %v11133_v2 = vcombine.high %v8199_v10, %v8205_v12  ;;  %v11134_v9 = vcombine.low %v8201_v11, %v8207_v13  ;;  %v11135_v3 = vcombine.high %v8201_v11, %v8207_v13 }
 0x21d   :  { %v8223_v22 = vpop.f32.mrb[7].mxu0  ;;  %v8225_v23 = vpop.f32.mrb[7].mxu1 }
 0x21e   :  { %v8495_v6 = vrot.slane %v11132_v1, %v8443_v14  ;;  %v8507_v17 = vrot.slane %v11134_v9, %v8443_v14  ;;  %v11136_v25 = vcombine.low %v8219_v18, %v8223_v22 }
 0x21f   :  { %1679 = vrot.lane.b32.xlu0 %v8207_v13, %s7965_s2  ;;  %v11139_v13 = vcombine.high %v8221_v19, %v8225_v23 }
 0x220   :  { %1677 = vrot.lane.b32.xlu1 %v8185_v5, %s7965_s2  ;;  %v8513_v5 = vrot.slane %v11135_v3, %v8443_v14  ;;  %v8519_v27 = vrot.slane %v11136_v25, %v8443_v14 }
 0x221   :  { %v8537_v63 = vrot.slane %v11139_v13, %v8443_v14 }
 0x222   :  { %v8239_v30 = vpop.f32.mrb[8].mxu0  ;;  %v8241_v31 = vpop.f32.mrb[8].mxu1 }
 0x223   :  { %507 = vrot.lane.b32.xlu0 %v8165_v60, %s7965_s2  ;;  %v8245_v32 = vpop.f32.mrb[9].mxu0  ;;  %v8247_v33 = vpop.f32.mrb[9].mxu1  ;;  %v8477_v60 = vrot.slane %v11129_v48, %v8443_v14  ;;  %v11138_v48 = vcombine.low %v8221_v19, %v8225_v23 }
 0x224   :  { %1649 = vrot.lane.b32.xlu1 %v8221_v19, %s7965_s2  ;;  %v8259_v40 = vpop.f32.mrb[10].mxu0  ;;  %v8261_v41 = vpop.f32.mrb[10].mxu1  ;;  %v11140_v49 = vcombine.low %v8239_v30, %v8245_v32  ;;  %v11142_v9 = vcombine.low %v8241_v31, %v8247_v33 }
 0x225   :  { %v8263_v20 = vpop.f32.mrb[11].mxu0  ;;  %v8265_v42 = vpop.f32.mrb[11].mxu1  ;;  %v8531_v11 = vrot.slane %v11138_v48, %v8443_v14 }
 0x226   :  { %v8555_v19 = vrot.slane %v11142_v9, %v8443_v14  ;;  %v11146_v48 = vcombine.high %v8259_v40, %v8263_v20 }
 0x227   :  { %479 = vrot.lane.b32.xlu0 %v8199_v10, %s7965_s2  ;;  %v11137_v10 = vcombine.high %v8219_v18, %v8223_v22 }
 0x228   :  { %1681 = vrot.lane.b32.xlu1 %v8225_v23, %s7965_s2  ;;  %v11143_v23 = vcombine.high %v8241_v31, %v8247_v33  ;;  %v8573_v13 = vrot.slane %v11146_v48, %v8443_v14 }
 0x22a   :  { %v8279_v45 = vpop.f32.mrb[12].mxu0  ;;  %v8281_v46 = vpop.f32.mrb[12].mxu1  ;;  %v8561_v3 = vrot.slane %v11143_v23, %v8443_v14  ;;  %11147 = vst [vmem:[#allocation11_spill] sm:$0xff] %v8573_v13 }
 0x22b   :  { %511 = vrot.lane.b32.xlu0 %v8205_v12, %s7965_s2  ;;  %v8285_v47 = vpop.f32.mrb[13].mxu0  ;;  %v8287_v50 = vpop.f32.mrb[13].mxu1  ;;  %v8525_v12 = vrot.slane %v11137_v10, %v8443_v14 }
 0x22c   :  { %509 = vrot.lane.b32.xlu1 %v8183_v4, %s7965_s2  ;;  %v8299_v54 = vpop.f32.mrb[14].mxu0  ;;  %v8301_v55 = vpop.f32.mrb[14].mxu1  ;;  %v8501_v4 = vrot.slane %v11133_v2, %v8443_v14  ;;  %v11155_v48 = vcombine.high %v8281_v46, %v8287_v50 }
 0x22d   :  { %v8303_v56 = vpop.f32.mrb[15].mxu0  ;;  %v8305_v57 = vpop.f32.mrb[15].mxu1 }
 0x22f   :  { %1651 = vrot.lane.b32.xlu0 %v8241_v31, %s7965_s2  ;;  %v11148_v31 = vcombine.low %v8261_v41, %v8265_v42 }
 0x230   :  { %481 = vrot.lane.b32.xlu1 %v8219_v18, %s7965_s2  ;;  %v8543_v18 = vrot.slane %v11140_v49, %v8443_v14 }
 0x232   :  { %v8319_v53 = vpop.f32.mrb[16].mxu0 }
 0x233   :  { %483 = vrot.lane.b32.xlu0 %v8239_v30, %s7965_s2  ;;  %v8323_v39 = vpop.f32.mrb[17].mxu0 }
 0x234   :  { %513 = vrot.lane.b32.xlu1 %v8223_v22, %s7965_s2  ;;  %v8331_v59 = vpop.f32.mrb[18].mxu0  ;;  %v11141_v22 = vcombine.high %v8239_v30, %v8245_v32  ;;  %v11144_v30 = vcombine.low %v8259_v40, %v8263_v20 }
 0x235   :  { %v8333_v52 = vpop.f32.mrb[19].mxu0 }
 0x236   :  { %v8549_v1 = vrot.slane %v11141_v22, %v8443_v14  ;;  %v11150_v22 = vcombine.low %v8279_v45, %v8285_v47 }
 0x237   :  { %1683 = vrot.lane.b32.xlu0 %v8247_v33, %s7965_s2  ;;  %v8579_v33 = vrot.slane %v11148_v31, %v8443_v14  ;;  %v8613_v31 = vrot.slane %v11155_v48, %v8443_v14  ;;  %v11161_v48 = vcombine.high %v8301_v55, %v8305_v57 }
 0x238   :  { %1653 = vrot.lane.b32.xlu1 %v8261_v41, %s7965_s2 }
 0x23a   :  { %v8343_v58 = vpop.f32.mrb[20].mxu0 }
 0x23b   :  { %1655 = vrot.lane.b32.xlu0 %v8281_v46, %s7965_s2  ;;  %v8347_v38 = vpop.f32.mrb[21].mxu0 }
 0x23c   :  { %485 = vrot.lane.b32.xlu1 %v8259_v40, %s7965_s2  ;;  %v8355_v51 = vpop.f32.mrb[22].mxu0  ;;  %v11152_v40 = vcombine.high %v8279_v45, %v8285_v47 }
 0x23d   :  { %v8357_v29 = vpop.f32.mrb[23].mxu0 }
 0x23f   :  { %1687 = vrot.lane.b32.xlu0 %v8287_v50, %s7965_s2 }
 0x240   :  { %1685 = vrot.lane.b32.xlu1 %v8265_v42, %s7965_s2 }
 0x242   :  { %v8367_v21 = vpop.f32.mrb[24].mxu0 }
 0x243   :  { %515 = vrot.lane.b32.xlu0 %v8245_v32, %s7965_s2  ;;  %v8371_v44 = vpop.f32.mrb[25].mxu0  ;;  %v8567_v32 = vrot.slane %v11144_v30, %v8443_v14 }
 0x244   :  { %1657 = vrot.lane.b32.xlu1 %v8301_v55, %s7965_s2  ;;  %v8379_v43 = vpop.f32.mrb[26].mxu0 }
 0x245   :  { %v8381_v36 = vpop.f32.mrb[27].mxu0  ;;  %11145 = vst [vmem:[#allocation10_spill] sm:$0xff] %v8567_v32 }
 0x247   :  { %487 = vrot.lane.b32.xlu0 %v8279_v45, %s7965_s2  ;;  %v11156_v45 = vcombine.low %v8299_v54, %v8303_v56 }
 0x248   :  { %1689 = vrot.lane.b32.xlu1 %v8305_v57, %s7965_s2 }
 0x24a   :  { %v8391_v28 = vpop.f32.mrb[28].mxu0 }
 0x24b   :  { %11124 = vst [vmem:[#allocation5_spill] sm:$0xff] %v8391_v28  ;;  %519 = vrot.lane.b32.xlu0 %v8285_v47, %s7965_s2  ;;  %v8395_v37 = vpop.f32.mrb[29].mxu0  ;;  %v8619_v47 = vrot.slane %v11156_v45, %v8443_v14  ;;  %v8637_v45 = vrot.slane %v11161_v48, %v8443_v14 }
 0x24c   :  { %11125 = vst [vmem:[#allocation6_spill] sm:$0xff] %v8395_v37  ;;  %517 = vrot.lane.b32.xlu1 %v8263_v20, %s7965_s2  ;;  %v8403_v34 = vpop.f32.mrb[30].mxu0  ;;  %v8597_v20 = vrot.slane %v11152_v40, %v8443_v14 }
 0x24d   :  { %11126 = vst [vmem:[#allocation7_spill] sm:$0xff] %v8403_v34  ;;  %v8405_v26 = vpop.f32.mrb[31].mxu0  ;;  %11157 = vst [vmem:[#allocation14_spill] sm:$0xff] %v8619_v47 }
 0x24e   :  { %11127 = vst [vmem:[#allocation8_spill] sm:$0xff] %v8405_v26  ;;  %11153 = vst [vmem:[#allocation13_spill] sm:$0xff] %v8597_v20 }
 0x24f   :  { %2811 = vrot.lane.b32.xlu0 %v8319_v53, %s7965_s2 }
 0x250   :  { %489 = vrot.lane.b32.xlu1 %v8299_v54, %s7965_s2 }
 0x253   :  { %2815 = vrot.lane.b32.xlu0 %v8343_v58, %s7965_s2 }
 0x254   :  { %521 = vrot.lane.b32.xlu1 %v8303_v56, %s7965_s2 }
 0x257   :  { %2847 = vrot.lane.b32.xlu0 %v8347_v38, %s7965_s2 }
 0x258   :  { %2843 = vrot.lane.b32.xlu1 %v8323_v39, %s7965_s2 }
 0x25b   :  { %2819 = vrot.lane.b32.xlu0 %v8367_v21, %s7965_s2 }
 0x25c   :  { %2813 = vrot.lane.b32.xlu1 %v8331_v59, %s7965_s2 }
 0x25f   :  { %2823 = vrot.lane.b32.xlu0 %v8391_v28, %s7965_s2 }
 0x260   :  { %2845 = vrot.lane.b32.xlu1 %v8333_v52, %s7965_s2 }
 0x264   :  { %2817 = vrot.lane.b32.xlu1 %v8355_v51, %s7965_s2 }
 0x268   :  { %2849 = vrot.lane.b32.xlu1 %v8357_v29, %s7965_s2 }
 0x26c   :  { %2851 = vrot.lane.b32.xlu1 %v8371_v44, %s7965_s2 }
 0x270   :  { %2821 = vrot.lane.b32.xlu1 %v8379_v43, %s7965_s2 }
 0x274   :  { %2853 = vrot.lane.b32.xlu1 %v8381_v36, %s7965_s2 }
 0x278   :  { %2825 = vrot.lane.b32.xlu1 %v8403_v34, %s7965_s2 }
 0x285   :  { %v1644_v35 = vpop.permute.xlu0 %1643 }
 0x286   :  { %v1676_v2 = vpop.permute.xlu1 %1675 }
 0x287   :  { %v1715_v25 = vcombine.low %v1644_v35, %v1676_v2  ;;  %v1716_v10 = vcombine.high %v1644_v35, %v1676_v2  ;;  %v11149_v35 = vcombine.high %v8261_v41, %v8265_v42  ;;  %v8591_v2 = vrot.slane %v11150_v22, %v8443_v14 }
 0x288   :  { %v11154_v41 = vcombine.low %v8281_v46, %v8287_v50  ;;  %v11160_v46 = vcombine.low %v8301_v55, %v8305_v57 }
 0x289   :  { %v8585_v49 = vrot.slane %v11149_v35, %v8443_v14  ;;  %11151 = vst [vmem:[#allocation12_spill] sm:$0xff] %v8591_v2  ;;  %v1723_v9 = vrot.slane %v1715_v25, %v8443_v14  ;;  %v1730_v23 = vrot.slane %v1716_v10, %v8443_v14  ;;  %v8601_v30 = vpop.permute.xlu0 %475  ;;  %v11158_v25 = vcombine.high %v8299_v54, %v8303_v56 }
 0x28a   :  { %v8607_v42 = vrot.slane %v11154_v41, %v8443_v14  ;;  %v1646_v35 = vpop.permute.xlu1 %1645  ;;  %v8631_v50 = vrot.slane %v11160_v46, %v8443_v14  ;;  %v11162_v54 = vcombine.low %v8319_v53, %v8323_v39  ;;  %v11166_v46 = vcombine.low %v8331_v59, %v8333_v52 }
 0x28b   :  { %v8625_v10 = vrot.slane %v11158_v25, %v8443_v14  ;;  %v1731_v22 = vcombine.low %v1707_v16, %v1723_v9  ;;  %v1732_v40 = vcombine.high %v1707_v16, %v1723_v9  ;;  %v1747_v41 = vcombine.low %v1714_v15, %v1730_v23 }
 0x28c   :  { %v1748_v34 = vcombine.high %v1714_v15, %v1730_v23  ;;  %v8643_v56 = vrot.slane %v11162_v54, %v8443_v14  ;;  %v11164_v16 = vcombine.high %v8319_v53, %v8323_v39  ;;  %v8659_v48 = vrot.slane %v11166_v46, %v8443_v14 }
 0x28d   :  { %11159 = vst [vmem:[#allocation15_spill] sm:$0xff] %v8625_v10  ;;  %v1739_v9 = vrot.slane %v1731_v22, %v8457_v7  ;;  %v1746_v23 = vrot.slane %v1732_v40, %v8457_v7  ;;  %v1755_v55 = vrot.slane %v1747_v41, %v8457_v7  ;;  %v1648_v25 = vpop.permute.xlu0 %1647  ;;  %v11168_v53 = vcombine.high %v8331_v59, %v8333_v52 }
 0x28e   :  { %11163 = vst [vmem:[#allocation16_spill] sm:$0xff] %v8643_v56  ;;  %v8649_v15 = vrot.slane %v11164_v16, %v8443_v14  ;;  %v1762_v57 = vrot.slane %v1748_v34, %v8457_v7  ;;  %11167 = vst [vmem:[#allocation18_spill] sm:$0xff] %v8659_v48  ;;  %v11170_v22 = vcombine.low %v8343_v58, %v8347_v38  ;;  %v8679_v54 = vpop.permute.xlu1 %477 }
 0x28f   :  { %v8665_v39 = vrot.slane %v11168_v53, %v8443_v14  ;;  %v11172_v34 = vcombine.high %v8343_v58, %v8347_v38  ;;  %v2243_v16 = vcombine.low %v1739_v9, %v1746_v23  ;;  %v7235_v46 = vcombine.high %v1739_v9, %v1746_v23 }
 0x290   :  { %11165 = vst [vmem:[#allocation17_spill] sm:$0xff] %v8649_v15  ;;  %v8671_v40 = vrot.slane %v11170_v22, %v8443_v14  ;;  %v2259_v28 = vcombine.low %v1755_v55, %v1762_v57  ;;  %v7236_v52 = vcombine.high %v1755_v55, %v1762_v57  ;;  %v11174_v59 = vcombine.low %v8355_v51, %v8357_v29 }
 0x291   :  { %11169 = vst [vmem:[#allocation19_spill] sm:$0xff] %v8665_v39  ;;  %v8677_v41 = vrot.slane %v11172_v34, %v8443_v14  ;;  %v11176_v22 = vcombine.high %v8355_v51, %v8357_v29  ;;  %v11178_v38 = vcombine.low %v8367_v21, %v8371_v44  ;;  %v11180_v9 = vcombine.high %v8367_v21, %v8371_v44  ;;  %v1680_v34 = vpop.permute.xlu0 %1679 }
 0x292   :  { %11171 = vst [vmem:[#allocation20_spill] sm:$0xff] %v8671_v40  ;;  %v8685_v53 = vrot.slane %v11174_v59, %v8443_v14  ;;  %v8706_v55 = vrot.slane %v2243_v16, %v8443_v14  ;;  %v8709_v57 = vrot.slane %v7235_v46, %v8443_v14  ;;  %v8712_v29 = vrot.slane %v2259_v28, %v8443_v14  ;;  %v1678_v28 = vpop.permute.xlu1 %1677 }
 0x293   :  { %11173 = vst [vmem:[#allocation21_spill] sm:$0xff] %v8677_v41  ;;  %v8691_v37 = vrot.slane %v11176_v22, %v8443_v14  ;;  %v8697_v58 = vrot.slane %v11178_v38, %v8443_v14  ;;  %v8703_v23 = vrot.slane %v11180_v9, %v8443_v14  ;;  %v8715_v51 = vrot.slane %v7236_v52, %v8443_v14 }
 0x294   :  { %11175 = vst [vmem:[#allocation22_spill] sm:$0xff] %v8685_v53  ;;  %v11182_v59 = vcombine.low %v8379_v43, %v8381_v36  ;;  %v11184_v21 = vcombine.high %v8379_v43, %v8381_v36  ;;  %v1851_v46 = vcombine.low %v1648_v25, %v1680_v34  ;;  %v1852_v22 = vcombine.high %v1648_v25, %v1680_v34 }
 0x295   :  { %11177 = vst [vmem:[#allocation23_spill] sm:$0xff] %v8691_v37  ;;  %11179 = vst [vmem:[#allocation24_spill] sm:$0xff] %v8697_v58  ;;  %v1783_v38 = vcombine.low %v1646_v35, %v1678_v28  ;;  %v1784_v9 = vcombine.high %v1646_v35, %v1678_v28  ;;  %v2275_v52 = vcombine.low %v8706_v55, %v8709_v57  ;;  %v508_v34 = vpop.permute.xlu0 %507 }
 0x296   :  { %11181 = vst [vmem:[#allocation25_spill] sm:$0xff] %v8703_v23  ;;  %v8721_v44 = vrot.slane %v11182_v59, %v8443_v14  ;;  %v8727_v16 = vrot.slane %v11184_v21, %v8443_v14  ;;  %v2291_v26 = vcombine.low %v8712_v29, %v8715_v51  ;;  %v1859_v59 = vrot.slane %v1851_v46, %v8443_v14  ;;  %v1650_v43 = vpop.permute.xlu1 %1649 }
 0x297   :  { %v1791_v25 = vrot.slane %v1783_v38, %v8443_v14  ;;  %v1798_v35 = vrot.slane %v1784_v9, %v8443_v14  ;;  %v8742_v21 = vrot.slane %v2275_v52, %v8457_v7 }
 0x298   :  { %11183 = vst [vmem:[#allocation26_spill] sm:$0xff] %v8721_v44  ;;  %11185 = vst [vmem:[#allocation27_spill] sm:$0xff] %v8727_v16  ;;  %v1866_v44 = vrot.slane %v1852_v22, %v8443_v14  ;;  %v8745_v28 = vrot.slane %v2291_v26, %v8457_v7  ;;  %v1867_v46 = vcombine.low %v8507_v17, %v1859_v59 }
 0x299   :  { %v1868_v22 = vcombine.high %v8507_v17, %v1859_v59  ;;  %v1799_v38 = vcombine.low %v8483_v0, %v1791_v25  ;;  %v1800_v9 = vcombine.high %v8483_v0, %v1791_v25  ;;  %v1815_v23 = vcombine.low %v8489_v61, %v1798_v35  ;;  %v480_v25 = vpop.permute.xlu0 %479 }
 0x29a   :  { %v1883_v36 = vcombine.low %v8513_v5, %v1866_v44  ;;  %v1884_v16 = vcombine.high %v8513_v5, %v1866_v44  ;;  %v1816_v52 = vcombine.high %v8489_v61, %v1798_v35  ;;  %v1875_v26 = vrot.slane %v1867_v46, %v8457_v7  ;;  %v1682_v46 = vpop.permute.xlu1 %1681 }
 0x29b   :  { %v1882_v58 = vrot.slane %v1868_v22, %v8457_v7  ;;  %v1807_v59 = vrot.slane %v1799_v38, %v8457_v7  ;;  %v1814_v5 = vrot.slane %v1800_v9, %v8457_v7  ;;  %v1823_v44 = vrot.slane %v1815_v23, %v8457_v7 }
 0x29c   :  { %v1891_v37 = vrot.slane %v1883_v36, %v8457_v7  ;;  %v1898_v17 = vrot.slane %v1884_v16, %v8457_v7  ;;  %v1830_v0 = vrot.slane %v1816_v52, %v8457_v7 }
 0x29d   :  { %v2379_v53 = vcombine.low %v1875_v26, %v1882_v58  ;;  %v7239_v39 = vcombine.high %v1875_v26, %v1882_v58  ;;  %v2311_v48 = vcombine.low %v1807_v59, %v1814_v5  ;;  %v7237_v22 = vcombine.high %v1807_v59, %v1814_v5 }
 0x29e   :  { %v2395_v61 = vcombine.low %v1891_v37, %v1898_v17  ;;  %v7240_v35 = vcombine.high %v1891_v37, %v1898_v17  ;;  %v2327_v15 = vcombine.low %v1823_v44, %v1830_v0  ;;  %v7238_v36 = vcombine.high %v1823_v44, %v1830_v0  ;;  %v510_v44 = vpop.permute.xlu1 %509 }
 0x29f   :  { %v8764_v16 = vrot.slane %v2379_v53, %v8443_v14  ;;  %v8767_v38 = vrot.slane %v7239_v39, %v8443_v14  ;;  %v8776_v58 = vrot.slane %v2311_v48, %v8443_v14  ;;  %v8779_v37 = vrot.slane %v7237_v22, %v8443_v14  ;;  %v512_v39 = vpop.permute.xlu0 %511 }
 0x2a0   :  { %v8770_v23 = vrot.slane %v2395_v61, %v8443_v14  ;;  %v8773_v9 = vrot.slane %v7240_v35, %v8443_v14  ;;  %v8782_v52 = vrot.slane %v2327_v15, %v8443_v14  ;;  %v8785_v53 = vrot.slane %v7238_v36, %v8443_v14 }
 0x2a1   :  { %v547_v26 = vcombine.low %v8601_v30, %v508_v34  ;;  %v548_v17 = vcombine.high %v8601_v30, %v508_v34  ;;  %v1919_v59 = vcombine.low %v1650_v43, %v1682_v46  ;;  %v1920_v5 = vcombine.high %v1650_v43, %v1682_v46 }
 0x2a2   :  { %v683_v0 = vcombine.low %v480_v25, %v512_v39  ;;  %v684_v48 = vcombine.high %v480_v25, %v512_v39  ;;  %v615_v61 = vcombine.low %v8679_v54, %v510_v44  ;;  %v616_v35 = vcombine.high %v8679_v54, %v510_v44 }
 0x2a3   :  { %v555_v15 = vrot.slane %v547_v26, %v8443_v14  ;;  %v562_v22 = vrot.slane %v548_v17, %v8443_v14  ;;  %v1927_v36 = vrot.slane %v1919_v59, %v8443_v14  ;;  %v1934_v56 = vrot.slane %v1920_v5, %v8443_v14 }
 0x2a4   :  { %v691_v41 = vrot.slane %v683_v0, %v8443_v14  ;;  %v698_v30 = vrot.slane %v684_v48, %v8443_v14  ;;  %v623_v43 = vrot.slane %v615_v61, %v8443_v14  ;;  %v630_v34 = vrot.slane %v616_v35, %v8443_v14 }
 0x2a5   :  { %v563_v25 = vcombine.low %v8449_v8, %v555_v15  ;;  %v564_v54 = vcombine.high %v8449_v8, %v555_v15  ;;  %v579_v46 = vcombine.low %v8455_v24, %v562_v22  ;;  %v580_v39 = vcombine.high %v8455_v24, %v562_v22 }
 0x2a6   :  { %v1935_v26 = vcombine.low %v8531_v11, %v1927_v36  ;;  %v1936_v17 = vcombine.high %v8531_v11, %v1927_v36  ;;  %v1951_v59 = vcombine.low %v8537_v63, %v1934_v56  ;;  %v1952_v5 = vcombine.high %v8537_v63, %v1934_v56 }
 0x2a7   :  { %v571_v44 = vrot.slane %v563_v25, %v8457_v7  ;;  %v578_v0 = vrot.slane %v564_v54, %v8457_v7  ;;  %v587_v48 = vrot.slane %v579_v46, %v8457_v7  ;;  %v594_v8 = vrot.slane %v580_v39, %v8457_v7 }
 0x2a8   :  { %v1943_v61 = vrot.slane %v1935_v26, %v8457_v7  ;;  %v1950_v24 = vrot.slane %v1936_v17, %v8457_v7  ;;  %v1959_v35 = vrot.slane %v1951_v59, %v8457_v7  ;;  %v1966_v11 = vrot.slane %v1952_v5, %v8457_v7 }
 0x2a9   :  { %v1075_v15 = vcombine.low %v571_v44, %v578_v0  ;;  %v7219_v22 = vcombine.high %v571_v44, %v578_v0  ;;  %v1091_v36 = vcombine.low %v587_v48, %v594_v8  ;;  %v7220_v63 = vcombine.high %v587_v48, %v594_v8 }
 0x2aa   :  { %v2447_v56 = vcombine.low %v1943_v61, %v1950_v24  ;;  %v7241_v25 = vcombine.high %v1943_v61, %v1950_v24  ;;  %v2463_v40 = vcombine.low %v1959_v35, %v1966_v11  ;;  %v7242_v54 = vcombine.high %v1959_v35, %v1966_v11  ;;  %v482_v35 = vpop.permute.xlu1 %481 }
 0x2ab   :  { %v8816_v46 = vrot.slane %v1075_v15, %v8443_v14  ;;  %v8819_v39 = vrot.slane %v7219_v22, %v8443_v14  ;;  %v8822_v26 = vrot.slane %v1091_v36, %v8443_v14  ;;  %v8825_v17 = vrot.slane %v7220_v63, %v8443_v14  ;;  %v8847_v36 = vpop.permute.xlu0 %1651 }
 0x2ac   :  { %v8828_v59 = vrot.slane %v2447_v56, %v8443_v14  ;;  %v8831_v5 = vrot.slane %v7241_v25, %v8443_v14  ;;  %v8834_v44 = vrot.slane %v2463_v40, %v8443_v14  ;;  %v8837_v0 = vrot.slane %v7242_v54, %v8443_v14 }
 0x2ad   :  { %v699_v48 = vcombine.low %v8495_v6, %v691_v41  ;;  %v700_v8 = vcombine.high %v8495_v6, %v691_v41  ;;  %v715_v61 = vcombine.low %v8501_v4, %v698_v30  ;;  %v716_v24 = vcombine.high %v8501_v4, %v698_v30 }
 0x2ae   :  { %v631_v11 = vcombine.low %v8471_v62, %v623_v43  ;;  %v632_v15 = vcombine.high %v8471_v62, %v623_v43  ;;  %v647_v22 = vcombine.low %v8477_v60, %v630_v34  ;;  %v648_v40 = vcombine.high %v8477_v60, %v630_v34  ;;  %v514_v13 = vpop.permute.xlu1 %513 }
 0x2af   :  { %v707_v63 = vrot.slane %v699_v48, %v8457_v7  ;;  %v714_v56 = vrot.slane %v700_v8, %v8457_v7  ;;  %v723_v6 = vrot.slane %v715_v61, %v8457_v7  ;;  %v730_v41 = vrot.slane %v716_v24, %v8457_v7 }
 0x2b0   :  { %v639_v4 = vrot.slane %v631_v11, %v8457_v7  ;;  %v646_v30 = vrot.slane %v632_v15, %v8457_v7  ;;  %v655_v62 = vrot.slane %v647_v22, %v8457_v7  ;;  %v662_v43 = vrot.slane %v648_v40, %v8457_v7 }
 0x2b1   :  { %v1211_v25 = vcombine.low %v707_v63, %v714_v56  ;;  %v7223_v60 = vcombine.high %v707_v63, %v714_v56  ;;  %v1227_v34 = vcombine.low %v723_v6, %v730_v41  ;;  %v7224_v54 = vcombine.high %v723_v6, %v730_v41  ;;  %v8873_v6 = vpop.permute.xlu0 %483 }
 0x2b2   :  { %v1143_v10 = vcombine.low %v639_v4, %v646_v30  ;;  %v7221_v48 = vcombine.high %v639_v4, %v646_v30  ;;  %v1159_v47 = vcombine.low %v655_v62, %v662_v43  ;;  %v7222_v8 = vcombine.high %v655_v62, %v662_v43 }
 0x2b3   :  { %v1218_v61 = vrot.slane %v1211_v25, %v8443_v14  ;;  %v1226_v24 = vrot.slane %v7223_v60, %v8443_v14  ;;  %v1234_v11 = vrot.slane %v1227_v34, %v8443_v14  ;;  %v1242_v15 = vrot.slane %v7224_v54, %v8443_v14 }
 0x2b4   :  { %v8862_v22 = vrot.slane %v1143_v10, %v8443_v14  ;;  %v8865_v40 = vrot.slane %v7221_v48, %v8443_v14  ;;  %v8868_v63 = vrot.slane %v1159_v47, %v8443_v14  ;;  %v8871_v56 = vrot.slane %v7222_v8, %v8443_v14 }
 0x2b5   :  { %v1243_v41 = vcombine.low %v1218_v61, %v1226_v24  ;;  %v1244_v4 = vcombine.high %v1218_v61, %v1226_v24  ;;  %v1259_v30 = vcombine.low %v1234_v11, %v1242_v15  ;;  %v1260_v62 = vcombine.high %v1234_v11, %v1242_v15 }
 0x2b6   :  { %v751_v43 = vcombine.low %v482_v35, %v514_v13  ;;  %v752_v25 = vcombine.high %v482_v35, %v514_v13  ;;  %v2307_v10 = vcombine.low %v8742_v21, %v8745_v28  ;;  %v2343_v60 = vcombine.low %v8776_v58, %v8779_v37 }
 0x2b7   :  { %v8880_v47 = vrot.slane %v1243_v41, %v8457_v7  ;;  %v8883_v34 = vrot.slane %v1244_v4, %v8457_v7  ;;  %v8886_v54 = vrot.slane %v1259_v30, %v8457_v7  ;;  %v8889_v48 = vrot.slane %v1260_v62, %v8457_v7 }
 0x2b8   :  { %v759_v13 = vrot.slane %v751_v43, %v8443_v14  ;;  %v766_v35 = vrot.slane %v752_v25, %v8443_v14  ;;  %v8894_v8 = vrot.slane %v2343_v60, %v8457_v7  ;;  %v2359_v61 = vcombine.low %v8782_v52, %v8785_v53  ;;  %v1684_v25 = vpop.permute.xlu0 %1683 }
 0x2b9   :  { %v11186_v24 = vcombine.high %v8706_v55, %v8709_v57  ;;  %v11187_v15 = vcombine.high %v8712_v29, %v8715_v51  ;;  %v2344_v4 = vcombine.high %v8776_v58, %v8779_v37  ;;  %v2360_v30 = vcombine.high %v8782_v52, %v8785_v53 }
 0x2ba   :  { %v767_v62 = vcombine.low %v8519_v27, %v759_v13  ;;  %v768_v43 = vcombine.high %v8519_v27, %v759_v13  ;;  %v783_v55 = vcombine.low %v8525_v12, %v766_v35  ;;  %v784_v57 = vcombine.high %v8525_v12, %v766_v35 }
 0x2bb   :  { %v8902_v11 = vrot.slane %v11186_v24, %v8457_v7  ;;  %v8908_v41 = vrot.slane %v11187_v15, %v8457_v7  ;;  %v8919_v60 = vrot.slane %v2359_v61, %v8457_v7  ;;  %v8924_v51 = vrot.slane %v2344_v4, %v8457_v7 }
 0x2bc   :  { %v8927_v58 = vrot.slane %v2360_v30, %v8457_v7  ;;  %v775_v37 = vrot.slane %v767_v62, %v8457_v7  ;;  %v782_v27 = vrot.slane %v768_v43, %v8457_v7  ;;  %v791_v52 = vrot.slane %v783_v55, %v8457_v7  ;;  %v8939_v62 = vpop.permute.xlu1 %1653 }
 0x2bd   :  { %v2309_v29 = vcombine.low %v8902_v11, %v8908_v41  ;;  %11188 = vst [vmem:[#allocation28_spill] sm:$0xff] %v8924_v51  ;;  %v798_v12 = vrot.slane %v784_v57, %v8457_v7  ;;  %v2375_v53 = vcombine.low %v8894_v8, %v8919_v60  ;;  %v1987_v35 = vcombine.low %v8847_v36, %v1684_v25 }
 0x2be   :  { %v2377_v13 = vcombine.low %v8924_v51, %v8927_v58  ;;  %v1988_v61 = vcombine.high %v8847_v36, %v1684_v25  ;;  %v1279_v24 = vcombine.low %v775_v37, %v782_v27  ;;  %v7225_v15 = vcombine.high %v775_v37, %v782_v27 }
 0x2bf   :  { %v1295_v4 = vcombine.low %v791_v52, %v798_v12  ;;  %v7226_v30 = vcombine.high %v791_v52, %v798_v12  ;;  %v2787_v43 = vpack.c.bf16 %v2375_v53, %v2307_v10  ;;  %v1995_v57 = vrot.slane %v1987_v35, %v8443_v14 }
 0x2c0   :  { %v2791_v55 = vpack.c.bf16 %v2377_v13, %v2309_v29  ;;  %v2002_v32 = vrot.slane %v1988_v61, %v8443_v14  ;;  %v1286_v20 = vrot.slane %v1279_v24, %v8443_v14  ;;  %v1294_v2 = vrot.slane %v7225_v15, %v8443_v14  ;;  %v1656_v15 = vpop.permute.xlu0 %1655 }
 0x2c1   :  { %v1302_v51 = vrot.slane %v1295_v4, %v8443_v14  ;;  %v1310_v36 = vrot.slane %v7226_v30, %v8443_v14  ;;  %7633 = vmatprep.subr.msk.bf16.mxu1 %vm3971_vm1, %v2787_v43  ;;  %v3979_v25 = vsel %vm3971_vm1, %v2787_v43, 0  ;;  %v2003_v29 = vcombine.low %v8555_v19, %v1995_v57 }
 0x2c2   :  { %7637 = vmatprep.subr.msk.bf16.mxu0 %vm3971_vm1, %v2791_v55  ;;  %v4101_v10 = vsel %vm3971_vm1, %v2791_v55, 0  ;;  %v2004_v37 = vcombine.high %v8555_v19, %v1995_v57  ;;  %v1311_v27 = vcombine.low %v1286_v20, %v1294_v2  ;;  %v1312_v52 = vcombine.high %v1286_v20, %v1294_v2  ;;  %7470 = vmatpush3.bf16.xpose.msra.mxu1 %v3979_v25 }
 0x2c3   :  { %v1327_v12 = vcombine.low %v1302_v51, %v1310_v36  ;;  %v1328_v53 = vcombine.high %v1302_v51, %v1310_v36  ;;  %7486 = vmatpush3.bf16.xpose.msra.mxu0 %v4101_v10  ;;  %v2011_v13 = vrot.slane %v2003_v29, %v8457_v7  ;;  %v2019_v61 = vcombine.low %v8561_v3, %v2002_v32  ;;  %v8969_v51 = vpop.permute.xlu1 %485 }
 0x2c4   :  { %v2018_v35 = vrot.slane %v2004_v37, %v8457_v7  ;;  %v2020_v24 = vcombine.high %v8561_v3, %v2002_v32  ;;  %v8958_v4 = vrot.slane %v1311_v27, %v8457_v7  ;;  %v8961_v19 = vrot.slane %v1312_v52, %v8457_v7 }
 0x2c5   :  { %v8964_v2 = vrot.slane %v1327_v12, %v8457_v7  ;;  %v8967_v20 = vrot.slane %v1328_v53, %v8457_v7  ;;  %v2027_v30 = vrot.slane %v2019_v61, %v8457_v7  ;;  %v2411_v55 = vcombine.low %v8764_v16, %v8767_v38 }
 0x2c6   :  { %11189 = vst [vmem:[#allocation29_spill] sm:$0xff] %v8961_v19  ;;  %v2034_v43 = vrot.slane %v2020_v24, %v8457_v7  ;;  %v2515_v3 = vcombine.low %v2011_v13, %v2018_v35  ;;  %v7243_v32 = vcombine.high %v2011_v13, %v2018_v35  ;;  %v2427_v57 = vcombine.low %v8770_v23, %v8773_v9 }
 0x2c7   :  { %v2479_v36 = vcombine.low %v8828_v59, %v8831_v5  ;;  %v2495_v25 = vcombine.low %v8834_v44, %v8837_v0  ;;  %v8988_v52 = vrot.slane %v2411_v55, %v8457_v7  ;;  %v2412_v24 = vcombine.high %v8764_v16, %v8767_v38 }
 0x2c8   :  { %v8982_v10 = vrot.slane %v2515_v3, %v8443_v14  ;;  %v8985_v29 = vrot.slane %v7243_v32, %v8443_v14  ;;  %v2531_v37 = vcombine.low %v2027_v30, %v2034_v43  ;;  %v7244_v27 = vcombine.high %v2027_v30, %v2034_v43  ;;  %v1688_v43 = vpop.permute.xlu0 %1687 }
 0x2c9   :  { %v8991_v12 = vrot.slane %v2427_v57, %v8457_v7  ;;  %v8994_v53 = vrot.slane %v2479_v36, %v8457_v7  ;;  %v8997_v13 = vrot.slane %v2495_v25, %v8457_v7  ;;  %v2428_v30 = vcombine.high %v8770_v23, %v8773_v9  ;;  %v1686_v36 = vpop.permute.xlu1 %1685 }
 0x2ca   :  { %v9000_v35 = vrot.slane %v2531_v37, %v8443_v14  ;;  %v9003_v61 = vrot.slane %v7244_v27, %v8443_v14  ;;  %v2480_v55 = vcombine.high %v8828_v59, %v8831_v5  ;;  %v2496_v57 = vcombine.high %v8834_v44, %v8837_v0 }
 0x2cb   :  { %v2443_v3 = vcombine.low %v8988_v52, %v8991_v12  ;;  %v2511_v32 = vcombine.low %v8994_v53, %v8997_v13  ;;  %v9018_v25 = vrot.slane %v2412_v24, %v8457_v7  ;;  %v9021_v16 = vrot.slane %v2428_v30, %v8457_v7 }
 0x2cc   :  { %v2308_v38 = vcombine.high %v8742_v21, %v8745_v28  ;;  %v2376_v23 = vcombine.high %v8894_v8, %v8919_v60  ;;  %v9028_v37 = vrot.slane %v2480_v55, %v8457_v7  ;;  %v9031_v59 = vrot.slane %v2496_v57, %v8457_v7 }
 0x2cd   :  { %v2788_v9 = vpack.c.bf16 %v2511_v32, %v2443_v3  ;;  %v2123_v5 = vcombine.low %v1656_v15, %v1688_v43  ;;  %v2445_v44 = vcombine.low %v9018_v25, %v9021_v16  ;;  %v2124_v27 = vcombine.high %v1656_v15, %v1688_v43 }
 0x2ce   :  { %11190 = vst [vmem:[#allocation30_spill] sm:$0xff] %v9028_v37  ;;  %11191 = vst [vmem:[#allocation31_spill] sm:$0xff] %v9031_v59  ;;  %v9035_v0 = vpack.c.bf16 %v2376_v23, %v2308_v38  ;;  %v2055_v24 = vcombine.low %v8939_v62, %v1686_v36  ;;  %v2513_v21 = vcombine.low %v9028_v37, %v9031_v59 }
 0x2cf   :  { %7634 = vmatprep.subr.msk.bf16.mxu1 %vm3971_vm1, %v2788_v9  ;;  %v3982_v28 = vsel %vm3971_vm1, %v2788_v9, 0  ;;  %v2131_v8 = vrot.slane %v2123_v5, %v8443_v14  ;;  %v2056_v60 = vcombine.high %v8939_v62, %v1686_v36  ;;  %v2138_v30 = vrot.slane %v2124_v27, %v8443_v14 }
 0x2d0   :  { %7472 = vmatpush3.bf16.xpose.msra.mxu1 %v3982_v28  ;;  %v2063_v3 = vrot.slane %v2055_v24, %v8443_v14  ;;  %v1107_v15 = vcombine.low %v8816_v46, %v8819_v39  ;;  %v1123_v43 = vcombine.low %v8822_v26, %v8825_v17  ;;  %v2792_v32 = vpack.c.bf16 %v2513_v21, %v2445_v44  ;;  %v1658_v24 = vpop.permute.xlu1 %1657 }
 0x2d1   :  { %7635 = vmatprep.subr.msk.bf16.mxu1 %vm3971_vm1, %v9035_v0  ;;  %v2139_v55 = vcombine.low %v8607_v42, %v2131_v8  ;;  %v2140_v57 = vcombine.high %v8607_v42, %v2131_v8  ;;  %v2070_v62 = vrot.slane %v2056_v60, %v8443_v14  ;;  %v2155_v36 = vcombine.low %v8613_v31, %v2138_v30 }
 0x2d2   :  { %v2156_v38 = vcombine.high %v8613_v31, %v2138_v30  ;;  %v2071_v23 = vcombine.low %v8579_v33, %v2063_v3  ;;  %v2072_v9 = vcombine.high %v8579_v33, %v2063_v3  ;;  %7638 = vmatprep.subr.msk.bf16.mxu0 %vm3971_vm1, %v2792_v32  ;;  %v4104_v5 = vsel %vm3971_vm1, %v2792_v32, 0 }
 0x2d3   :  { %v2147_v44 = vrot.slane %v2139_v55, %v8457_v7  ;;  %v2154_v27 = vrot.slane %v2140_v57, %v8457_v7  ;;  %v2087_v42 = vcombine.low %v8585_v49, %v2070_v62  ;;  %7488 = vmatpush3.bf16.xpose.msra.mxu0 %v4104_v5  ;;  %v2163_v21 = vrot.slane %v2155_v36, %v8457_v7 }
 0x2d4   :  { %v2170_v31 = vrot.slane %v2156_v38, %v8457_v7  ;;  %v2079_v28 = vrot.slane %v2071_v23, %v8457_v7  ;;  %v2086_v33 = vrot.slane %v2072_v9, %v8457_v7  ;;  %v2088_v30 = vcombine.high %v8585_v49, %v2070_v62 }
 0x2d5   :  { %v2651_v8 = vcombine.low %v2147_v44, %v2154_v27  ;;  %v7247_v60 = vcombine.high %v2147_v44, %v2154_v27  ;;  %v2095_v3 = vrot.slane %v2087_v42, %v8457_v7  ;;  %v9078_v23 = vrot.slane %v1107_v15, %v8457_v7  ;;  %v516_v27 = vpop.permute.xlu0 %515 }
 0x2d6   :  { %v2667_v32 = vcombine.low %v2163_v21, %v2170_v31  ;;  %v7248_v55 = vcombine.high %v2163_v21, %v2170_v31  ;;  %v2583_v57 = vcombine.low %v2079_v28, %v2086_v33  ;;  %v7245_v37 = vcombine.high %v2079_v28, %v2086_v33  ;;  %v1690_v28 = vpop.permute.xlu1 %1689 }
 0x2d7   :  { %v9071_v5 = vrot.slane %v2651_v8, %v8443_v14  ;;  %v9074_v36 = vrot.slane %v7247_v60, %v8443_v14  ;;  %v2102_v38 = vrot.slane %v2088_v30, %v8457_v7  ;;  %v9093_v31 = vrot.slane %v1123_v43, %v8457_v7 }
 0x2d8   :  { %v9081_v9 = vrot.slane %v2667_v32, %v8443_v14  ;;  %v9084_v49 = vrot.slane %v7248_v55, %v8443_v14  ;;  %v9087_v62 = vrot.slane %v2583_v57, %v8443_v14  ;;  %v9090_v44 = vrot.slane %v7245_v37, %v8443_v14 }
 0x2d9   :  { %11192 = vst [vmem:[#allocation32_spill] sm:$0xff] %v9071_v5  ;;  %11193 = vst [vmem:[#allocation33_spill] sm:$0xff] %v9074_v36  ;;  %v2599_v42 = vcombine.low %v2095_v3, %v2102_v38  ;;  %v7246_v21 = vcombine.high %v2095_v3, %v2102_v38  ;;  %v1175_v15 = vcombine.low %v8862_v22, %v8865_v40 }
 0x2da   :  { %11194 = vst [vmem:[#allocation34_spill] sm:$0xff] %v9081_v9  ;;  %11195 = vst [vmem:[#allocation35_spill] sm:$0xff] %v9084_v49  ;;  %v1191_v33 = vcombine.low %v8868_v63, %v8871_v56  ;;  %v1108_v8 = vcombine.high %v8816_v46, %v8819_v39  ;;  %v1124_v37 = vcombine.high %v8822_v26, %v8825_v17 }
 0x2db   :  { %v1176_v60 = vcombine.high %v8862_v22, %v8865_v40  ;;  %v9106_v30 = vrot.slane %v2599_v42, %v8443_v14  ;;  %v9109_v43 = vrot.slane %v7246_v21, %v8443_v14  ;;  %v1139_v3 = vcombine.low %v9078_v23, %v9093_v31  ;;  %v9136_v21 = vpop.permute.xlu0 %487 }
 0x2dc   :  { %v9114_v32 = vrot.slane %v1175_v15, %v8457_v7  ;;  %v9117_v46 = vrot.slane %v1191_v33, %v8457_v7  ;;  %v9120_v39 = vrot.slane %v1108_v8, %v8457_v7  ;;  %v9123_v26 = vrot.slane %v1124_v37, %v8457_v7 }
 0x2dd   :  { %v9126_v17 = vrot.slane %v1176_v60, %v8457_v7  ;;  %v1192_v22 = vcombine.high %v8868_v63, %v8871_v56  ;;  %v819_v40 = vcombine.low %v8873_v6, %v516_v27  ;;  %v820_v55 = vcombine.high %v8873_v6, %v516_v27  ;;  %v9146_v27 = vpop.permute.xlu1 %517 }
 0x2de   :  { %v2191_v57 = vcombine.low %v1658_v24, %v1690_v28  ;;  %v1207_v38 = vcombine.low %v9114_v32, %v9117_v46  ;;  %v1141_v42 = vcombine.low %v9120_v39, %v9123_v26  ;;  %v2192_v15 = vcombine.high %v1658_v24, %v1690_v28 }
 0x2df   :  { %v1275_v33 = vcombine.low %v8880_v47, %v8886_v54  ;;  %v9141_v8 = vrot.slane %v1192_v22, %v8457_v7  ;;  %v827_v63 = vrot.slane %v819_v40, %v8443_v14  ;;  %v834_v56 = vrot.slane %v820_v55, %v8443_v14 }
 0x2e0   :  { %v2199_v6 = vrot.slane %v2191_v57, %v8443_v14  ;;  %v1619_v37 = vpack.c.bf16 %v1207_v38, %v1139_v3  ;;  %v2206_v60 = vrot.slane %v2192_v15, %v8443_v14  ;;  %v1343_v24 = vcombine.low %v8958_v4, %v8964_v2 }
 0x2e1   :  { %v4040_v28 = vsel %vm3971_vm1, %v9035_v0, 0  ;;  %v1209_v22 = vcombine.low %v9126_v17, %v9141_v8  ;;  %v835_v40 = vcombine.low %v8543_v18, %v827_v63  ;;  %v836_v55 = vcombine.high %v8543_v18, %v827_v63 }
 0x2e2   :  { %v851_v57 = vcombine.low %v8549_v1, %v834_v56  ;;  %7473 = vmatprep.mubr.msk.bf16.mxu1 %vm3971_vm1, %v1619_v37  ;;  %v852_v3 = vcombine.high %v8549_v1, %v834_v56  ;;  %v2207_v38 = vcombine.low %v8631_v50, %v2199_v6  ;;  %v2208_v15 = vcombine.high %v8631_v50, %v2199_v6  ;;  %v520_v56 = vpop.permute.xlu0 %519 }
 0x2e3   :  { %v2223_v9 = vcombine.low %v8637_v45, %v2206_v60  ;;  %v1623_v0 = vpack.c.bf16 %v1209_v22, %v1141_v42  ;;  %v843_v49 = vrot.slane %v835_v40, %v8457_v7  ;;  %v850_v5 = vrot.slane %v836_v55, %v8457_v7  ;;  %v9172_v40 = vpop.permute.xlu1 %489 }
 0x2e4   :  { %v859_v36 = vrot.slane %v851_v57, %v8457_v7  ;;  %v866_v18 = vrot.slane %v852_v3, %v8457_v7  ;;  %v2215_v63 = vrot.slane %v2207_v38, %v8457_v7  ;;  %v2222_v37 = vrot.slane %v2208_v15, %v8457_v7 }
 0x2e5   :  { %v2224_v1 = vcombine.high %v8637_v45, %v2206_v60  ;;  %7489 = vmatprep.mubr.msk.bf16.mxu0 %vm3971_vm1, %v1623_v0  ;;  %v1347_v50 = vcombine.low %v843_v49, %v850_v5  ;;  %v7227_v6 = vcombine.high %v843_v49, %v850_v5  ;;  %v2231_v42 = vrot.slane %v2223_v9, %v8457_v7 }
 0x2e6   :  { %v1620_v22 = vpack.c.bf16 %v1343_v24, %v1275_v33  ;;  %v1363_v55 = vcombine.low %v859_v36, %v866_v18  ;;  %v7228_v57 = vcombine.high %v859_v36, %v866_v18  ;;  %v2719_v59 = vcombine.low %v2215_v63, %v2222_v37 }
 0x2e7   :  { %v2238_v3 = vrot.slane %v2224_v1, %v8457_v7  ;;  %v9176_v38 = vrot.slane %v1347_v50, %v8443_v14  ;;  %v9179_v45 = vrot.slane %v7227_v6, %v8443_v14  ;;  %v7249_v60 = vcombine.high %v2215_v63, %v2222_v37  ;;  %v9209_v1 = vpop.permute.xlu0 %2811 }
 0x2e8   :  { %7474 = vmatmul.mubr.msk.bf16.vlgmr.msra.gmra.mrb[16].mxu1 %vm3971_vm1, %v1620_v22  ;;  %v1277_v5 = vcombine.low %v8883_v34, %v8889_v48  ;;  %v9185_v9 = vrot.slane %v1363_v55, %v8443_v14  ;;  %v9188_v36 = vrot.slane %v7228_v57, %v8443_v14  ;;  %v9191_v49 = vrot.slane %v2719_v59, %v8443_v14 }
 0x2e9   :  { %v2735_v33 = vcombine.low %v2231_v42, %v2238_v3  ;;  %7478 = vmatpush3.bf16.xpose.msra.mxu1 %v4040_v28  ;;  %v9194_v24 = vrot.slane %v7249_v60, %v8443_v14  ;;  %v7250_v15 = vcombine.high %v2231_v42, %v2238_v3  ;;  %v1345_v0 = vcombine.low %v8961_v19, %v8967_v20  ;;  %v9216_v42 = vpop.permute.xlu1 %521  ;;  %v11197_v3 = vld [vmem:[#allocation12_spill] sm:$0xff] }
 0x2ea   :  { %v2444_v18 = vcombine.high %v8988_v52, %v8991_v12  ;;  %v2512_v37 = vcombine.high %v8994_v53, %v8997_v13  ;;  %v1140_v59 = vcombine.high %v9078_v23, %v9093_v31  ;;  %v1208_v28 = vcombine.high %v9114_v32, %v9117_v46 }
 0x2eb   :  { %v9201_v63 = vrot.slane %v2735_v33, %v8443_v14  ;;  %v9212_v50 = vrot.slane %v7250_v15, %v8443_v14  ;;  %v1624_v6 = vpack.c.bf16 %v1345_v0, %v1277_v5  ;;  %v955_v52 = vcombine.low %v9136_v21, %v520_v56  ;;  %v11199_v33 = vld [vmem:[#allocation10_spill] sm:$0xff] }
 0x2ec   :  { %v956_v12 = vcombine.high %v9136_v21, %v520_v56  ;;  %v2790_v22 = vpack.c.bf16 %v2512_v37, %v2444_v18  ;;  %v1621_v53 = vpack.c.bf16 %v1208_v28, %v1140_v59  ;;  %v887_v13 = vcombine.low %v8969_v51, %v9146_v27  ;;  %v11196_v21 = vld [vmem:[#allocation28_spill] sm:$0xff]  ;;  %v11200_v18 = vld [vmem:[#allocation11_spill] sm:$0xff]  ;;  %v2816_v28 = vpop.permute.xlu0 %2815 }
 0x2ed   :  { %v888_v23 = vcombine.high %v8969_v51, %v9146_v27  ;;  %7490 = vmatmul.mubr.msk.bf16.vlgmr.msra.gmra.mrb[32].mxu0 %vm3971_vm1, %v1624_v6  ;;  %v963_v31 = vrot.slane %v955_v52, %v8443_v14  ;;  %v2310_v46 = vcombine.high %v8902_v11, %v8908_v41  ;;  %v2378_v56 = vcombine.high %v11196_v21, %v8927_v58  ;;  %v11198_v41 = vld [vmem:[#allocation13_spill] sm:$0xff] }
 0x2ee   :  { %v970_v32 = vrot.slane %v956_v12, %v8443_v14  ;;  %7636 = vmatprep.subr.msk.bf16.mxu1 %vm3971_vm1, %v2790_v22  ;;  %7481 = vmatprep.mubr.msk.bf16.mxu1 %vm3971_vm1, %v1621_v53  ;;  %v895_v55 = vrot.slane %v887_v13, %v8443_v14  ;;  %v4043_v27 = vsel %vm3971_vm1, %v2790_v22, 0  ;;  %v1023_v57 = vcombine.low %v9172_v40, %v9216_v42 }
 0x2ef   :  { %v902_v51 = vrot.slane %v888_v23, %v8443_v14  ;;  %v971_v60 = vcombine.low %v11197_v3, %v963_v31  ;;  %v972_v11 = vcombine.high %v11197_v3, %v963_v31 }
 0x2f0   :  { %v987_v5 = vcombine.low %v11198_v41, %v970_v32  ;;  %v988_v58 = vcombine.high %v11198_v41, %v970_v32  ;;  %v903_v15 = vcombine.low %v11199_v33, %v895_v55  ;;  %v904_v0 = vcombine.high %v11199_v33, %v895_v55 }
 0x2f1   :  { %v919_v37 = vcombine.low %v11200_v18, %v902_v51  ;;  %v920_v59 = vcombine.high %v11200_v18, %v902_v51  ;;  %7480 = vmatpush3.bf16.xpose.msra.mxu1 %v4043_v27  ;;  %v979_v6 = vrot.slane %v971_v60, %v8457_v7  ;;  %v986_v52 = vrot.slane %v972_v11, %v8457_v7 }
 0x2f2   :  { %v995_v12 = vrot.slane %v987_v5, %v8457_v7  ;;  %v1002_v22 = vrot.slane %v988_v58, %v8457_v7  ;;  %v911_v53 = vrot.slane %v903_v15, %v8457_v7  ;;  %v918_v13 = vrot.slane %v904_v0, %v8457_v7 }
 0x2f3   :  { %v927_v23 = vrot.slane %v919_v37, %v8457_v7  ;;  %v934_v31 = vrot.slane %v920_v59, %v8457_v7  ;;  %v1483_v32 = vcombine.low %v979_v6, %v986_v52  ;;  %v7231_v21 = vcombine.high %v979_v6, %v986_v52  ;;  %v2848_v59 = vpop.permute.xlu0 %2847  ;;  %v11206_v52 = vld [vmem:[#allocation15_spill] sm:$0xff] }
 0x2f4   :  { %v1499_v55 = vcombine.low %v995_v12, %v1002_v22  ;;  %v7232_v51 = vcombine.high %v995_v12, %v1002_v22  ;;  %v1415_v27 = vcombine.low %v911_v53, %v918_v13  ;;  %v7229_v3 = vcombine.high %v911_v53, %v918_v13 }
 0x2f5   :  { %v1431_v60 = vcombine.low %v927_v23, %v934_v31  ;;  %v7230_v11 = vcombine.high %v927_v23, %v934_v31  ;;  %v9253_v41 = vrot.slane %v1483_v32, %v8443_v14  ;;  %v9256_v5 = vrot.slane %v7231_v21, %v8443_v14 }
 0x2f6   :  { %v9259_v58 = vrot.slane %v1499_v55, %v8443_v14  ;;  %v9262_v33 = vrot.slane %v7232_v51, %v8443_v14  ;;  %v9265_v15 = vrot.slane %v1415_v27, %v8443_v14  ;;  %v9268_v0 = vrot.slane %v7229_v3, %v8443_v14 }
 0x2f7   :  { %11201 = vst [vmem:[#allocation28_spill] sm:$0xff] %v9253_v41  ;;  %11202 = vst [vmem:[#allocation12_spill] sm:$0xff] %v9256_v5  ;;  %v9271_v18 = vrot.slane %v1431_v60, %v8443_v14  ;;  %v9274_v37 = vrot.slane %v7230_v11, %v8443_v14  ;;  %v9284_v53 = vpack.c.bf16 %v2378_v56, %v2310_v46 }
 0x2f8   :  { %11203 = vst [vmem:[#allocation13_spill] sm:$0xff] %v9259_v58  ;;  %11204 = vst [vmem:[#allocation10_spill] sm:$0xff] %v9262_v33  ;;  %v1024_v13 = vcombine.high %v9172_v40, %v9216_v42  ;;  %v1031_v23 = vrot.slane %v1023_v57, %v8443_v14  ;;  %v2547_v31 = vcombine.low %v8982_v10, %v8985_v29  ;;  %v11205_v42 = vld [vmem:[#allocation14_spill] sm:$0xff]  ;;  %v11207_v33 = vld [vmem:[#allocation20_spill] sm:$0xff] }
 0x2f9   :  { %v2563_v32 = vcombine.low %v9000_v35, %v9003_v61  ;;  %v2615_v21 = vcombine.low %v9087_v62, %v9090_v44  ;;  %v2631_v55 = vcombine.low %v9106_v30, %v9109_v43  ;;  %v3019_v51 = vcombine.low %v2816_v28, %v2848_v59  ;;  %7639 = vmatprep.subr.msk.bf16.mxu1 %vm3971_vm1, %v9284_v53  ;;  %v11208_v58 = vld [vmem:[#allocation21_spill] sm:$0xff] }
 0x2fa   :  { %v1038_v40 = vrot.slane %v1024_v13, %v8443_v14  ;;  %v1039_v46 = vcombine.low %v11205_v42, %v1031_v23  ;;  %v1040_v56 = vcombine.high %v11205_v42, %v1031_v23  ;;  %v9303_v57 = vrot.slane %v2547_v31, %v8457_v7  ;;  %v2844_v31 = vpop.permute.xlu1 %2843 }
 0x2fb   :  { %v9306_v27 = vrot.slane %v2563_v32, %v8457_v7  ;;  %v9309_v3 = vrot.slane %v2615_v21, %v8457_v7  ;;  %v9312_v60 = vrot.slane %v2631_v55, %v8457_v7  ;;  %v3020_v11 = vcombine.high %v2816_v28, %v2848_v59 }
 0x2fc   :  { %v1047_v22 = vrot.slane %v1039_v46, %v8457_v7  ;;  %v1054_v13 = vrot.slane %v1040_v56, %v8457_v7  ;;  %v1055_v12 = vcombine.low %v11206_v52, %v1038_v40  ;;  %v1056_v23 = vcombine.high %v11206_v52, %v1038_v40 }
 0x2fd   :  { %v2579_v32 = vcombine.low %v9303_v57, %v9306_v27  ;;  %v2647_v21 = vcombine.low %v9309_v3, %v9312_v60  ;;  %v3027_v42 = vrot.slane %v3019_v51, %v8443_v14  ;;  %v3034_v55 = vrot.slane %v3020_v11, %v8443_v14 }
 0x2fe   :  { %v1063_v28 = vrot.slane %v1055_v12, %v8457_v7  ;;  %v1070_v59 = vrot.slane %v1056_v23, %v8457_v7  ;;  %v1551_v46 = vcombine.low %v1047_v22, %v1054_v13  ;;  %v7233_v56 = vcombine.high %v1047_v22, %v1054_v13 }
 0x2ff   :  { %v2795_v6 = vpack.c.bf16 %v2647_v21, %v2579_v32  ;;  %v3035_v52 = vcombine.low %v11207_v33, %v3027_v42  ;;  %v3036_v40 = vcombine.high %v11207_v33, %v3027_v42  ;;  %v3051_v5 = vcombine.low %v11208_v58, %v3034_v55  ;;  %v9354_v42 = vpop.permute.xlu1 %2813 }
 0x300   :  { %v9330_v41 = vrot.slane %v1551_v46, %v8443_v14  ;;  %v9333_v51 = vrot.slane %v7233_v56, %v8443_v14  ;;  %v1567_v11 = vcombine.low %v1063_v28, %v1070_v59  ;;  %v7234_v19 = vcombine.high %v1063_v28, %v1070_v59  ;;  %v11219_v46 = vld [vmem:[#allocation17_spill] sm:$0xff] }
 0x301   :  { %7641 = vmatprep.subr.msk.bf16.mxu0 %vm3971_vm1, %v2795_v6  ;;  %v4223_v12 = vsel %vm3971_vm1, %v2795_v6, 0  ;;  %v9338_v22 = vrot.slane %v3035_v52, %v8457_v7  ;;  %v9341_v13 = vrot.slane %v3036_v40, %v8457_v7  ;;  %v3052_v33 = vcombine.high %v11208_v58, %v3034_v55  ;;  %v11217_v52 = vld [vmem:[#allocation30_spill] sm:$0xff] }
 0x302   :  { %11209 = vst [vmem:[#allocation11_spill] sm:$0xff] %v9330_v41  ;;  %11210 = vst [vmem:[#allocation14_spill] sm:$0xff] %v9333_v51  ;;  %v9345_v23 = vrot.slane %v1567_v11, %v8443_v14  ;;  %v9348_v32 = vrot.slane %v7234_v19, %v8443_v14  ;;  %7502 = vmatpush3.bf16.xpose.msra.mxu0 %v4223_v12  ;;  %v9357_v28 = vrot.slane %v3051_v5, %v8457_v7 }
 0x303   :  { %11211 = vst [vmem:[#allocation15_spill] sm:$0xff] %v9338_v22  ;;  %11212 = vst [vmem:[#allocation20_spill] sm:$0xff] %v9341_v13  ;;  %v9360_v58 = vrot.slane %v3052_v33, %v8457_v7  ;;  %v2883_v56 = vcombine.low %v9209_v1, %v2844_v31  ;;  %v2884_v5 = vcombine.high %v9209_v1, %v2844_v31  ;;  %v4162_v55 = vsel %vm3971_vm1, %v9284_v53, 0  ;;  %v2846_v59 = vpop.permute.xlu1 %2845  ;;  %v11229_v22 = vld [vmem:[#allocation28_spill] sm:$0xff] }
 0x304   :  { %11213 = vst [vmem:[#allocation21_spill] sm:$0xff] %v9348_v32  ;;  %11214 = vst [vmem:[#allocation36_spill] sm:$0xff] %v9357_v28  ;;  %v1276_v11 = vcombine.high %v8880_v47, %v8886_v54  ;;  %v1344_v12 = vcombine.high %v8958_v4, %v8964_v2  ;;  %v1142_v1 = vcombine.high %v9120_v39, %v9123_v26  ;;  %v11216_v54 = vld [vmem:[#allocation31_spill] sm:$0xff]  ;;  %v11218_v2 = vld [vmem:[#allocation16_spill] sm:$0xff] }
 0x305   :  { %11215 = vst [vmem:[#allocation37_spill] sm:$0xff] %v9360_v58  ;;  %v2891_v33 = vrot.slane %v2883_v56, %v8443_v14  ;;  %v2898_v19 = vrot.slane %v2884_v5, %v8443_v14  ;;  %v1210_v40 = vcombine.high %v9126_v17, %v9141_v8  ;;  %v2446_v47 = vcombine.high %v9018_v25, %v9021_v16  ;;  %v11220_v17 = vld [vmem:[#allocation33_spill] sm:$0xff]  ;;  %v11221_v8 = vld [vmem:[#allocation32_spill] sm:$0xff]  ;;  %v11222_v25 = vld [vmem:[#allocation35_spill] sm:$0xff] }
 0x306   :  { %v1622_v31 = vpack.c.bf16 %v1344_v12, %v1276_v11  ;;  %v2514_v4 = vcombine.high %v11217_v52, %v11216_v54  ;;  %v2683_v11 = vcombine.low %v11221_v8, %v11220_v17  ;;  %v11223_v16 = vld [vmem:[#allocation34_spill] sm:$0xff]  ;;  %v1447_v13 = vcombine.low %v9265_v15, %v9268_v0 }
 0x307   :  { %v2899_v56 = vcombine.low %v11218_v2, %v2891_v33  ;;  %v2900_v5 = vcombine.high %v11218_v2, %v2891_v33  ;;  %v2915_v6 = vcombine.low %v11219_v46, %v2898_v19  ;;  %v2916_v53 = vcombine.high %v11219_v46, %v2898_v19 }
 0x308   :  { %7482 = vmatmul.mubr.msk.bf16.vlgmr.msra.gmra.mrb[20].mxu1 %vm3971_vm1, %v1622_v31  ;;  %v1625_v39 = vpack.c.bf16 %v1210_v40, %v1142_v1  ;;  %v2794_v26 = vpack.c.bf16 %v2514_v4, %v2446_v47  ;;  %v2699_v12 = vcombine.low %v11223_v16, %v11222_v25  ;;  %v9416_v46 = vrot.slane %v2683_v11, %v8457_v7  ;;  %v2818_v4 = vpop.permute.xlu1 %2817 }
 0x309   :  { %v9402_v52 = vrot.slane %v2899_v56, %v8457_v7  ;;  %v9405_v33 = vrot.slane %v2900_v5, %v8457_v7  ;;  %v9408_v54 = vrot.slane %v2915_v6, %v8457_v7  ;;  %v9411_v19 = vrot.slane %v2916_v53, %v8457_v7  ;;  %7494 = vmatpush3.bf16.xpose.msra.mxu1 %v4162_v55  ;;  %v11225_v55 = vld [vmem:[#allocation19_spill] sm:$0xff] }
 0x30a   :  { %7497 = vmatprep.mubr.msk.bf16.mxu1 %vm3971_vm1, %v1625_v39  ;;  %7640 = vmatprep.subr.msk.bf16.mxu1 %vm3971_vm1, %v2794_v26  ;;  %v9419_v40 = vrot.slane %v2699_v12, %v8457_v7  ;;  %v2751_v1 = vcombine.low %v9191_v49, %v9194_v24  ;;  %v4165_v6 = vsel %vm3971_vm1, %v2794_v26, 0  ;;  %v2767_v5 = vcombine.low %v9201_v63, %v9212_v50 }
 0x30b   :  { %v2548_v53 = vcombine.high %v8982_v10, %v8985_v29  ;;  %v2564_v39 = vcombine.high %v9000_v35, %v9003_v61  ;;  %v2616_v26 = vcombine.high %v9087_v62, %v9090_v44  ;;  %v2632_v11 = vcombine.high %v9106_v30, %v9109_v43 }
 0x30c   :  { %v2715_v2 = vcombine.low %v9416_v46, %v9419_v40  ;;  %v9435_v56 = vrot.slane %v2751_v1, %v8457_v7  ;;  %v2951_v12 = vcombine.low %v9354_v42, %v2846_v59  ;;  %v9449_v1 = vrot.slane %v2767_v5, %v8457_v7 }
 0x30d   :  { %v9452_v47 = vrot.slane %v2548_v53, %v8457_v7  ;;  %v2952_v10 = vcombine.high %v9354_v42, %v2846_v59  ;;  %v1379_v29 = vcombine.low %v9176_v38, %v9179_v45  ;;  %v9458_v35 = vrot.slane %v2564_v39, %v8457_v7  ;;  %v11224_v39 = vld [vmem:[#allocation18_spill] sm:$0xff] }
 0x30e   :  { %v9461_v61 = vrot.slane %v2616_v26, %v8457_v7  ;;  %v9464_v62 = vrot.slane %v2632_v11, %v8457_v7  ;;  %v2959_v44 = vrot.slane %v2951_v12, %v8443_v14  ;;  %v2783_v30 = vcombine.low %v9435_v56, %v9449_v1 }
 0x30f   :  { %v2966_v43 = vrot.slane %v2952_v10, %v8443_v14  ;;  %v9471_v42 = vrot.slane %v1379_v29, %v8457_v7  ;;  %v1395_v59 = vcombine.low %v9185_v9, %v9188_v36  ;;  %v2581_v5 = vcombine.low %v9452_v47, %v9458_v35 }
 0x310   :  { %v2649_v53 = vcombine.low %v9461_v61, %v9464_v62  ;;  %v2967_v26 = vcombine.low %v11224_v39, %v2959_v44  ;;  %v2968_v11 = vcombine.high %v11224_v39, %v2959_v44  ;;  %v2796_v12 = vpack.c.bf16 %v2783_v30, %v2715_v2  ;;  %v2850_v44 = vpop.permute.xlu1 %2849 }
 0x311   :  { %7496 = vmatpush3.bf16.xpose.msra.mxu1 %v4165_v6  ;;  %v2983_v10 = vcombine.low %v11225_v55, %v2966_v43  ;;  %v2984_v29 = vcombine.high %v11225_v55, %v2966_v43  ;;  %v1403_v31 = vrot.slane %v1395_v59, %v8457_v7  ;;  %v11228_v43 = vld [vmem:[#allocation29_spill] sm:$0xff] }
 0x312   :  { %v9484_v21 = vpack.c.bf16 %v2649_v53, %v2581_v5  ;;  %v9487_v58 = vrot.slane %v2967_v26, %v8457_v7  ;;  %v9490_v28 = vrot.slane %v2968_v11, %v8457_v7  ;;  %7642 = vmatprep.subr.msk.bf16.mxu0 %vm3971_vm1, %v2796_v12  ;;  %v4226_v6 = vsel %vm3971_vm1, %v2796_v12, 0  ;;  %v11230_v26 = vld [vmem:[#allocation12_spill] sm:$0xff] }
 0x313   :  { %v9497_v55 = vrot.slane %v2983_v10, %v8457_v7  ;;  %v9500_v2 = vrot.slane %v2984_v29, %v8457_v7  ;;  %v1411_v30 = vcombine.low %v9471_v42, %v1403_v31  ;;  %7504 = vmatpush3.bf16.xpose.msra.mxu0 %v4226_v6  ;;  %v1455_v5 = vrot.slane %v1447_v13, %v8457_v7 }
 0x314   :  { %v1463_v53 = vcombine.low %v9271_v18, %v9274_v37  ;;  %7645 = vmatprep.subr.msk.bf16.mxu0 %vm3971_vm1, %v9484_v21  ;;  %v2580_v11 = vcombine.high %v9303_v57, %v9306_v27  ;;  %v2648_v12 = vcombine.high %v9309_v3, %v9312_v60  ;;  %v3087_v10 = vcombine.low %v2818_v4, %v2850_v44  ;;  %v11232_v57 = vld [vmem:[#allocation13_spill] sm:$0xff]  ;;  %v11233_v27 = vld [vmem:[#allocation10_spill] sm:$0xff] }
 0x315   :  { %11226 = vst [vmem:[#allocation31_spill] sm:$0xff] %v9497_v55  ;;  %11227 = vst [vmem:[#allocation30_spill] sm:$0xff] %v9500_v2  ;;  %v3088_v29 = vcombine.high %v2818_v4, %v2850_v44  ;;  %v1278_v6 = vcombine.high %v8883_v34, %v8889_v48  ;;  %v1346_v39 = vcombine.high %v11228_v43, %v8967_v20  ;;  %v9545_v43 = vpop.permute.xlu1 %2851 }
 0x316   :  { %v1471_v13 = vrot.slane %v1463_v53, %v8457_v7  ;;  %v2797_v59 = vpack.c.bf16 %v2648_v12, %v2580_v11  ;;  %v11231_v2 = vcombine.low %v11229_v22, %v11230_v26  ;;  %v11234_v3 = vcombine.low %v11232_v57, %v11233_v27 }
 0x317   :  { %v3095_v44 = vrot.slane %v3087_v10, %v8443_v14  ;;  %v3102_v34 = vrot.slane %v3088_v29, %v8443_v14  ;;  %v11235_v48 = vcombine.low %v9330_v41, %v9333_v51  ;;  %v11236_v11 = vcombine.low %v9345_v23, %v9348_v32  ;;  %v11238_v41 = vld [vmem:[#allocation23_spill] sm:$0xff] }
 0x318   :  { %v9529_v55 = vrot.slane %v11231_v2, %v8457_v7  ;;  %v9535_v60 = vrot.slane %v11234_v3, %v8457_v7  ;;  %v1479_v4 = vcombine.low %v1455_v5, %v1471_v13  ;;  %7643 = vmatprep.subr.msk.bf16.mxu1 %vm3971_vm1, %v2797_v59  ;;  %v1626_v2 = vpack.c.bf16 %v1346_v39, %v1278_v6  ;;  %v11237_v3 = vld [vmem:[#allocation22_spill] sm:$0xff] }
 0x319   :  { %v9543_v20 = vrot.slane %v11235_v48, %v8457_v7  ;;  %v9554_v12 = vrot.slane %v11236_v11, %v8457_v7  ;;  %v4284_v10 = vsel %vm3971_vm1, %v2797_v59, 0  ;;  %v3103_v48 = vcombine.low %v11237_v3, %v3095_v44 }
 0x31a   :  { %v1547_v53 = vcombine.low %v9529_v55, %v9535_v60  ;;  %v1627_v29 = vpack.c.bf16 %v1479_v4, %v1411_v30  ;;  %v3104_v51 = vcombine.high %v11237_v3, %v3095_v44  ;;  %v3119_v27 = vcombine.low %v11238_v41, %v3102_v34  ;;  %7498 = vmatmul.mubr.msk.bf16.vlgmr.msra.gmra.mrb[24].mxu1 %vm3971_vm1, %v1626_v2 }
 0x31b   :  { %v3120_v39 = vcombine.high %v11238_v41, %v3102_v34  ;;  %v1615_v6 = vcombine.low %v9543_v20, %v9554_v12  ;;  %v1412_v32 = vcombine.high %v9471_v42, %v1403_v31  ;;  %v1480_v11 = vcombine.high %v1455_v5, %v1471_v13  ;;  %7510 = vmatpush3.bf16.xpose.msra.mxu1 %v4284_v10 }
 0x31c   :  { %7505 = vmatprep.mubr.msk.bf16.mxu0 %vm3971_vm1, %v1627_v29  ;;  %v9567_v30 = vrot.slane %v3103_v48, %v8457_v7  ;;  %v9570_v59 = vrot.slane %v3104_v51, %v8457_v7  ;;  %v9573_v4 = vrot.slane %v3119_v27, %v8457_v7  ;;  %v2716_v31 = vcombine.high %v9416_v46, %v9419_v40  ;;  %v2822_v27 = vpop.permute.xlu1 %2821 }
 0x31d   :  { %v9576_v41 = vrot.slane %v3120_v39, %v8457_v7  ;;  %v1628_v44 = vpack.c.bf16 %v1615_v6, %v1547_v53  ;;  %v1629_v34 = vpack.c.bf16 %v1480_v11, %v1412_v32  ;;  %v2784_v51 = vcombine.high %v9435_v56, %v9449_v1  ;;  %v2820_v53 = vpop.permute.xlu0 %2819 }
 0x31e   :  { %v3615_v42 = vcombine.low %v9567_v30, %v9570_v59  ;;  %v7257_v5 = vcombine.high %v9567_v30, %v9570_v59  ;;  %v2684_v13 = vcombine.high %v11221_v8, %v11220_v17  ;;  %v4345_v46 = vsel %vm3971_vm1, %v9484_v21, 0 }
 0x31f   :  { %v3631_v2 = vcombine.low %v9573_v4, %v9576_v41  ;;  %v7258_v32 = vcombine.high %v9573_v4, %v9576_v41  ;;  %7506 = vmatmul.mubr.msk.bf16.vlgmr.msra.gmra.mrb[36].mxu0 %vm3971_vm1, %v1628_v44  ;;  %7513 = vmatprep.mubr.msk.bf16.mxu1 %vm3971_vm1, %v1629_v34  ;;  %v2700_v40 = vcombine.high %v11223_v16, %v11222_v25  ;;  %v11239_v34 = vld [vmem:[#allocation24_spill] sm:$0xff] }
 0x320   :  { %7518 = vmatpush3.bf16.xpose.msra.mxu0 %v4345_v46  ;;  %v2798_v56 = vpack.c.bf16 %v2784_v51, %v2716_v31  ;;  %v9599_v17 = vrot.slane %v2684_v13, %v8457_v7  ;;  %v2752_v8 = vcombine.high %v9191_v49, %v9194_v24  ;;  %v2768_v1 = vcombine.high %v9201_v63, %v9212_v50  ;;  %v2854_v29 = vpop.permute.xlu1 %2853 }
 0x321   :  { %v9606_v10 = vrot.slane %v2700_v40, %v8457_v7  ;;  %v1380_v21 = vcombine.high %v9176_v38, %v9179_v45  ;;  %v1396_v25 = vcombine.high %v9185_v9, %v9188_v36  ;;  %v1448_v16 = vcombine.high %v9265_v15, %v9268_v0 }
 0x322   :  { %7644 = vmatprep.subr.msk.bf16.mxu1 %vm3971_vm1, %v2798_v56  ;;  %v9616_v49 = vrot.slane %v2752_v8, %v8457_v7  ;;  %v9619_v24 = vrot.slane %v2768_v1, %v8457_v7  ;;  %v1464_v63 = vcombine.high %v9271_v18, %v9274_v37  ;;  %v3155_v50 = vcombine.low %v2820_v53, %v9545_v43 }
 0x323   :  { %v2717_v38 = vcombine.low %v9599_v17, %v9606_v10  ;;  %v9627_v45 = vrot.slane %v1380_v21, %v8457_v7  ;;  %v9630_v9 = vrot.slane %v1396_v25, %v8457_v7  ;;  %v9633_v36 = vrot.slane %v1448_v16, %v8457_v7 }
 0x324   :  { %v2785_v15 = vcombine.low %v9616_v49, %v9619_v24  ;;  %v9638_v0 = vrot.slane %v1464_v63, %v8457_v7  ;;  %v3156_v18 = vcombine.high %v2820_v53, %v9545_v43  ;;  %v3163_v37 = vrot.slane %v3155_v50, %v8443_v14 }
 0x325   :  { %v1413_v3 = vcombine.low %v9627_v45, %v9630_v9  ;;  %v4287_v48 = vsel %vm3971_vm1, %v2798_v56, 0  ;;  %v2582_v39 = vcombine.high %v9452_v47, %v9458_v35  ;;  %v2650_v6 = vcombine.high %v9461_v61, %v9464_v62  ;;  %v11240_v61 = vld [vmem:[#allocation25_spill] sm:$0xff] }
 0x326   :  { %v2800_v11 = vpack.c.bf16 %v2785_v15, %v2717_v38  ;;  %v1481_v44 = vcombine.low %v9633_v36, %v9638_v0  ;;  %v3170_v43 = vrot.slane %v3156_v18, %v8443_v14  ;;  %v3171_v31 = vcombine.low %v11239_v34, %v3163_v37  ;;  %7512 = vmatpush3.bf16.xpose.msra.mxu1 %v4287_v48  ;;  %v11242_v18 = vld [vmem:[#allocation26_spill] sm:$0xff] }
 0x327   :  { %v3172_v51 = vcombine.high %v11239_v34, %v3163_v37  ;;  %v2801_v13 = vpack.c.bf16 %v2650_v6, %v2582_v39  ;;  %v3223_v46 = vcombine.low %v2822_v27, %v2854_v29  ;;  %v3224_v40 = vcombine.high %v2822_v27, %v2854_v29  ;;  %v11243_v39 = vld [vmem:[#allocation27_spill] sm:$0xff] }
 0x328   :  { %7646 = vmatprep.subr.msk.bf16.mxu0 %vm3971_vm1, %v2800_v11  ;;  %v1631_v47 = vpack.c.bf16 %v1481_v44, %v1413_v3  ;;  %v9656_v35 = vrot.slane %v3171_v31, %v8457_v7  ;;  %v3187_v62 = vcombine.low %v11240_v61, %v3170_v43  ;;  %v3188_v56 = vcombine.high %v11240_v61, %v3170_v43 }
 0x329   :  { %v9661_v8 = vrot.slane %v3172_v51, %v8457_v7  ;;  %v4348_v1 = vsel %vm3971_vm1, %v2800_v11, 0  ;;  %7647 = vmatprep.subr.msk.bf16.mxu1 %vm3971_vm1, %v2801_v13  ;;  %v3231_v53 = vrot.slane %v3223_v46, %v8443_v14  ;;  %v3238_v27 = vrot.slane %v3224_v40, %v8443_v14 }
 0x32a   :  { %7521 = vmatprep.mubr.msk.bf16.mxu0 %vm3971_vm1, %v1631_v47  ;;  %v9669_v21 = vrot.slane %v3187_v62, %v8457_v7  ;;  %v9672_v25 = vrot.slane %v3188_v56, %v8457_v7  ;;  %7520 = vmatpush3.bf16.xpose.msra.mxu0 %v4348_v1  ;;  %v11241_v16 = vcombine.low %v9402_v52, %v9405_v33  ;;  %v4406_v50 = vsel %vm3971_vm1, %v2801_v13, 0 }
 0x32b   :  { %v3683_v38 = vcombine.low %v9656_v35, %v9661_v8  ;;  %v7259_v15 = vcombine.high %v9656_v35, %v9661_v8  ;;  %v3239_v37 = vcombine.low %v11242_v18, %v3231_v53  ;;  %v3240_v29 = vcombine.high %v11242_v18, %v3231_v53  ;;  %v11249_v18 = vld [vmem:[#allocation31_spill] sm:$0xff] }
 0x32c   :  { %v9678_v63 = vrot.slane %v11241_v16, %v8443_v14  ;;  %v3699_v3 = vcombine.low %v9669_v21, %v9672_v25  ;;  %v7260_v48 = vcombine.high %v9669_v21, %v9672_v25  ;;  %v3255_v6 = vcombine.low %v11243_v39, %v3238_v27 }
 0x32d   :  { %v3256_v11 = vcombine.high %v11243_v39, %v3238_v27  ;;  %v9694_v44 = vrot.slane %v3239_v37, %v8457_v7  ;;  %v9697_v43 = vrot.slane %v3240_v29, %v8457_v7  ;;  %v11244_v34 = vcombine.high %v9402_v52, %v9405_v33  ;;  %v11250_v37 = vld [vmem:[#allocation30_spill] sm:$0xff] }
 0x32e   :  { %v11245_v51 = vcombine.low %v9408_v54, %v9411_v19  ;;  %v9712_v46 = vrot.slane %v3255_v6, %v8457_v7  ;;  %v11246_v47 = vcombine.high %v9408_v54, %v9411_v19  ;;  %v11247_v52 = vcombine.low %v9487_v58, %v9490_v28 }
 0x32f   :  { %v9703_v31 = vrot.slane %v11244_v34, %v8443_v14  ;;  %v9715_v40 = vrot.slane %v3256_v11, %v8457_v7  ;;  %v3751_v62 = vcombine.low %v9694_v44, %v9697_v43  ;;  %v7261_v56 = vcombine.high %v9694_v44, %v9697_v43 }
 0x330   :  { %v9709_v13 = vrot.slane %v11245_v51, %v8443_v14  ;;  %v9721_v61 = vrot.slane %v11246_v47, %v8443_v14  ;;  %v9727_v33 = vrot.slane %v11247_v52, %v8443_v14  ;;  %v11248_v54 = vcombine.high %v9487_v58, %v9490_v28 }
 0x331   :  { %v3443_v1 = vcombine.low %v9678_v63, %v9703_v31  ;;  %v11251_v29 = vcombine.low %v11249_v18, %v11250_v37  ;;  %v11252_v28 = vcombine.high %v11249_v18, %v11250_v37  ;;  %v1548_v34 = vcombine.high %v9529_v55, %v9535_v60 }
 0x332   :  { %v3494_v19 = vrot.slane %v11248_v54, %v8443_v14  ;;  %v3459_v16 = vcombine.low %v9709_v13, %v9721_v61  ;;  %v1616_v47 = vcombine.high %v9543_v20, %v9554_v12  ;;  %v11253_v52 = vcombine.high %v11229_v22, %v11230_v26  ;;  %v11254_v54 = vld [vmem:[#allocation10_spill] sm:$0xff]  ;;  %v11259_v22 = vld [vmem:[#allocation21_spill] sm:$0xff] }
 0x333   :  { %v3502_v39 = vrot.slane %v11251_v29, %v8443_v14  ;;  %v9750_v6 = vrot.slane %v3443_v1, %v8457_v7  ;;  %v3510_v58 = vrot.slane %v11252_v28, %v8443_v14  ;;  %v11255_v18 = vcombine.high %v11232_v57, %v11254_v54  ;;  %v11257_v29 = vld [vmem:[#allocation14_spill] sm:$0xff] }
 0x334   :  { %v3511_v11 = vcombine.low %v9727_v33, %v3494_v19  ;;  %v9760_v51 = vrot.slane %v3459_v16, %v8457_v7  ;;  %v9768_v1 = vrot.slane %v11253_v52, %v8457_v7  ;;  %v11256_v16 = vld [vmem:[#allocation11_spill] sm:$0xff]  ;;  %v11260_v26 = vcombine.high %v9345_v23, %v11259_v22 }
 0x335   :  { %v9774_v37 = vrot.slane %v11255_v18, %v8457_v7  ;;  %v3527_v60 = vcombine.low %v3502_v39, %v3510_v58  ;;  %v11258_v28 = vcombine.high %v11256_v16, %v11257_v29  ;;  %v1630_v57 = vpack.c.bf16 %v1616_v47, %v1548_v34  ;;  %v11261_v47 = vld [vmem:[#allocation15_spill] sm:$0xff] }
 0x336   :  { %v3519_v55 = vrot.slane %v3511_v11, %v8457_v7  ;;  %v1614_v12 = vrot.slane %v11260_v26, %v8457_v7  ;;  %v3475_v52 = vcombine.low %v9750_v6, %v9760_v51  ;;  %v1414_v11 = vcombine.high %v9627_v45, %v9630_v9 }
 0x337   :  { %v9781_v20 = vrot.slane %v11258_v28, %v8457_v7  ;;  %v1549_v54 = vcombine.low %v9768_v1, %v9774_v37  ;;  %v3535_v18 = vrot.slane %v3527_v60, %v8457_v7  ;;  %v1482_v29 = vcombine.high %v9633_v36, %v9638_v0  ;;  %7514 = vmatmul.mubr.msk.bf16.vlgmr.msra.gmra.mrb[28].mxu1 %vm3971_vm1, %v1630_v57  ;;  %v11262_v28 = vld [vmem:[#allocation20_spill] sm:$0xff]  ;;  %v11266_v0 = vld [vmem:[#allocation37_spill] sm:$0xff] }
 0x338   :  { %v2718_v23 = vcombine.high %v9599_v17, %v9606_v10  ;;  %v2786_v34 = vcombine.high %v9616_v49, %v9619_v24  ;;  %v11263_v22 = vcombine.low %v11261_v47, %v11262_v28  ;;  %v11264_v9 = vcombine.high %v11261_v47, %v11262_v28  ;;  %v11265_v36 = vld [vmem:[#allocation36_spill] sm:$0xff]  ;;  %7526 = vmatpush3.bf16.xpose.msra.mxu1 %v4406_v50 }
 0x339   :  { %v1617_v16 = vcombine.low %v9781_v20, %v1614_v12  ;;  %v11267_v26 = vcombine.low %v11265_v36, %v11266_v0  ;;  %v3543_v10 = vcombine.low %v3519_v55, %v3535_v18  ;;  %v1633_v27 = vpack.c.bf16 %v1482_v29, %v1414_v11 }
 0x33a   :  { %v3554_v45 = vrot.slane %v11263_v22, %v8443_v14  ;;  %v3562_v60 = vrot.slane %v11264_v9, %v8443_v14  ;;  %v11268_v49 = vcombine.high %v11265_v36, %v11266_v0  ;;  %v2802_v22 = vpack.c.bf16 %v2786_v34, %v2718_v23 }
 0x33b   :  { %v3570_v17 = vrot.slane %v11267_v26, %v8443_v14  ;;  %v1632_v57 = vpack.c.bf16 %v1617_v16, %v1549_v54  ;;  %v3622_v47 = vrot.slane %v3615_v42, %v8443_v14  ;;  %v3630_v28 = vrot.slane %v7257_v5, %v8443_v14  ;;  %7529 = vmatprep.mubr.msk.bf16.mxu1 %vm3971_vm1, %v1633_v27 }
 0x33c   :  { %v3578_v24 = vrot.slane %v11268_v49, %v8443_v14  ;;  %v3579_v53 = vcombine.low %v3554_v45, %v3562_v60  ;;  %v3955_v54 = vpack.c.bf16 %v3543_v10, %v3475_v52  ;;  %v3638_v11 = vrot.slane %v3631_v2, %v8443_v14  ;;  %7648 = vmatprep.subr.msk.bf16.mxu1 %vm3971_vm1, %v2802_v22 }
 0x33d   :  { %7522 = vmatmul.mubr.msk.bf16.vlgmr.msra.gmra.mrb[40].mxu0 %vm3971_vm1, %v1632_v57  ;;  %v3646_v30 = vrot.slane %v7258_v32, %v8443_v14  ;;  %v3647_v59 = vcombine.low %v3622_v47, %v3630_v28  ;;  %v3444_v5 = vcombine.high %v9678_v63, %v9703_v31  ;;  %v3460_v52 = vcombine.high %v9709_v13, %v9721_v61 }
 0x33e   :  { %v3595_v50 = vcombine.low %v3570_v17, %v3578_v24  ;;  %v3587_v42 = vrot.slane %v3579_v53, %v8457_v7  ;;  %7533 = vmatprep.subr.bf16.mxu0 %v3955_v54  ;;  %v3512_v2 = vcombine.high %v9727_v33, %v3494_v19  ;;  %v3528_v16 = vcombine.high %v3502_v39, %v3510_v58 }
 0x33f   :  { %7534 = vmatpush3.bf16.msra.mxu0 %v3955_v54  ;;  %v3655_v53 = vrot.slane %v3647_v59, %v8457_v7  ;;  %v3663_v29 = vcombine.low %v3638_v11, %v3646_v30  ;;  %v3458_v4 = vrot.slane %v3444_v5, %v8457_v7  ;;  %v4409_v41 = vsel %vm3971_vm1, %v2802_v22, 0 }
 0x340   :  { %v3603_v27 = vrot.slane %v3595_v50, %v8457_v7  ;;  %v3474_v63 = vrot.slane %v3460_v52, %v8457_v7  ;;  %v3526_v31 = vrot.slane %v3512_v2, %v8457_v7  ;;  %v3542_v23 = vrot.slane %v3528_v16, %v8457_v7  ;;  %7528 = vmatpush3.bf16.xpose.msra.mxu1 %v4409_v41 }
 0x341   :  { %v3671_v13 = vrot.slane %v3663_v29, %v8457_v7  ;;  %v3476_v61 = vcombine.high %v9750_v6, %v9760_v51  ;;  %v3544_v33 = vcombine.high %v3519_v55, %v3535_v18  ;;  %v1550_v19 = vcombine.high %v9768_v1, %v9774_v37 }
 0x342   :  { %v3611_v32 = vcombine.low %v3587_v42, %v3603_v27  ;;  %v3477_v39 = vcombine.low %v3458_v4, %v3474_v63  ;;  %v3545_v58 = vcombine.low %v3526_v31, %v3542_v23  ;;  %v1618_v34 = vcombine.high %v9781_v20, %v1614_v12 }
 0x343   :  { %v3612_v9 = vcombine.high %v3587_v42, %v3603_v27  ;;  %v3679_v36 = vcombine.low %v3655_v53, %v3671_v13  ;;  %v3957_v0 = vpack.c.bf16 %v3544_v33, %v3476_v61  ;;  %v3680_v26 = vcombine.high %v3655_v53, %v3671_v13 }
 0x344   :  { %v3478_v10 = vcombine.high %v3458_v4, %v3474_v63  ;;  %v9856_v57 = vpack.c.bf16 %v3545_v58, %v3477_v39  ;;  %v1634_v49 = vpack.c.bf16 %v1618_v34, %v1550_v19  ;;  %v3546_v22 = vcombine.high %v3526_v31, %v3542_v23 }
 0x345   :  { %v3580_v54 = vcombine.high %v3554_v45, %v3562_v60  ;;  %v3956_v6 = vpack.c.bf16 %v3679_v36, %v3611_v32  ;;  %7541 = vmatprep.subr.bf16.mxu1 %v3957_v0  ;;  %v3958_v51 = vpack.c.bf16 %v3680_v26, %v3612_v9  ;;  %v3596_v55 = vcombine.high %v3570_v17, %v3578_v24 }
 0x346   :  { %v3648_v1 = vcombine.high %v3622_v47, %v3630_v28  ;;  %v9858_v37 = vpack.c.bf16 %v3546_v22, %v3478_v10  ;;  %v3664_v20 = vcombine.high %v3638_v11, %v3646_v30  ;;  %v3690_v12 = vrot.slane %v3683_v38, %v8443_v14 }
 0x347   :  { %v3594_v18 = vrot.slane %v3580_v54, %v8457_v7  ;;  %7535 = vmatprep.subr.bf16.mxu0 %v3956_v6  ;;  %v3610_v50 = vrot.slane %v3596_v55, %v8457_v7  ;;  %v3698_v60 = vrot.slane %v7259_v15, %v8443_v14  ;;  %v3706_v17 = vrot.slane %v3699_v3, %v8443_v14 }
 0x348   :  { %v3662_v45 = vrot.slane %v3648_v1, %v8457_v7  ;;  %7536 = vmatpush3.bf16.msra.mxu0 %v3956_v6  ;;  %v3678_v24 = vrot.slane %v3664_v20, %v8457_v7  ;;  %v3714_v38 = vrot.slane %v7260_v48, %v8443_v14  ;;  %v3758_v47 = vrot.slane %v3751_v62, %v8443_v14 }
 0x349   :  { %v3766_v35 = vrot.slane %v7261_v56, %v8443_v14  ;;  %7549 = vmatprep.subr.bf16.mxu0 %v9856_v57  ;;  %7530 = vmatmul.mubr.msk.bf16.vlgmr.msra.gmra.mrb[32].mxu1 %vm3971_vm1, %v1634_v49  ;;  %v3613_v8 = vcombine.low %v3594_v18, %v3610_v50  ;;  %v3715_v15 = vcombine.low %v3690_v12, %v3698_v60 }
 0x34a   :  { %v11269_v21 = vcombine.low %v9712_v46, %v9715_v40  ;;  %7542 = vmatpush3.bf16.msra.mxu1 %v3957_v0  ;;  %v3681_v3 = vcombine.low %v3662_v45, %v3678_v24  ;;  %v3731_v48 = vcombine.low %v3706_v17, %v3714_v38  ;;  %v11270_v62 = vcombine.high %v9712_v46, %v9715_v40 }
 0x34b   :  { %v3783_v43 = vcombine.low %v3758_v47, %v3766_v35  ;;  %7543 = vmatprep.subr.bf16.mxu1 %v3958_v51  ;;  %v3723_v56 = vrot.slane %v3715_v15, %v8457_v7  ;;  %v3716_v28 = vcombine.high %v3690_v12, %v3698_v60  ;;  %v3732_v11 = vcombine.high %v3706_v17, %v3714_v38 }
 0x34c   :  { %v3774_v25 = vrot.slane %v11269_v21, %v8443_v14  ;;  %v3782_v44 = vrot.slane %v11270_v62, %v8443_v14  ;;  %v3784_v42 = vcombine.high %v3758_v47, %v3766_v35  ;;  %v9899_v30 = vpack.c.bf16 %v3681_v3, %v3613_v8 }
 0x34d   :  { %v3739_v59 = vrot.slane %v3731_v48, %v8457_v7  ;;  %v3791_v5 = vrot.slane %v3783_v43, %v8457_v7  ;;  %v3730_v52 = vrot.slane %v3716_v28, %v8457_v7  ;;  %v3746_v2 = vrot.slane %v3732_v11, %v8457_v7 }
 0x34e   :  { %v3799_v27 = vcombine.low %v3774_v25, %v3782_v44  ;;  %v3798_v46 = vrot.slane %v3784_v42, %v8457_v7  ;;  %v3800_v40 = vcombine.high %v3774_v25, %v3782_v44  ;;  %7544 = vmatpush3.bf16.msra.mxu1 %v3958_v51  ;;  %v3614_v29 = vcombine.high %v3594_v18, %v3610_v50 }
 0x34f   :  { %v3747_v16 = vcombine.low %v3723_v56, %v3739_v59  ;;  %v3682_v4 = vcombine.high %v3662_v45, %v3678_v24  ;;  %7557 = vmatprep.subr.bf16.mxu1 %v9858_v37  ;;  %v3749_v41 = vcombine.low %v3730_v52, %v3746_v2  ;;  %v3748_v63 = vcombine.high %v3723_v56, %v3739_v59 }
 0x350   :  { %v3807_v53 = vrot.slane %v3799_v27, %v8457_v7  ;;  %v3814_v32 = vrot.slane %v3800_v40, %v8457_v7  ;;  %v3750_v31 = vcombine.high %v3730_v52, %v3746_v2 }
 0x351   :  { %v9909_v13 = vpack.c.bf16 %v3682_v4, %v3614_v29 }
 0x352   :  { %v3815_v23 = vcombine.low %v3791_v5, %v3807_v53  ;;  %v3816_v61 = vcombine.high %v3791_v5, %v3807_v53  ;;  %v3817_v33 = vcombine.low %v3798_v46, %v3814_v32  ;;  %v3818_v19 = vcombine.high %v3798_v46, %v3814_v32 }
 0x354   :  { %v9911_v39 = vpack.c.bf16 %v3815_v23, %v3747_v16  ;;  %v9913_v58 = vpack.c.bf16 %v3816_v61, %v3748_v63  ;;  %v9915_v34 = vpack.c.bf16 %v3817_v33, %v3749_v41  ;;  %v9917_v9 = vpack.c.bf16 %v3818_v19, %v3750_v31 }
 0x3bb   :  { %v9919_v36 = vpop.f32.mrb[16].mxu1 }
 0x3bc   :  { %v9921_v0 = vpop.f32.mrb[17].mxu1  ;;  %v4466_v26 = vsel %vm40_vm0, %v9919_v36, -inf }
 0x3bd   :  { %4467 = vmax.xlane.f32.xlu0 %v4466_v26  ;;  %v9925_v10 = vpop.f32.mrb[18].mxu1  ;;  %v4460_v20 = vsel %vm40_vm0, %v9921_v0, -inf }
 0x3be   :  { %v9927_v49 = vpop.f32.mrb[19].mxu1  ;;  %v4469_v22 = vsel %vm40_vm0, %v9925_v10, -inf }
 0x3bf   :  { %4470 = vmax.xlane.f32.xlu1 %v4469_v22  ;;  %v4463_v12 = vsel %vm40_vm0, %v9927_v49, -inf }
 0x3c0   :  { %v9931_v54 = vpop.f32.mrb[32].mxu0 }
 0x3c1   :  { %v9933_v6 = vpop.f32.mrb[33].mxu0  ;;  %v4490_v51 = vsel %vm40_vm0, %v9931_v54, -inf }
 0x3c2   :  { %v9937_v55 = vpop.f32.mrb[34].mxu0  ;;  %4491 = vmax.xlane.f32.xlu0 %v4490_v51  ;;  %v4484_v50 = vsel %vm40_vm0, %v9933_v6, -inf }
 0x3c3   :  { %v9939_v1 = vpop.f32.mrb[35].mxu0  ;;  %v4493_v18 = vsel %vm40_vm0, %v9937_v55, -inf }
 0x3c4   :  { %4494 = vmax.xlane.f32.xlu1 %v4493_v18  ;;  %v4487_v45 = vsel %vm40_vm0, %v9939_v1, -inf }
 0x3c6   :  { %4461 = vmax.xlane.f32.xlu0 %v4460_v20 }
 0x3c8   :  { %4464 = vmax.xlane.f32.xlu1 %v4463_v12 }
 0x3ca   :  { %4485 = vmax.xlane.f32.xlu0 %v4484_v50 }
 0x3cc   :  { %4488 = vmax.xlane.f32.xlu1 %v4487_v45 }
 0x3db   :  { %v9951_v60 = vpop.f32.mrb[20].mxu1 }
 0x3dc   :  { %v9953_v17 = vpop.f32.mrb[21].mxu1  ;;  %v4478_v24 = vsel %vm40_vm0, %v9951_v60, -inf }
 0x3dd   :  { %v9957_v38 = vpop.f32.mrb[22].mxu1  ;;  %4479 = vmax.xlane.f32.xlu0 %v4478_v24  ;;  %v4472_v28 = vsel %vm40_vm0, %v9953_v17, -inf }
 0x3de   :  { %v9959_v47 = vpop.f32.mrb[23].mxu1  ;;  %v4481_v35 = vsel %vm40_vm0, %v9957_v38, -inf }
 0x3df   :  { %4482 = vmax.xlane.f32.xlu1 %v4481_v35  ;;  %v4475_v5 = vsel %vm40_vm0, %v9959_v47, -inf }
 0x3ed   :  { %v9963_v8 = vpop.f32.mrb[24].mxu1 }
 0x3ee   :  { %v9965_v15 = vpop.f32.mrb[25].mxu1  ;;  %v4502_v27 = vsel %vm40_vm0, %v9963_v8, -inf }
 0x3ef   :  { %v9967_v21 = vpop.f32.mrb[26].mxu1  ;;  %v4496_v63 = vsel %vm40_vm0, %v9965_v15, -inf }
 0x3f0   :  { %v9969_v25 = vpop.f32.mrb[27].mxu1  ;;  %v4505_v59 = vsel %vm40_vm0, %v9967_v21, -inf }
 0x3f1   :  { %v4499_v31 = vsel %vm40_vm0, %v9969_v25, -inf }
 0x3f2   :  { %v9971_v3 = vpop.f32.mrb[36].mxu0 }
 0x3f3   :  { %v9973_v48 = vpop.f32.mrb[37].mxu0  ;;  %v4514_v62 = vsel %vm40_vm0, %v9971_v3, -inf }
 0x3f4   :  { %4515 = vmax.xlane.f32.xlu0 %v4514_v62  ;;  %v9977_v44 = vpop.f32.mrb[38].mxu0  ;;  %v4508_v42 = vsel %vm40_vm0, %v9973_v48, -inf  ;;  %v11271_v62 = vld [vmem:[#allocation8_spill] sm:$0xff] }
 0x3f5   :  { %v9979_v43 = vpop.f32.mrb[39].mxu0  ;;  %v4517_v56 = vsel %vm40_vm0, %v9977_v44, -inf }
 0x3f6   :  { %4518 = vmax.xlane.f32.xlu1 %v4517_v56  ;;  %v4511_v11 = vsel %vm40_vm0, %v9979_v43, -inf  ;;  %v11272_v56 = vld [vmem:[#allocation6_spill] sm:$0xff] }
 0x3f8   :  { %4473 = vmax.xlane.f32.xlu0 %v4472_v28  ;;  %v10051_v28 = vpop.permute.xlu0 %2823 }
 0x3fa   :  { %4512 = vmax.xlane.f32.xlu1 %v4511_v11  ;;  %v10053_v11 = vpop.permute.xlu1 %2825 }
 0x3fc   :  { %4509 = vmax.xlane.f32.xlu0 %v4508_v42 }
 0x3fe   :  { %4506 = vmax.xlane.f32.xlu1 %v4505_v59 }
 0x400   :  { %4476 = vmax.xlane.f32.xlu0 %v4475_v5 }
 0x404   :  { %4503 = vmax.xlane.f32.xlu0 %v4502_v27 }
 0x40a   :  { %v9995_v52 = vpop.f32.mrb[28].mxu1 }
 0x40b   :  { %v9997_v2 = vpop.f32.mrb[29].mxu1  ;;  %v4526_v19 = vsel %vm40_vm0, %v9995_v52, -inf }
 0x40c   :  { %v9999_v46 = vpop.f32.mrb[30].mxu1  ;;  %v4520_v20 = vsel %vm40_vm0, %v9997_v2, -inf }
 0x40d   :  { %v10003_v16 = vpop.f32.mrb[31].mxu1  ;;  %v4529_v22 = vsel %vm40_vm0, %v9999_v46, -inf }
 0x40e   :  { %v4523_v12 = vsel %vm40_vm0, %v10003_v16, -inf }
 0x410   :  { %v10001_v40 = vpop.f32.mrb[40].mxu0 }
 0x411   :  { %v10005_v53 = vpop.f32.mrb[41].mxu0  ;;  %v4538_v29 = vsel %vm40_vm0, %v10001_v40, -inf }
 0x412   :  { %v10009_v4 = vpop.f32.mrb[42].mxu0  ;;  %4539 = vmax.xlane.f32.xlu0 %v4538_v29  ;;  %v4532_v23 = vsel %vm40_vm0, %v10005_v53, -inf }
 0x413   :  { %v10011_v41 = vpop.f32.mrb[43].mxu0  ;;  %v4541_v32 = vsel %vm40_vm0, %v10009_v4, -inf }
 0x414   :  { %4542 = vmax.xlane.f32.xlu1 %v4541_v32  ;;  %v4535_v61 = vsel %vm40_vm0, %v10011_v41, -inf }
 0x416   :  { %4497 = vmax.xlane.f32.xlu0 %v4496_v63 }
 0x418   :  { %4500 = vmax.xlane.f32.xlu1 %v4499_v31 }
 0x41a   :  { %4533 = vmax.xlane.f32.xlu0 %v4532_v23 }
 0x41c   :  { %4536 = vmax.xlane.f32.xlu1 %v4535_v61  ;;  %v10023_v33 = vpop.f32.mrb[32].mxu1 }
 0x41d   :  { %v10027_v26 = vpop.f32.mrb[33].mxu1  ;;  %v4550_v50 = vsel %vm40_vm0, %v10023_v33, -inf }
 0x41e   :  { %4527 = vmax.xlane.f32.xlu0 %v4526_v19  ;;  %v10031_v51 = vpop.f32.mrb[34].mxu1  ;;  %v4544_v24 = vsel %vm40_vm0, %v10027_v26, -inf }
 0x41f   :  { %v10033_v18 = vpop.f32.mrb[35].mxu1  ;;  %v4553_v45 = vsel %vm40_vm0, %v10031_v51, -inf }
 0x420   :  { %4530 = vmax.xlane.f32.xlu1 %v4529_v22  ;;  %v4547_v35 = vsel %vm40_vm0, %v10033_v18, -inf }
 0x422   :  { %4521 = vmax.xlane.f32.xlu0 %v4520_v20 }
 0x424   :  { %4524 = vmax.xlane.f32.xlu1 %v4523_v12 }
 0x426   :  { %4551 = vmax.xlane.f32.xlu0 %v4550_v50 }
 0x428   :  { %4554 = vmax.xlane.f32.xlu1 %v4553_v45 }
 0x42a   :  { %4545 = vmax.xlane.f32.xlu0 %v4544_v24 }
 0x42c   :  { %4548 = vmax.xlane.f32.xlu1 %v4547_v35 }
 0x43d   :  { %2857 = vrot.lane.b32.xlu1 %v11271_v62, %s7965_s2 }
 0x440   :  { %2855 = vrot.lane.b32.xlu0 %v11272_v56, %s7965_s2 }
 0x44a   :  { %v4468_v42 = vpop.xlane.xlu0 %4467 }
 0x44b   :  { %v4558_v59 = vsub.f32 %v9919_v36, %v4468_v42 }
 0x44c   :  { %v4471_v5 = vpop.xlane.xlu1 %4470 }
 0x44d   :  { %v4592_v27 = vmul.f32 1.442695, %v4558_v59  ;;  %v4559_v29 = vsub.f32 %v9925_v10, %v4471_v5 }
 0x44f   :  { %7756 = vpow2.f32 %v4592_v27  ;;  %v4594_v32 = vmul.f32 1.442695, %v4559_v29  ;;  %v4492_v63 = vpop.xlane.xlu0 %4491 }
 0x450   :  { %v4566_v31 = vsub.f32 %v9931_v54, %v4492_v63 }
 0x451   :  { %7758 = vpow2.f32 %v4594_v32  ;;  %v4495_v23 = vpop.xlane.xlu1 %4494 }
 0x452   :  { %v4608_v61 = vmul.f32 1.442695, %v4566_v31  ;;  %v4567_v19 = vsub.f32 %v9937_v55, %v4495_v23 }
 0x453   :  { %v4462_v22 = vpop.xlane.xlu0 %4461 }
 0x454   :  { %7760 = vpow2.f32 %v4608_v61  ;;  %v4610_v20 = vmul.f32 1.442695, %v4567_v19  ;;  %v4556_v12 = vsub.f32 %v9921_v0, %v4462_v22 }
 0x455   :  { %v4465_v36 = vpop.xlane.xlu1 %4464 }
 0x456   :  { %7762 = vpow2.f32 %v4610_v20  ;;  %v4588_v50 = vmul.f32 1.442695, %v4556_v12  ;;  %v4557_v10 = vsub.f32 %v9927_v49, %v4465_v36 }
 0x457   :  { %v4486_v45 = vpop.xlane.xlu0 %4485 }
 0x458   :  { %7764 = vpow2.f32 %v4588_v50  ;;  %v4590_v35 = vmul.f32 1.442695, %v4557_v10  ;;  %v4564_v54 = vsub.f32 %v9933_v6, %v4486_v45 }
 0x459   :  { %v10061_v24 = vpop.eup %7756  ;;  %v4489_v42 = vpop.xlane.xlu1 %4488 }
 0x45a   :  { %7766 = vpow2.f32 %v4590_v35  ;;  %v4604_v55 = vmul.f32 1.442695, %v4564_v54  ;;  %v4565_v5 = vsub.f32 %v9939_v1, %v4489_v42  ;;  %v4658_v0 = vsel %vm40_vm0, %v10061_v24, 0.0 }
 0x45b   :  { %v10064_v59 = vpop.eup %7758 }
 0x45c   :  { %7768 = vpow2.f32 %v4604_v55  ;;  %v4606_v27 = vmul.f32 1.442695, %v4565_v5  ;;  %v4661_v49 = vsel %vm40_vm0, %v10064_v59, 0.0 }
 0x45e   :  { %v10071_v29 = vpop.eup %7760  ;;  %7770 = vpow2.f32 %v4606_v27 }
 0x45f   :  { %4659 = vadd.xlane.f32.xlu0 %v4658_v0  ;;  %v4682_v6 = vsel %vm40_vm0, %v10071_v29, 0.0 }
 0x460   :  { %v10075_v32 = vpop.eup %7762 }
 0x461   :  { %4662 = vadd.xlane.f32.xlu1 %v4661_v49  ;;  %v4685_v1 = vsel %vm40_vm0, %v10075_v32, 0.0 }
 0x462   :  { %v10079_v63 = vpop.eup %7764 }
 0x463   :  { %4683 = vadd.xlane.f32.xlu0 %v4682_v6  ;;  %v4652_v31 = vsel %vm40_vm0, %v10079_v63, 0.0 }
 0x464   :  { %v10083_v23 = vpop.eup %7766 }
 0x465   :  { %4686 = vadd.xlane.f32.xlu1 %v4685_v1  ;;  %v4655_v61 = vsel %vm40_vm0, %v10083_v23, 0.0 }
 0x466   :  { %v10087_v19 = vpop.eup %7768 }
 0x467   :  { %4653 = vadd.xlane.f32.xlu0 %v4652_v31  ;;  %v4676_v22 = vsel %vm40_vm0, %v10087_v19, 0.0 }
 0x468   :  { %v10091_v20 = vpop.eup %7770 }
 0x469   :  { %4656 = vadd.xlane.f32.xlu1 %v4655_v61  ;;  %v4679_v12 = vsel %vm40_vm0, %v10091_v20, 0.0 }
 0x46a   :  { %v4480_v36 = vpop.xlane.xlu0 %4479 }
 0x46b   :  { %4677 = vadd.xlane.f32.xlu0 %v4676_v22  ;;  %v4562_v50 = vsub.f32 %v9951_v60, %v4480_v36 }
 0x46c   :  { %v4483_v10 = vpop.xlane.xlu1 %4482 }
 0x46d   :  { %4680 = vadd.xlane.f32.xlu1 %v4679_v12  ;;  %v4600_v45 = vmul.f32 1.442695, %v4562_v50  ;;  %v4563_v35 = vsub.f32 %v9957_v38, %v4483_v10 }
 0x46f   :  { %7772 = vpow2.f32 %v4600_v45  ;;  %v4602_v54 = vmul.f32 1.442695, %v4563_v35 }
 0x471   :  { %7774 = vpow2.f32 %v4602_v54 }
 0x479   :  { %v10097_v42 = vpop.eup %7772 }
 0x47a   :  { %v4670_v55 = vsel %vm40_vm0, %v10097_v42, 0.0 }
 0x47b   :  { %v10101_v5 = vpop.eup %7774  ;;  %4671 = vadd.xlane.f32.xlu0 %v4670_v55 }
 0x47c   :  { %v4673_v0 = vsel %vm40_vm0, %v10101_v5, 0.0 }
 0x47d   :  { %4674 = vadd.xlane.f32.xlu1 %v4673_v0 }
 0x481   :  { %v4516_v60 = vpop.xlane.xlu0 %4515 }
 0x482   :  { %v4574_v27 = vsub.f32 %v9971_v3, %v4516_v60 }
 0x483   :  { %v4519_v49 = vpop.xlane.xlu1 %4518 }
 0x484   :  { %v4624_v38 = vmul.f32 1.442695, %v4574_v27  ;;  %v4575_v6 = vsub.f32 %v9977_v44, %v4519_v49 }
 0x485   :  { %v4474_v1 = vpop.xlane.xlu0 %4473 }
 0x486   :  { %7776 = vpow2.f32 %v4624_v38  ;;  %v4626_v31 = vmul.f32 1.442695, %v4575_v6  ;;  %v4560_v61 = vsub.f32 %v9953_v17, %v4474_v1 }
 0x487   :  { %v4513_v22 = vpop.xlane.xlu1 %4512 }
 0x488   :  { %7778 = vpow2.f32 %v4626_v31  ;;  %v4596_v12 = vmul.f32 1.442695, %v4560_v61  ;;  %v4573_v10 = vsub.f32 %v9979_v43, %v4513_v22 }
 0x489   :  { %v4510_v36 = vpop.xlane.xlu0 %4509 }
 0x48a   :  { %7780 = vpow2.f32 %v4596_v12  ;;  %v4572_v50 = vsub.f32 %v9973_v48, %v4510_v36  ;;  %v4622_v55 = vmul.f32 1.442695, %v4573_v10 }
 0x48b   :  { %v4507_v3 = vpop.xlane.xlu1 %4506 }
 0x48c   :  { %v4620_v45 = vmul.f32 1.442695, %v4572_v50  ;;  %v4571_v17 = vsub.f32 %v9967_v21, %v4507_v3 }
 0x48d   :  { %v4477_v35 = vpop.xlane.xlu0 %4476 }
 0x48e   :  { %7782 = vpow2.f32 %v4620_v45  ;;  %v4561_v44 = vsub.f32 %v9959_v47, %v4477_v35  ;;  %v4618_v38 = vmul.f32 1.442695, %v4571_v17 }
 0x490   :  { %v10111_v54 = vpop.eup %7776  ;;  %v4598_v0 = vmul.f32 1.442695, %v4561_v44 }
 0x491   :  { %v4504_v60 = vpop.xlane.xlu0 %4503  ;;  %v4706_v27 = vsel %vm40_vm0, %v10111_v54, 0.0 }
 0x492   :  { %v10116_v49 = vpop.eup %7778  ;;  %7784 = vpow2.f32 %v4598_v0  ;;  %v4570_v48 = vsub.f32 %v9963_v8, %v4504_v60  ;;  %4707 = vadd.xlane.f32.xlu0 %v4706_v27 }
 0x493   :  { %v4709_v43 = vsel %vm40_vm0, %v10116_v49, 0.0  ;;  %7786 = vpow2.f32 %v4622_v55 }
 0x494   :  { %v10121_v47 = vpop.eup %7780  ;;  %v4616_v6 = vmul.f32 1.442695, %v4570_v48  ;;  %4710 = vadd.xlane.f32.xlu1 %v4709_v43 }
 0x495   :  { %v4664_v21 = vsel %vm40_vm0, %v10121_v47, 0.0 }
 0x496   :  { %7788 = vpow2.f32 %v4616_v6  ;;  %4665 = vadd.xlane.f32.xlu0 %v4664_v21 }
 0x497   :  { %7790 = vpow2.f32 %v4618_v38 }
 0x498   :  { %v10125_v1 = vpop.eup %7782 }
 0x499   :  { %v4700_v8 = vsel %vm40_vm0, %v10125_v1, 0.0 }
 0x49a   :  { %4701 = vadd.xlane.f32.xlu0 %v4700_v8 }
 0x49c   :  { %v10129_v61 = vpop.eup %7784 }
 0x49d   :  { %v4667_v12 = vsel %vm40_vm0, %v10129_v61, 0.0  ;;  %v10133_v36 = vpop.eup %7786 }
 0x49e   :  { %4668 = vadd.xlane.f32.xlu1 %v4667_v12  ;;  %v4703_v35 = vsel %vm40_vm0, %v10133_v36, 0.0 }
 0x49f   :  { %v4540_v31 = vpop.xlane.xlu0 %4539 }
 0x4a0   :  { %v10135_v10 = vpop.eup %7788  ;;  %v4582_v60 = vsub.f32 %v10001_v40, %v4540_v31 }
 0x4a1   :  { %v4543_v22 = vpop.xlane.xlu1 %4542  ;;  %v4694_v44 = vsel %vm40_vm0, %v10135_v10, 0.0  ;;  %v10142_v55 = vpop.eup %7790 }
 0x4a2   :  { %4704 = vadd.xlane.f32.xlu1 %v4703_v35  ;;  %4695 = vadd.xlane.f32.xlu0 %v4694_v44  ;;  %v4697_v43 = vsel %vm40_vm0, %v10142_v55, 0.0  ;;  %v4640_v8 = vmul.f32 1.442695, %v4582_v60 }
 0x4a3   :  { %v4498_v50 = vpop.xlane.xlu0 %4497 }
 0x4a4   :  { %v4568_v45 = vsub.f32 %v9965_v15, %v4498_v50 }
 0x4a5   :  { %v4501_v3 = vpop.xlane.xlu1 %4500 }
 0x4a6   :  { %v4569_v17 = vsub.f32 %v9969_v25, %v4501_v3  ;;  %v4612_v0 = vmul.f32 1.442695, %v4568_v45  ;;  %4698 = vadd.xlane.f32.xlu1 %v4697_v43 }
 0x4a7   :  { %v4534_v27 = vpop.xlane.xlu0 %4533 }
 0x4a8   :  { %7792 = vpow2.f32 %v4612_v0  ;;  %v4580_v15 = vsub.f32 %v10005_v53, %v4534_v27  ;;  %v4614_v38 = vmul.f32 1.442695, %v4569_v17  ;;  %v4583_v17 = vsub.f32 %v10009_v4, %v4543_v22 }
 0x4a9   :  { %v4537_v48 = vpop.xlane.xlu1 %4536 }
 0x4aa   :  { %v4581_v6 = vsub.f32 %v10011_v41, %v4537_v48  ;;  %v4636_v21 = vmul.f32 1.442695, %v4580_v15 }
 0x4ab   :  { %v4528_v25 = vpop.xlane.xlu0 %4527 }
 0x4ac   :  { %v4638_v12 = vmul.f32 1.442695, %v4581_v6  ;;  %7794 = vpow2.f32 %v4636_v21  ;;  %v4578_v50 = vsub.f32 %v9995_v52, %v4528_v25 }
 0x4ad   :  { %v4531_v40 = vpop.xlane.xlu1 %4530  ;;  %7796 = vpow2.f32 %v4614_v38 }
 0x4ae   :  { %v4579_v31 = vsub.f32 %v9999_v46, %v4531_v40  ;;  %v4632_v53 = vmul.f32 1.442695, %v4578_v50  ;;  %7798 = vpow2.f32 %v4640_v8  ;;  %v11273_v50 = vld [vmem:[#allocation5_spill] sm:$0xff] }
 0x4af   :  { %v4522_v45 = vpop.xlane.xlu0 %4521  ;;  %7800 = vpow2.f32 %v4638_v12 }
 0x4b0   :  { %v4634_v3 = vmul.f32 1.442695, %v4579_v31  ;;  %v4576_v35 = vsub.f32 %v9997_v2, %v4522_v45  ;;  %7802 = vpow2.f32 %v4632_v53  ;;  %v4642_v2 = vmul.f32 1.442695, %v4583_v17 }
 0x4b1   :  { %v4525_v41 = vpop.xlane.xlu1 %4524 }
 0x4b2   :  { %v10153_v44 = vpop.eup %7792  ;;  %7804 = vpow2.f32 %v4634_v3  ;;  %v4577_v52 = vsub.f32 %v10003_v16, %v4525_v41  ;;  %v4628_v0 = vmul.f32 1.442695, %v4576_v35 }
 0x4b3   :  { %v4552_v60 = vpop.xlane.xlu0 %4551  ;;  %v4688_v46 = vsel %vm40_vm0, %v10153_v44, 0.0 }
 0x4b4   :  { %v4630_v27 = vmul.f32 1.442695, %v4577_v52  ;;  %7806 = vpow2.f32 %v4628_v0  ;;  %4689 = vadd.xlane.f32.xlu0 %v4688_v46  ;;  %v4586_v4 = vsub.f32 %v10023_v33, %v4552_v60  ;;  %v11276_v60 = vld [vmem:[#allocation7_spill] sm:$0xff] }
 0x4b5   :  { %v4555_v15 = vpop.xlane.xlu1 %4554 }
 0x4b6   :  { %v10159_v48 = vpop.eup %7794  ;;  %7808 = vpow2.f32 %v4630_v27  ;;  %v4587_v43 = vsub.f32 %v10031_v51, %v4555_v15  ;;  %v11274_v51 = vcombine.low %v11273_v50, %v11272_v56  ;;  %v4648_v3 = vmul.f32 1.442695, %v4586_v4 }
 0x4b7   :  { %v4546_v22 = vpop.xlane.xlu0 %4545  ;;  %v4724_v16 = vsel %vm40_vm0, %v10159_v48, 0.0  ;;  %v10165_v38 = vpop.eup %7796  ;;  %7810 = vpow2.f32 %v4642_v2  ;;  %v11278_v27 = vcombine.high %v11276_v60, %v11271_v62 }
 0x4b8   :  { %v4650_v6 = vmul.f32 1.442695, %v4587_v43  ;;  %v4584_v21 = vsub.f32 %v10027_v26, %v4546_v22  ;;  %4725 = vadd.xlane.f32.xlu0 %v4724_v16  ;;  %v10168_v8 = vpop.eup %7798  ;;  %v3283_v33 = vrot.slane %v11274_v51, %v8443_v14  ;;  %v11275_v26 = vcombine.high %v11273_v50, %v11272_v56 }
 0x4b9   :  { %v4549_v25 = vpop.xlane.xlu1 %4548  ;;  %v10170_v12 = vpop.eup %7800  ;;  %v4691_v41 = vsel %vm40_vm0, %v10165_v38, 0.0  ;;  %v11277_v56 = vcombine.low %v11276_v60, %v11271_v62  ;;  %v3358_v15 = vrot.slane %v11278_v27, %v8443_v14  ;;  %v4730_v4 = vsel %vm40_vm0, %v10168_v8, 0.0 }
 0x4ba   :  { %v4585_v40 = vsub.f32 %v10033_v18, %v4549_v25  ;;  %v4644_v31 = vmul.f32 1.442695, %v4584_v21  ;;  %v10177_v53 = vpop.eup %7802  ;;  %v3290_v45 = vrot.slane %v11275_v26, %v8443_v14  ;;  %7812 = vpow2.f32 %v4650_v6 }
 0x4bb   :  { %v2856_v35 = vpop.permute.xlu0 %2855  ;;  %v3351_v46 = vrot.slane %v11277_v56, %v8443_v14  ;;  %v4718_v21 = vsel %vm40_vm0, %v10177_v53, 0.0  ;;  %v4727_v25 = vsel %vm40_vm0, %v10170_v12, 0.0 }
 0x4bc   :  { %v10185_v17 = vpop.eup %7804  ;;  %v4646_v52 = vmul.f32 1.442695, %v4585_v40  ;;  %7814 = vpow2.f32 %v4644_v31  ;;  %v3291_v18 = vcombine.low %v10051_v28, %v2856_v35  ;;  %v3292_v0 = vcombine.high %v10051_v28, %v2856_v35  ;;  %4692 = vadd.xlane.f32.xlu0 %v4691_v41 }
 0x4bd   :  { %v2858_v2 = vpop.permute.xlu1 %2857  ;;  %v4721_v43 = vsel %vm40_vm0, %v10185_v17, 0.0 }
 0x4be   :  { %v10201_v22 = vpop.eup %7806  ;;  %7816 = vpow2.f32 %v4646_v52  ;;  %v3359_v28 = vcombine.low %v10053_v11, %v2858_v2  ;;  %v3360_v16 = vcombine.high %v10053_v11, %v2858_v2  ;;  %4722 = vadd.xlane.f32.xlu1 %v4721_v43  ;;  %v3299_v6 = vrot.slane %v3291_v18, %v8443_v14 }
 0x4bf   :  { %7818 = vpow2.f32 %v4648_v3  ;;  %v3306_v62 = vrot.slane %v3292_v0, %v8443_v14  ;;  %v4712_v41 = vsel %vm40_vm0, %v10201_v22, 0.0 }
 0x4c0   :  { %v10211_v50 = vpop.eup %7808  ;;  %v3367_v51 = vrot.slane %v3359_v28, %v8443_v14  ;;  %v3374_v40 = vrot.slane %v3360_v16, %v8443_v14  ;;  %v3307_v31 = vcombine.low %v3283_v33, %v3299_v6  ;;  %v3308_v11 = vcombine.high %v3283_v33, %v3299_v6  ;;  %4719 = vadd.xlane.f32.xlu0 %v4718_v21 }
 0x4c1   :  { %v3323_v26 = vcombine.low %v3290_v45, %v3306_v62  ;;  %v3324_v35 = vcombine.high %v3290_v45, %v3306_v62  ;;  %v4715_v3 = vsel %vm40_vm0, %v10211_v50, 0.0  ;;  %v10223_v45 = vpop.eup %7810 }
 0x4c2   :  { %v3375_v52 = vcombine.low %v3351_v46, %v3367_v51  ;;  %v3376_v18 = vcombine.high %v3351_v46, %v3367_v51  ;;  %v3391_v0 = vcombine.low %v3358_v15, %v3374_v40  ;;  %v3392_v60 = vcombine.high %v3358_v15, %v3374_v40  ;;  %4716 = vadd.xlane.f32.xlu1 %v4715_v3 }
 0x4c3   :  { %v3315_v56 = vrot.slane %v3307_v31, %v8457_v7  ;;  %v3322_v27 = vrot.slane %v3308_v11, %v8457_v7  ;;  %v3331_v33 = vrot.slane %v3323_v26, %v8457_v7  ;;  %v3338_v2 = vrot.slane %v3324_v35, %v8457_v7 }
 0x4c4   :  { %v3383_v43 = vrot.slane %v3375_v52, %v8457_v7  ;;  %v3390_v28 = vrot.slane %v3376_v18, %v8457_v7  ;;  %v3399_v16 = vrot.slane %v3391_v0, %v8457_v7  ;;  %v3406_v46 = vrot.slane %v3392_v60, %v8457_v7  ;;  %4713 = vadd.xlane.f32.xlu0 %v4712_v41  ;;  %v10229_v15 = vpop.eup %7812 }
 0x4c5   :  { %11279 = vst [vmem:[#allocation16_spill] sm:$0xff] %v10229_v15  ;;  %v3819_v6 = vcombine.low %v3315_v56, %v3322_v27  ;;  %v7263_v62 = vcombine.high %v3315_v56, %v3322_v27  ;;  %v3835_v21 = vcombine.low %v3331_v33, %v3338_v2  ;;  %v7264_v51 = vcombine.high %v3331_v33, %v3338_v2 }
 0x4c6   :  { %v10231_v40 = vpop.eup %7814  ;;  %v3887_v31 = vcombine.low %v3383_v43, %v3390_v28  ;;  %v7265_v11 = vcombine.high %v3383_v43, %v3390_v28  ;;  %v3903_v26 = vcombine.low %v3399_v16, %v3406_v46  ;;  %v7266_v35 = vcombine.high %v3399_v16, %v3406_v46  ;;  %4728 = vadd.xlane.f32.xlu1 %v4727_v25 }
 0x4c7   :  { %11280 = vst [vmem:[#allocation17_spill] sm:$0xff] %v10231_v40  ;;  %v3826_v3 = vrot.slane %v3819_v6, %v8443_v14  ;;  %v3834_v52 = vrot.slane %v7263_v62, %v8443_v14  ;;  %v3842_v18 = vrot.slane %v3835_v21, %v8443_v14  ;;  %v3850_v41 = vrot.slane %v7264_v51, %v8443_v14 }
 0x4c8   :  { %v10237_v0 = vpop.eup %7816  ;;  %v3894_v60 = vrot.slane %v3887_v31, %v8443_v14  ;;  %v3902_v56 = vrot.slane %v7265_v11, %v8443_v14  ;;  %v3910_v27 = vrot.slane %v3903_v26, %v8443_v14  ;;  %v3918_v33 = vrot.slane %v7266_v35, %v8443_v14  ;;  %4731 = vadd.xlane.f32.xlu0 %v4730_v4 }
 0x4c9   :  { %11281 = vst [vmem:[#allocation33_spill] sm:$0xff] %v10237_v0  ;;  %v10243_v25 = vpop.eup %7818  ;;  %v4733_v2 = vsel %vm40_vm0, %v10223_v45, 0.0  ;;  %v4745_v43 = vsel %vm40_vm0, %v10229_v15, 0.0  ;;  %v4736_v28 = vsel %vm40_vm0, %v10231_v40, 0.0  ;;  %v4739_v16 = vsel %vm40_vm0, %v10237_v0, 0.0 }
 0x4ca   :  { %4734 = vadd.xlane.f32.xlu1 %v4733_v2  ;;  %v3851_v46 = vcombine.low %v3826_v3, %v3834_v52  ;;  %v3867_v6 = vcombine.low %v3842_v18, %v3850_v41  ;;  %v3919_v62 = vcombine.low %v3894_v60, %v3902_v56  ;;  %v3935_v21 = vcombine.low %v3910_v27, %v3918_v33 }
 0x4cb   :  { %v3852_v4 = vcombine.high %v3826_v3, %v3834_v52  ;;  %v3868_v51 = vcombine.high %v3842_v18, %v3850_v41  ;;  %v3920_v31 = vcombine.high %v3894_v60, %v3902_v56  ;;  %v3936_v11 = vcombine.high %v3910_v27, %v3918_v33 }
 0x4cc   :  { %4737 = vadd.xlane.f32.xlu0 %v4736_v28  ;;  %v3859_v26 = vrot.slane %v3851_v46, %v8457_v7  ;;  %v3875_v35 = vrot.slane %v3867_v6, %v8457_v7  ;;  %v3927_v14 = vrot.slane %v3919_v62, %v8457_v7  ;;  %v3943_v15 = vrot.slane %v3935_v21, %v8457_v7 }
 0x4cd   :  { %v3866_v0 = vrot.slane %v3852_v4, %v8457_v7  ;;  %v3882_v2 = vrot.slane %v3868_v51, %v8457_v7  ;;  %v3934_v40 = vrot.slane %v3920_v31, %v8457_v7  ;;  %v3950_v3 = vrot.slane %v3936_v11, %v8457_v7 }
 0x4ce   :  { %4746 = vadd.xlane.f32.xlu1 %v4745_v43  ;;  %v3883_v52 = vcombine.low %v3859_v26, %v3875_v35  ;;  %v3951_v18 = vcombine.low %v3927_v14, %v3943_v15  ;;  %v3884_v41 = vcombine.high %v3859_v26, %v3875_v35  ;;  %v3952_v60 = vcombine.high %v3927_v14, %v3943_v15 }
 0x4cf   :  { %v3885_v56 = vcombine.low %v3866_v0, %v3882_v2  ;;  %v3953_v27 = vcombine.low %v3934_v40, %v3950_v3  ;;  %v3886_v33 = vcombine.high %v3866_v0, %v3882_v2  ;;  %v3954_v28 = vcombine.high %v3934_v40, %v3950_v3 }
 0x4d0   :  { %4740 = vadd.xlane.f32.xlu0 %v4739_v16  ;;  %v3964_v46 = vpack.c.bf16 %v3951_v18, %v3883_v52  ;;  %v10261_v6 = vpack.c.bf16 %v3952_v60, %v3884_v41  ;;  %v4742_v4 = vsel %vm40_vm0, %v10243_v25, 0.0 }
 0x4d1   :  { %v10263_v62 = vpack.c.bf16 %v3953_v27, %v3885_v56  ;;  %v10265_v21 = vpack.c.bf16 %v3954_v28, %v3886_v33 }
 0x4d4   :  { %4743 = vadd.xlane.f32.xlu0 %v4742_v4 }
 0x4ec   :  { %v4660_v43 = vpop.xlane.xlu0 %4659 }
 0x4ee   :  { %v4663_v51 = vpop.xlane.xlu1 %4662 }
 0x4ef   :  { %7820 = vrcp.f32 %v4663_v51 }
 0x4f0   :  { %v4684_v31 = vpop.xlane.xlu0 %4683 }
 0x4f2   :  { %v4687_v14 = vpop.xlane.xlu1 %4686 }
 0x4f4   :  { %v4654_v15 = vpop.xlane.xlu0 %4653 }
 0x4f5   :  { %7822 = vrcp.f32 %v4654_v15 }
 0x4f6   :  { %7824 = vrcp.f32 %v4660_v43  ;;  %v4657_v40 = vpop.xlane.xlu1 %4656 }
 0x4f7   :  { %7826 = vrcp.f32 %v4657_v40 }
 0x4f8   :  { %v4678_v0 = vpop.xlane.xlu0 %4677 }
 0x4f9   :  { %7828 = vrcp.f32 %v4678_v0  ;;  %v7821_v11 = vpop.eup %7820 }
 0x4fa   :  { %v4681_v16 = vpop.xlane.xlu1 %4680  ;;  %v4783_v3 = vmul.f32 %v7821_v11, %v10064_v59 }
 0x4fb   :  { %7830 = vrcp.f32 %v4681_v16 }
 0x4fc   :  { %7832 = vrcp.f32 %v4687_v14 }
 0x4fd   :  { %7834 = vrcp.f32 %v4684_v31 }
 0x4ff   :  { %v7823_v26 = vpop.eup %7822 }
 0x500   :  { %v7825_v35 = vpop.eup %7824  ;;  %v4780_v52 = vmul.f32 %v7823_v26, %v10079_v63 }
 0x501   :  { %v7827_v2 = vpop.eup %7826  ;;  %v4782_v60 = vmul.f32 %v7825_v35, %v10061_v24 }
 0x502   :  { %v4781_v18 = vmul.f32 %v7827_v2, %v10083_v23 }
 0x503   :  { %v7829_v41 = vpop.eup %7828  ;;  %v4813_v33 = vpack.c.bf16 %v4783_v3, %v4782_v60 }
 0x504   :  { %v4812_v56 = vpack.c.bf16 %v4781_v18, %v4780_v52  ;;  %v4788_v4 = vmul.f32 %v7829_v41, %v10087_v19 }
 0x505   :  { %v7831_v27 = vpop.eup %7830 }
 0x506   :  { %v7833_v28 = vpop.eup %7832  ;;  %7537 = vmatprep.mubr.msk.bf16.mxu0 %vm40_vm0, %v4812_v56  ;;  %v4789_v43 = vmul.f32 %v7831_v27, %v10091_v20 }
 0x507   :  { %7538 = vmatmul.mubr.msk.bf16.vlgmr.msra.gmra.mrb[44].mxu0 %vm40_vm0, %v4813_v33  ;;  %v7835_v59 = vpop.eup %7834  ;;  %v4791_v23 = vmul.f32 %v7833_v28, %v10075_v32 }
 0x508   :  { %7550 = vmatpush3.bf16.msra.mxu0 %v9856_v57  ;;  %v4816_v63 = vpack.c.bf16 %v4789_v43, %v4788_v4  ;;  %v4790_v24 = vmul.f32 %v7835_v59, %v10071_v29  ;;  %v4672_v57 = vpop.xlane.xlu0 %4671 }
 0x509   :  { %7551 = vmatprep.subr.bf16.mxu0 %v9899_v30 }
 0x50a   :  { %7553 = vmatprep.mubr.msk.bf16.mxu0 %vm40_vm0, %v4816_v63  ;;  %v4817_v19 = vpack.c.bf16 %v4791_v23, %v4790_v24  ;;  %v4675_v20 = vpop.xlane.xlu1 %4674 }
 0x50b   :  { %7836 = vrcp.f32 %v4675_v20 }
 0x50c   :  { %7552 = vmatpush3.bf16.msra.mxu0 %v9899_v30 }
 0x50d   :  { %7565 = vmatprep.subr.bf16.mxu0 %v9911_v39 }
 0x50f   :  { %7554 = vmatmul.mubr.msk.bf16.vlgmr.msra.gmra.mrb[48].mxu0 %vm40_vm0, %v4817_v19 }
 0x510   :  { %7566 = vmatpush3.bf16.msra.mxu0 %v9911_v39 }
 0x511   :  { %7567 = vmatprep.subr.bf16.mxu0 %v3964_v46 }
 0x514   :  { %7568 = vmatpush3.bf16.msra.mxu0 %v3964_v46 }
 0x515   :  { %7581 = vmatprep.subr.bf16.mxu0 %v9915_v34  ;;  %v7837_v39 = vpop.eup %7836 }
 0x516   :  { %v4787_v0 = vmul.f32 %v7837_v39, %v10101_v5 }
 0x51f   :  { %v4708_v32 = vpop.xlane.xlu0 %4707 }
 0x521   :  { %v4711_v31 = vpop.xlane.xlu1 %4710 }
 0x523   :  { %v4666_v51 = vpop.xlane.xlu0 %4665 }
 0x524   :  { %7838 = vrcp.f32 %v4666_v51 }
 0x525   :  { %7840 = vrcp.f32 %v4672_v57 }
 0x527   :  { %v4702_v30 = vpop.xlane.xlu0 %4701 }
 0x52b   :  { %v4669_v29 = vpop.xlane.xlu1 %4668 }
 0x52c   :  { %7842 = vrcp.f32 %v4669_v29 }
 0x52d   :  { %7844 = vrcp.f32 %v4711_v31 }
 0x52e   :  { %7846 = vrcp.f32 %v4702_v30  ;;  %v7839_v46 = vpop.eup %7838 }
 0x52f   :  { %7848 = vrcp.f32 %v4708_v32  ;;  %v4705_v14 = vpop.xlane.xlu1 %4704  ;;  %v7841_v15 = vpop.eup %7840  ;;  %v4784_v11 = vmul.f32 %v7839_v46, %v10121_v47 }
 0x530   :  { %7850 = vrcp.f32 %v4705_v14  ;;  %v4786_v2 = vmul.f32 %v7841_v15, %v10097_v42  ;;  %v4696_v52 = vpop.xlane.xlu0 %4695 }
 0x532   :  { %v4815_v56 = vpack.c.bf16 %v4787_v0, %v4786_v2  ;;  %v11282_v2 = vld [vmem:[#allocation17_spill] sm:$0xff] }
 0x536   :  { %v7843_v40 = vpop.eup %7842 }
 0x537   :  { %v7845_v16 = vpop.eup %7844  ;;  %v4785_v26 = vmul.f32 %v7843_v40, %v10129_v61 }
 0x538   :  { %v7847_v35 = vpop.eup %7846  ;;  %v4799_v60 = vmul.f32 %v7845_v16, %v10116_v49  ;;  %v4699_v49 = vpop.xlane.xlu1 %4698 }
 0x539   :  { %v7849_v3 = vpop.eup %7848  ;;  %v4814_v18 = vpack.c.bf16 %v4785_v26, %v4784_v11  ;;  %v4796_v27 = vmul.f32 %v7847_v35, %v10125_v1  ;;  %7852 = vrcp.f32 %v4699_v49 }
 0x53a   :  { %v7851_v41 = vpop.eup %7850  ;;  %v4798_v47 = vmul.f32 %v7849_v3, %v10111_v54 }
 0x53b   :  { %7545 = vmatprep.mubr.msk.bf16.mxu1 %vm40_vm0, %v4814_v18  ;;  %v4797_v5 = vmul.f32 %v7851_v41, %v10133_v36 }
 0x53c   :  { %7546 = vmatmul.mubr.msk.bf16.vlgmr.msra.gmra.mrb[36].mxu1 %vm40_vm0, %v4815_v56  ;;  %v4821_v33 = vpack.c.bf16 %v4799_v60, %v4798_v47  ;;  %v11284_v56 = vld [vmem:[#allocation16_spill] sm:$0xff] }
 0x53d   :  { %7558 = vmatpush3.bf16.msra.mxu1 %v9858_v37  ;;  %v4820_v42 = vpack.c.bf16 %v4797_v5, %v4796_v27 }
 0x53e   :  { %7559 = vmatprep.subr.bf16.mxu1 %v9909_v13 }
 0x53f   :  { %7569 = vmatprep.mubr.msk.bf16.mxu0 %vm40_vm0, %v4820_v42 }
 0x540   :  { %7570 = vmatmul.mubr.msk.bf16.vlgmr.msra.gmra.mrb[52].mxu0 %vm40_vm0, %v4821_v33 }
 0x541   :  { %v4690_v61 = vpop.xlane.xlu0 %4689  ;;  %7560 = vmatpush3.bf16.msra.mxu1 %v9909_v13  ;;  %7582 = vmatpush3.bf16.msra.mxu0 %v9915_v34 }
 0x542   :  { %7573 = vmatprep.subr.bf16.mxu1 %v9913_v58  ;;  %7583 = vmatprep.subr.bf16.mxu0 %v10263_v62  ;;  %7854 = vrcp.f32 %v4690_v61 }
 0x543   :  { %7856 = vrcp.f32 %v4696_v52  ;;  %v7853_v13 = vpop.eup %7852  ;;  %v11283_v52 = vld [vmem:[#allocation33_spill] sm:$0xff] }
 0x544   :  { %v4795_v23 = vmul.f32 %v7853_v13, %v10142_v55 }
 0x545   :  { %v4726_v28 = vpop.xlane.xlu0 %4725  ;;  %7584 = vmatpush3.bf16.msra.mxu0 %v10263_v62 }
 0x549   :  { %v4693_v37 = vpop.xlane.xlu0 %4692 }
 0x54a   :  { %7858 = vrcp.f32 %v4693_v37 }
 0x54b   :  { %v4723_v54 = vpop.xlane.xlu1 %4722  ;;  %7860 = vrcp.f32 %v4726_v28 }
 0x54c   :  { %v7855_v4 = vpop.eup %7854 }
 0x54d   :  { %v4720_v1 = vpop.xlane.xlu0 %4719  ;;  %v7857_v43 = vpop.eup %7856  ;;  %v4792_v62 = vmul.f32 %v7855_v4, %v10153_v44 }
 0x54e   :  { %7862 = vrcp.f32 %v4720_v1  ;;  %v4794_v57 = vmul.f32 %v7857_v43, %v10135_v10 }
 0x54f   :  { %v4717_v36 = vpop.xlane.xlu1 %4716 }
 0x550   :  { %7864 = vrcp.f32 %v4717_v36  ;;  %v4819_v31 = vpack.c.bf16 %v4795_v23, %v4794_v57  ;;  %v7716_v23 = vld [vmem:[%s11056_s3 + $0x48] sm:$0xff]   ;;  %v7720_v57 = vld [vmem:[%s11056_s3 + $0x58] sm:$0xff]  }
 0x551   :  { %7866 = vrcp.f32 %v4723_v54  ;;  %v4714_v34 = vpop.xlane.xlu0 %4713 }
 0x552   :  { %7868 = vrcp.f32 %v4714_v34 }
 0x553   :  { %v4729_v59 = vpop.xlane.xlu1 %4728 }
 0x554   :  { %v7859_v63 = vpop.eup %7858  ;;  %7870 = vrcp.f32 %v4729_v59  ;;  %v7714_v59 = vld [vmem:[%s11056_s3 + $0x40] sm:$0xff]  }
 0x555   :  { %v4732_v24 = vpop.xlane.xlu0 %4731  ;;  %v4793_v19 = vmul.f32 %v7859_v63, %v10165_v38  ;;  %v7861_v51 = vpop.eup %7860  ;;  %v7715_v63 = vld [vmem:[%s11056_s3] sm:$0xff]   ;;  %7411 = vmatprep.subr.bf16.mxu0 %v7714_v59 }
 0x556   :  { %7872 = vrcp.f32 %v4732_v24  ;;  %v7717_v24 = vld [vmem:[%s11056_s3 + $0x8] sm:$0xff]  }
 0x557   :  { %v4735_v32 = vpop.xlane.xlu1 %4734  ;;  %v4818_v20 = vpack.c.bf16 %v4793_v19, %v4792_v62  ;;  %v7718_v62 = vld [vmem:[%s11056_s3 + $0x50] sm:$0xff]  }
 0x558   :  { %7874 = vrcp.f32 %v4735_v32  ;;  %v7863_v30 = vpop.eup %7862  ;;  %v7719_v19 = vld [vmem:[%s11056_s3 + $0x10] sm:$0xff]   ;;  %v7721_v32 = vld [vmem:[%s11056_s3 + $0x18] sm:$0xff]  }
 0x559   :  { %7561 = vmatprep.mubr.msk.bf16.mxu1 %vm40_vm0, %v4818_v20  ;;  %v4738_v29 = vpop.xlane.xlu0 %4737  ;;  %v4802_v38 = vmul.f32 %v7863_v30, %v10177_v53  ;;  %v7722_v20 = vld [vmem:[%s11056_s3 + $0x60] sm:$0xff]   ;;  %v7725_v30 = vld [vmem:[%s11056_s3 + $0x28] sm:$0xff]  }
 0x55a   :  { %v7865_v14 = vpop.eup %7864  ;;  %7562 = vmatmul.mubr.msk.bf16.vlgmr.msra.gmra.mrb[40].mxu1 %vm40_vm0, %v4819_v31  ;;  %7876 = vrcp.f32 %v4738_v29  ;;  %v7724_v31 = vld [vmem:[%s11056_s3 + $0x68] sm:$0xff]   ;;  %v7726_v29 = vld [vmem:[%s11056_s3 + $0x70] sm:$0xff]  }
 0x55b   :  { %v7867_v55 = vpop.eup %7866  ;;  %7574 = vmatpush3.bf16.msra.mxu1 %v9913_v58  ;;  %v4747_v10 = vpop.xlane.xlu1 %4746  ;;  %v4801_v15 = vmul.f32 %v7865_v14, %v10211_v50  ;;  %v4804_v58 = vmul.f32 %v7861_v51, %v10159_v48  ;;  %v7723_v51 = vld [vmem:[%s11056_s3 + $0x20] sm:$0xff]  }
 0x55c   :  { %v7869_v44 = vpop.eup %7868  ;;  %7575 = vmatprep.subr.bf16.mxu1 %v10261_v6  ;;  %v4803_v0 = vmul.f32 %v7867_v55, %v10185_v17 }
 0x55d   :  { %v4741_v39 = vpop.xlane.xlu0 %4740  ;;  %v4800_v46 = vmul.f32 %v7869_v44, %v10201_v22 }
 0x55e   :  { %v7871_v40 = vpop.eup %7870  ;;  %7878 = vrcp.f32 %v4741_v39  ;;  %v4823_v26 = vpack.c.bf16 %v4803_v0, %v4802_v38 }
 0x55f   :  { %7576 = vmatpush3.bf16.msra.mxu1 %v10261_v6  ;;  %v4805_v16 = vmul.f32 %v7871_v40, %v10170_v12  ;;  %v4822_v53 = vpack.c.bf16 %v4801_v15, %v4800_v46  ;;  %7880 = vrcp.f32 %v4747_v10  ;;  %v11285_v40 = vld [vmem:[#allocation9_spill] sm:$0xff] }
 0x560   :  { %v7873_v11 = vpop.eup %7872  ;;  %7589 = vmatprep.subr.bf16.mxu1 %v9917_v9 }
 0x561   :  { %v4806_v22 = vmul.f32 %v7873_v11, %v10168_v8  ;;  %v4824_v35 = vpack.c.bf16 %v4805_v16, %v4804_v58  ;;  %7577 = vmatprep.mubr.msk.bf16.mxu1 %vm40_vm0, %v4822_v53  ;;  %v4744_v50 = vpop.xlane.xlu0 %4743 }
 0x562   :  { %v7875_v17 = vpop.eup %7874  ;;  %7882 = vrcp.f32 %v4744_v50  ;;  %7578 = vmatmul.mubr.msk.bf16.vlgmr.msra.gmra.mrb[44].mxu1 %vm40_vm0, %v4823_v26 }
 0x563   :  { %v4807_v48 = vmul.f32 %v7875_v17, %v10223_v45  ;;  %7585 = vmatprep.mubr.msk.bf16.mxu0 %vm40_vm0, %v4824_v35  ;;  %7590 = vmatpush3.bf16.msra.mxu1 %v9917_v9 }
 0x564   :  { %7591 = vmatprep.subr.bf16.mxu1 %v10265_v21  ;;  %v7877_v6 = vpop.eup %7876 }
 0x565   :  { %v4825_v12 = vpack.c.bf16 %v4807_v48, %v4806_v22  ;;  %v4808_v3 = vmul.f32 %v7877_v6, %v11282_v2 }
 0x567   :  { %7586 = vmatmul.mubr.msk.bf16.vlgmr.msra.gmra.mrb[56].mxu0 %vm40_vm0, %v4825_v12  ;;  %7592 = vmatpush3.bf16.msra.mxu1 %v10265_v21 }
 0x568   :  { %v7879_v8 = vpop.eup %7878  ;;  %7412 = vmatpush3.bf16.msra.mxu0 %v7715_v63 }
 0x569   :  { %v4809_v18 = vmul.f32 %v7879_v8, %v11283_v52  ;;  %v7881_v41 = vpop.eup %7880  ;;  %7413 = vmatprep.subr.bf16.mxu0 %v7716_v23 }
 0x56a   :  { %v4811_v27 = vmul.f32 %v7881_v41, %v11284_v56 }
 0x56b   :  { %v4826_v60 = vpack.c.bf16 %v4809_v18, %v4808_v3 }
 0x56c   :  { %v7883_v45 = vpop.eup %7882  ;;  %7414 = vmatpush3.bf16.msra.mxu0 %v7717_v24 }
 0x56d   :  { %v4810_v9 = vmul.f32 %v7883_v45, %v10243_v25  ;;  %7593 = vmatprep.mubr.msk.bf16.mxu1 %vm40_vm0, %v4826_v60  ;;  %7415 = vmatprep.subr.bf16.mxu0 %v7718_v62 }
 0x56f   :  { %v4827_v5 = vpack.c.bf16 %v4811_v27, %v4810_v9 }
 0x570   :  { %7416 = vmatpush3.bf16.msra.mxu0 %v7719_v19 }
 0x571   :  { %7594 = vmatmul.mubr.msk.bf16.vlgmr.msra.gmra.mrb[48].mxu1 %vm40_vm0, %v4827_v5  ;;  %7417 = vmatprep.subr.bf16.mxu0 %v7720_v57 }
 0x574   :  { %7418 = vmatpush3.bf16.msra.mxu0 %v7721_v32 }
 0x575   :  { %7419 = vmatprep.subr.bf16.mxu0 %v7722_v20 }
 0x578   :  { %7420 = vmatpush3.bf16.msra.mxu0 %v7723_v51 }
 0x579   :  { %7421 = vmatprep.subr.bf16.mxu0 %v7724_v31 }
 0x57c   :  { %7422 = vmatpush3.bf16.msra.mxu0 %v7725_v30 }
 0x57d   :  { %7423 = vmatprep.subr.bf16.mxu0 %v7726_v29 }
 0x5da   :  { %v7539_v47 = vpop.f32.mrb[44].mxu0 }
 0x5db   :  { %v4868_v61 = vpop.f32.mrb[45].mxu0 }
 0x5dc   :  { %v7540_v21 = vpop.f32.mrb[46].mxu0 }
 0x5dd   :  { %v4871_v42 = vpop.f32.mrb[47].mxu0 }
 0x5e2   :  { %v7555_v33 = vpop.f32.mrb[48].mxu0 }
 0x5e3   :  { %v5404_v49 = vcombine.low %v7539_v47, %v7555_v33  ;;  %v5405_v28 = vcombine.high %v7539_v47, %v7555_v33  ;;  %v4978_v37 = vpop.f32.mrb[49].mxu0 }
 0x5e4   :  { %v5268_v54 = vcombine.low %v4868_v61, %v4978_v37  ;;  %v5269_v1 = vcombine.high %v4868_v61, %v4978_v37  ;;  %v7556_v36 = vpop.f32.mrb[50].mxu0 }
 0x5e5   :  { %v5472_v13 = vcombine.low %v7540_v21, %v7556_v36  ;;  %v5473_v34 = vcombine.high %v7540_v21, %v7556_v36  ;;  %v4981_v4 = vpop.f32.mrb[51].mxu0  ;;  %v5412_v0 = vrot.slane %v5404_v49, %v11285_v40  ;;  %v5419_v58 = vrot.slane %v5405_v28, %v11285_v40 }
 0x5e6   :  { %v5336_v25 = vcombine.low %v4871_v42, %v4981_v4  ;;  %v5337_v43 = vcombine.high %v4871_v42, %v4981_v4  ;;  %v5276_v16 = vrot.slane %v5268_v54, %v11285_v40  ;;  %v5283_v53 = vrot.slane %v5269_v1, %v11285_v40 }
 0x5e7   :  { %v10393_v26 = vrot.slane %v5472_v13, %v11285_v40  ;;  %v10396_v22 = vrot.slane %v5473_v34, %v11285_v40 }
 0x5e8   :  { %v10399_v48 = vrot.slane %v5336_v25, %v11285_v40  ;;  %v10402_v12 = vrot.slane %v5337_v43, %v11285_v40 }
 0x60f   :  { %v7547_v14 = vpop.f32.mrb[36].mxu1 }
 0x610   :  { %v4923_v55 = vpop.f32.mrb[37].mxu1 }
 0x611   :  { %v10376_v44 = vpop.f32.mrb[38].mxu1 }
 0x612   :  { %v10378_v38 = vpop.f32.mrb[39].mxu1 }
 0x613   :  { %v10380_v10 = vpop.f32.mrb[52].mxu0 }
 0x614   :  { %v10382_v39 = vpop.f32.mrb[53].mxu0 }
 0x615   :  { %v10384_v46 = vpop.f32.mrb[54].mxu0 }
 0x616   :  { %v10386_v15 = vpop.f32.mrb[55].mxu0 }
 0x62d   :  { %v7563_v11 = vpop.f32.mrb[40].mxu1 }
 0x62e   :  { %v5420_v35 = vcombine.low %v7547_v14, %v7563_v11  ;;  %v5421_v50 = vcombine.high %v7547_v14, %v7563_v11  ;;  %v5033_v17 = vpop.f32.mrb[41].mxu1 }
 0x62f   :  { %v5284_v6 = vcombine.low %v4923_v55, %v5033_v17  ;;  %v5285_v8 = vcombine.high %v4923_v55, %v5033_v17  ;;  %v7564_v2 = vpop.f32.mrb[42].mxu1 }
 0x630   :  { %v5428_v3 = vrot.slane %v5420_v35, %v11285_v40  ;;  %v5435_v52 = vrot.slane %v5421_v50, %v11285_v40  ;;  %v5488_v18 = vcombine.low %v10376_v44, %v7564_v2  ;;  %v5489_v41 = vcombine.high %v10376_v44, %v7564_v2  ;;  %v5036_v60 = vpop.f32.mrb[43].mxu1 }
 0x631   :  { %v5292_v45 = vrot.slane %v5284_v6, %v11285_v40  ;;  %v5299_v56 = vrot.slane %v5285_v8, %v11285_v40  ;;  %v5352_v27 = vcombine.low %v10378_v38, %v5036_v60  ;;  %v5353_v9 = vcombine.high %v10378_v38, %v5036_v60 }
 0x632   :  { %v5436_v5 = vcombine.low %v5412_v0, %v5428_v3  ;;  %v5437_v47 = vcombine.high %v5412_v0, %v5428_v3  ;;  %v5452_v61 = vcombine.low %v5419_v58, %v5435_v52  ;;  %v5453_v21 = vcombine.high %v5419_v58, %v5435_v52 }
 0x633   :  { %v5300_v42 = vcombine.low %v5276_v16, %v5292_v45  ;;  %v5301_v33 = vcombine.high %v5276_v16, %v5292_v45  ;;  %v5316_v49 = vcombine.low %v5283_v53, %v5299_v56  ;;  %v5317_v28 = vcombine.high %v5283_v53, %v5299_v56 }
 0x634   :  { %v5444_v37 = vrot.slane %v5436_v5, %v8457_v7  ;;  %v5451_v54 = vrot.slane %v5437_v47, %v8457_v7  ;;  %v5460_v1 = vrot.slane %v5452_v61, %v8457_v7  ;;  %v5467_v36 = vrot.slane %v5453_v21, %v8457_v7 }
 0x635   :  { %v5308_v13 = vrot.slane %v5300_v42, %v8457_v7  ;;  %v5315_v34 = vrot.slane %v5301_v33, %v8457_v7  ;;  %v5324_v4 = vrot.slane %v5316_v49, %v8457_v7  ;;  %v5331_v25 = vrot.slane %v5317_v28, %v8457_v7  ;;  %v10420_v43 = vpop.f32.mrb[44].mxu1 }
 0x636   :  { %v5948_v59 = vcombine.low %v5444_v37, %v5451_v54  ;;  %v7303_v63 = vcombine.high %v5444_v37, %v5451_v54  ;;  %v5964_v23 = vcombine.low %v5460_v1, %v5467_v36  ;;  %v7304_v24 = vcombine.high %v5460_v1, %v5467_v36  ;;  %v10422_v62 = vpop.f32.mrb[45].mxu1 }
 0x637   :  { %v5812_v19 = vcombine.low %v5308_v13, %v5315_v34  ;;  %v7299_v57 = vcombine.high %v5308_v13, %v5315_v34  ;;  %v5828_v32 = vcombine.low %v5324_v4, %v5331_v25  ;;  %v7300_v20 = vcombine.high %v5324_v4, %v5331_v25  ;;  %v10424_v51 = vpop.f32.mrb[46].mxu1 }
 0x638   :  { %v10427_v31 = vrot.slane %v5948_v59, %v11285_v40  ;;  %v10430_v30 = vrot.slane %v7303_v63, %v11285_v40  ;;  %v10433_v29 = vrot.slane %v5964_v23, %v11285_v40  ;;  %v10436_v14 = vrot.slane %v7304_v24, %v11285_v40  ;;  %v10438_v55 = vpop.f32.mrb[47].mxu1 }
 0x639   :  { %v10441_v44 = vrot.slane %v5812_v19, %v11285_v40  ;;  %v10444_v38 = vrot.slane %v7299_v57, %v11285_v40  ;;  %v10447_v0 = vrot.slane %v5828_v32, %v11285_v40  ;;  %v10450_v58 = vrot.slane %v7300_v20, %v11285_v40 }
 0x63a   :  { %v5496_v16 = vrot.slane %v5488_v18, %v11285_v40  ;;  %v5503_v53 = vrot.slane %v5489_v41, %v11285_v40  ;;  %v5360_v11 = vrot.slane %v5352_v27, %v11285_v40  ;;  %v5367_v35 = vrot.slane %v5353_v9, %v11285_v40  ;;  %v7587_v50 = vpop.f32.mrb[56].mxu0 }
 0x63b   :  { %v5676_v17 = vcombine.low %v10380_v10, %v7587_v50  ;;  %v5677_v6 = vcombine.high %v10380_v10, %v7587_v50  ;;  %v5198_v8 = vpop.f32.mrb[57].mxu0  ;;  %v5845_v2 = vcombine.high %v10441_v44, %v10444_v38  ;;  %v5861_v3 = vcombine.high %v10447_v0, %v10450_v58 }
 0x63c   :  { %v5504_v52 = vcombine.low %v10393_v26, %v5496_v16  ;;  %v5505_v18 = vcombine.high %v10393_v26, %v5496_v16  ;;  %v5520_v41 = vcombine.low %v10396_v22, %v5503_v53  ;;  %v5521_v60 = vcombine.high %v10396_v22, %v5503_v53  ;;  %v7588_v45 = vpop.f32.mrb[58].mxu0 }
 0x63d   :  { %v5368_v56 = vcombine.low %v10399_v48, %v5360_v11  ;;  %v5369_v10 = vcombine.high %v10399_v48, %v5360_v11  ;;  %v5384_v27 = vcombine.low %v10402_v12, %v5367_v35  ;;  %v5385_v9 = vcombine.high %v10402_v12, %v5367_v35  ;;  %v5201_v5 = vpop.f32.mrb[59].mxu0 }
 0x63e   :  { %v5512_v47 = vrot.slane %v5504_v52, %v8457_v7  ;;  %v5519_v61 = vrot.slane %v5505_v18, %v8457_v7  ;;  %v5528_v26 = vrot.slane %v5520_v41, %v8457_v7  ;;  %v5535_v21 = vrot.slane %v5521_v60, %v8457_v7 }
 0x63f   :  { %v5376_v22 = vrot.slane %v5368_v56, %v8457_v7  ;;  %v5383_v42 = vrot.slane %v5369_v10, %v8457_v7  ;;  %v5392_v33 = vrot.slane %v5384_v27, %v8457_v7  ;;  %v5399_v48 = vrot.slane %v5385_v9, %v8457_v7 }
 0x640   :  { %v6016_v49 = vcombine.low %v5512_v47, %v5519_v61  ;;  %v7305_v28 = vcombine.high %v5512_v47, %v5519_v61  ;;  %v6032_v12 = vcombine.low %v5528_v26, %v5535_v21  ;;  %v7306_v37 = vcombine.high %v5528_v26, %v5535_v21 }
 0x641   :  { %v5880_v54 = vcombine.low %v5376_v22, %v5383_v42  ;;  %v7301_v1 = vcombine.high %v5376_v22, %v5383_v42  ;;  %v5896_v36 = vcombine.low %v5392_v33, %v5399_v48  ;;  %v7302_v13 = vcombine.high %v5392_v33, %v5399_v48 }
 0x642   :  { %v10479_v34 = vrot.slane %v6016_v49, %v11285_v40  ;;  %v10482_v4 = vrot.slane %v7305_v28, %v11285_v40  ;;  %v10485_v25 = vrot.slane %v6032_v12, %v11285_v40  ;;  %v10488_v59 = vrot.slane %v7306_v37, %v11285_v40 }
 0x643   :  { %v5887_v63 = vrot.slane %v5880_v54, %v11285_v40  ;;  %v5895_v23 = vrot.slane %v7301_v1, %v11285_v40  ;;  %v5903_v24 = vrot.slane %v5896_v36, %v11285_v40  ;;  %v5911_v19 = vrot.slane %v7302_v13, %v11285_v40 }
 0x644   :  { %v5684_v57 = vrot.slane %v5676_v17, %v11285_v40  ;;  %v5691_v32 = vrot.slane %v5677_v6, %v11285_v40  ;;  %v5540_v20 = vcombine.low %v10382_v39, %v5198_v8  ;;  %v5541_v16 = vcombine.high %v10382_v39, %v5198_v8  ;;  %v7595_v53 = vpop.f32.mrb[48].mxu1 }
 0x645   :  { %v5744_v11 = vcombine.low %v10384_v46, %v7588_v45  ;;  %v5745_v35 = vcombine.high %v10384_v46, %v7588_v45  ;;  %v5608_v50 = vcombine.low %v10386_v15, %v5201_v5  ;;  %v5609_v52 = vcombine.high %v10386_v15, %v5201_v5  ;;  %v10502_v18 = vpop.f32.mrb[49].mxu1 }
 0x646   :  { %v10505_v41 = vrot.slane %v5540_v20, %v11285_v40  ;;  %v10508_v17 = vrot.slane %v5541_v16, %v11285_v40  ;;  %v5692_v6 = vcombine.low %v10420_v43, %v7595_v53  ;;  %v5693_v39 = vcombine.high %v10420_v43, %v7595_v53  ;;  %v7596_v8 = vpop.f32.mrb[50].mxu1 }
 0x647   :  { %v10513_v60 = vrot.slane %v5744_v11, %v11285_v40  ;;  %v10516_v46 = vrot.slane %v5745_v35, %v11285_v40  ;;  %v10519_v15 = vrot.slane %v5608_v50, %v11285_v40  ;;  %v10522_v45 = vrot.slane %v5609_v52, %v11285_v40  ;;  %v5256_v56 = vpop.f32.mrb[51].mxu1 }
 0x648   :  { %v5700_v10 = vrot.slane %v5692_v6, %v11285_v40  ;;  %v5707_v27 = vrot.slane %v5693_v39, %v11285_v40  ;;  %v10527_v43 = vrot.slane %v5845_v2, %v8457_v7  ;;  %v10530_v9 = vrot.slane %v5861_v3, %v8457_v7 }
 0x649   :  { %v5913_v5 = vcombine.high %v5887_v63, %v5895_v23  ;;  %v5929_v47 = vcombine.high %v5903_v24, %v5911_v19  ;;  %v5844_v61 = vcombine.low %v10441_v44, %v10444_v38  ;;  %v5860_v26 = vcombine.low %v10447_v0, %v10450_v58  ;;  %v7727_v44 = vld [vmem:[%s11056_s3 + $0x30] sm:$0xff]   ;;  %v7728_v38 = vld [vmem:[%s11056_s3 + $0x78] sm:$0xff]  }
 0x64a   :  { %v5708_v21 = vcombine.low %v5684_v57, %v5700_v10  ;;  %v5709_v22 = vcombine.high %v5684_v57, %v5700_v10  ;;  %v5724_v42 = vcombine.low %v5691_v32, %v5707_v27  ;;  %v5725_v33 = vcombine.high %v5691_v32, %v5707_v27  ;;  %7424 = vmatpush3.bf16.msra.mxu0 %v7727_v44 }
 0x64b   :  { %v5879_v48 = vcombine.high %v10527_v43, %v10530_v9  ;;  %v10539_v2 = vrot.slane %v5913_v5, %v8457_v7  ;;  %v10542_v3 = vrot.slane %v5929_v47, %v8457_v7  ;;  %v10545_v49 = vrot.slane %v5844_v61, %v8457_v7  ;;  %7425 = vmatprep.subr.bf16.mxu0 %v7728_v38 }
 0x64c   :  { %v5716_v0 = vrot.slane %v5708_v21, %v8457_v7  ;;  %v5723_v58 = vrot.slane %v5709_v22, %v8457_v7  ;;  %v5732_v28 = vrot.slane %v5724_v42, %v8457_v7  ;;  %v5739_v12 = vrot.slane %v5725_v33, %v8457_v7 }
 0x64d   :  { %v5947_v37 = vcombine.high %v10539_v2, %v10542_v3  ;;  %v10560_v54 = vrot.slane %v5860_v26, %v8457_v7  ;;  %v5912_v1 = vcombine.low %v5887_v63, %v5895_v23  ;;  %v5928_v36 = vcombine.low %v5903_v24, %v5911_v19 }
 0x64e   :  { %v6220_v13 = vcombine.low %v5716_v0, %v5723_v58  ;;  %v7311_v57 = vcombine.high %v5716_v0, %v5723_v58  ;;  %v6236_v32 = vcombine.low %v5732_v28, %v5739_v12  ;;  %v7312_v20 = vcombine.high %v5732_v28, %v5739_v12 }
 0x64f   :  { %v7656_v16 = vpack.i.bf16 %v5947_v37, %v5879_v48  ;;  %v5877_v53 = vcombine.high %v10545_v49, %v10560_v54  ;;  %v10565_v11 = vrot.slane %v5912_v1, %v8457_v7  ;;  %v10568_v35 = vrot.slane %v5928_v36, %v8457_v7 }
 0x650   :  { %v10571_v50 = vrot.slane %v6220_v13, %v11285_v40  ;;  %v10574_v63 = vrot.slane %v7311_v57, %v11285_v40  ;;  %v10577_v23 = vrot.slane %v6236_v32, %v11285_v40  ;;  %v10580_v24 = vrot.slane %v7312_v20, %v11285_v40  ;;  %v7729_v32 = vld [vmem:[%s11056_s3 + $0x38] sm:$0xff]  }
 0x651   :  { %7657 = vrot.lane.b32.xlu0 %v7656_v16, %s7965_s2  ;;  %v5945_v19 = vcombine.high %v10565_v11, %v10568_v35  ;;  %v5556_v52 = vcombine.low %v10422_v62, %v10502_v18  ;;  %v5557_v6 = vcombine.high %v10422_v62, %v10502_v18  ;;  %v5760_v39 = vcombine.low %v10424_v51, %v7596_v8 }
 0x652   :  { %v5761_v10 = vcombine.high %v10424_v51, %v7596_v8  ;;  %v5624_v27 = vcombine.low %v10438_v55, %v5256_v56  ;;  %v5625_v5 = vcombine.high %v10438_v55, %v5256_v56  ;;  %v5981_v47 = vcombine.high %v10427_v31, %v10430_v30  ;;  %7426 = vmatpush3.bf16.msra.mxu0 %v7729_v32 }
 0x653   :  { %v7661_v61 = vpack.i.bf16 %v5945_v19, %v5877_v53  ;;  %v5564_v26 = vrot.slane %v5556_v52, %v11285_v40  ;;  %v5571_v21 = vrot.slane %v5557_v6, %v11285_v40  ;;  %v5768_v22 = vrot.slane %v5760_v39, %v11285_v40 }
 0x654   :  { %v5775_v62 = vrot.slane %v5761_v10, %v11285_v40  ;;  %v5632_v18 = vrot.slane %v5624_v27, %v11285_v40  ;;  %v5639_v51 = vrot.slane %v5625_v5, %v11285_v40  ;;  %v10602_v8 = vrot.slane %v5981_v47, %v8457_v7 }
 0x655   :  { %7662 = vrot.lane.b32.xlu1 %v7661_v61, %s7965_s2  ;;  %v5572_v55 = vcombine.low %v10505_v41, %v5564_v26  ;;  %v5573_v56 = vcombine.high %v10505_v41, %v5564_v26  ;;  %v5588_v42 = vcombine.low %v10508_v17, %v5571_v21  ;;  %v5589_v33 = vcombine.high %v10508_v17, %v5571_v21 }
 0x656   :  { %v5776_v48 = vcombine.low %v10513_v60, %v5768_v22  ;;  %v5777_v44 = vcombine.high %v10513_v60, %v5768_v22  ;;  %v5792_v38 = vcombine.low %v10516_v46, %v5775_v62  ;;  %v5793_v0 = vcombine.high %v10516_v46, %v5775_v62 }
 0x657   :  { %v5580_v58 = vrot.slane %v5572_v55, %v8457_v7  ;;  %v5587_v28 = vrot.slane %v5573_v56, %v8457_v7  ;;  %v5596_v12 = vrot.slane %v5588_v42, %v8457_v7  ;;  %v5603_v41 = vrot.slane %v5589_v33, %v8457_v7 }
 0x658   :  { %v5784_v37 = vrot.slane %v5776_v48, %v8457_v7  ;;  %v5791_v17 = vrot.slane %v5777_v44, %v8457_v7  ;;  %v5800_v1 = vrot.slane %v5792_v38, %v8457_v7  ;;  %v5807_v60 = vrot.slane %v5793_v0, %v8457_v7 }
 0x659   :  { %v6084_v36 = vcombine.low %v5580_v58, %v5587_v28  ;;  %v7307_v13 = vcombine.high %v5580_v58, %v5587_v28  ;;  %v6100_v57 = vcombine.low %v5596_v12, %v5603_v41  ;;  %v7308_v46 = vcombine.high %v5596_v12, %v5603_v41 }
 0x65a   :  { %v6288_v20 = vcombine.low %v5784_v37, %v5791_v17  ;;  %v7313_v16 = vcombine.high %v5784_v37, %v5791_v17  ;;  %v6304_v53 = vcombine.low %v5800_v1, %v5807_v60  ;;  %v7314_v19 = vcombine.high %v5800_v1, %v5807_v60 }
 0x65b   :  { %v6091_v52 = vrot.slane %v6084_v36, %v11285_v40  ;;  %v6099_v6 = vrot.slane %v7307_v13, %v11285_v40  ;;  %v6107_v39 = vrot.slane %v6100_v57, %v11285_v40  ;;  %v6115_v10 = vrot.slane %v7308_v46, %v11285_v40 }
 0x65c   :  { %v10629_v27 = vrot.slane %v6288_v20, %v11285_v40  ;;  %v10632_v5 = vrot.slane %v7313_v16, %v11285_v40  ;;  %v10635_v47 = vrot.slane %v6304_v53, %v11285_v40  ;;  %v10638_v61 = vrot.slane %v7314_v19, %v11285_v40 }
 0x65d   :  { %v5640_v26 = vcombine.low %v10519_v15, %v5632_v18  ;;  %v5641_v21 = vcombine.high %v10519_v15, %v5632_v18  ;;  %v5656_v22 = vcombine.low %v10522_v45, %v5639_v51  ;;  %v5657_v62 = vcombine.high %v10522_v45, %v5639_v51 }
 0x65e   :  { %v5997_v55 = vcombine.high %v10433_v29, %v10436_v14  ;;  %v6049_v56 = vcombine.high %v10479_v34, %v10482_v4  ;;  %v6065_v42 = vcombine.high %v10485_v25, %v10488_v59  ;;  %v5980_v33 = vcombine.low %v10427_v31, %v10430_v30 }
 0x65f   :  { %v5648_v48 = vrot.slane %v5640_v26, %v8457_v7  ;;  %v5655_v15 = vrot.slane %v5641_v21, %v8457_v7  ;;  %v5664_v18 = vrot.slane %v5656_v22, %v8457_v7  ;;  %v5671_v45 = vrot.slane %v5657_v62, %v8457_v7 }
 0x660   :  { %v10657_v51 = vrot.slane %v5997_v55, %v8457_v7  ;;  %v10660_v44 = vrot.slane %v6049_v56, %v8457_v7  ;;  %v10663_v38 = vrot.slane %v6065_v42, %v8457_v7  ;;  %v10666_v0 = vrot.slane %v5980_v33, %v8457_v7 }
 0x661   :  { %v6152_v31 = vcombine.low %v5648_v48, %v5655_v15  ;;  %v7309_v30 = vcombine.high %v5648_v48, %v5655_v15  ;;  %v6168_v58 = vcombine.low %v5664_v18, %v5671_v45  ;;  %v7310_v28 = vcombine.high %v5664_v18, %v5671_v45 }
 0x662   :  { %v6015_v12 = vcombine.high %v10602_v8, %v10657_v51  ;;  %v6083_v41 = vcombine.high %v10660_v44, %v10663_v38  ;;  %v5996_v37 = vcombine.low %v10433_v29, %v10436_v14  ;;  %v6048_v17 = vcombine.low %v10479_v34, %v10482_v4 }
 0x663   :  { %v6159_v1 = vrot.slane %v6152_v31, %v11285_v40  ;;  %v6167_v60 = vrot.slane %v7309_v30, %v11285_v40  ;;  %v6175_v36 = vrot.slane %v6168_v58, %v11285_v40  ;;  %v6183_v13 = vrot.slane %v7310_v28, %v11285_v40 }
 0x664   :  { %v7666_v57 = vpack.i.bf16 %v6083_v41, %v6015_v12  ;;  %v10681_v46 = vrot.slane %v5996_v37, %v8457_v7  ;;  %v10684_v32 = vrot.slane %v6048_v17, %v8457_v7  ;;  %v6064_v29 = vcombine.low %v10485_v25, %v10488_v59 }
 0x665   :  { %v6117_v14 = vcombine.high %v6091_v52, %v6099_v6  ;;  %v6133_v34 = vcombine.high %v6107_v39, %v6115_v10  ;;  %v6185_v4 = vcombine.high %v6159_v1, %v6167_v60  ;;  %v6201_v20 = vcombine.high %v6175_v36, %v6183_v13 }
 0x666   :  { %7667 = vrot.lane.b32.xlu1 %v7666_v57, %s7965_s2  ;;  %v6013_v16 = vcombine.high %v10666_v0, %v10681_v46  ;;  %v10692_v40 = vrot.slane %v6064_v29, %v8457_v7  ;;  %v6116_v53 = vcombine.low %v6091_v52, %v6099_v6  ;;  %v6132_v19 = vcombine.low %v6107_v39, %v6115_v10 }
 0x667   :  { %v10695_v26 = vrot.slane %v6117_v14, %v8457_v7  ;;  %v10698_v21 = vrot.slane %v6133_v34, %v8457_v7  ;;  %v10701_v25 = vrot.slane %v6185_v4, %v8457_v7  ;;  %v10704_v59 = vrot.slane %v6201_v20, %v8457_v7 }
 0x668   :  { %v6081_v22 = vcombine.high %v10684_v32, %v10692_v40  ;;  %v10709_v62 = vrot.slane %v6116_v53, %v8457_v7  ;;  %v10712_v52 = vrot.slane %v6132_v19, %v8457_v7  ;;  %v6184_v6 = vcombine.low %v6159_v1, %v6167_v60 }
 0x669   :  { %v6151_v39 = vcombine.high %v10695_v26, %v10698_v21  ;;  %v6219_v10 = vcombine.high %v10701_v25, %v10704_v59  ;;  %v6200_v55 = vcombine.low %v6175_v36, %v6183_v13  ;;  %v6253_v56 = vcombine.high %v10571_v50, %v10574_v63 }
 0x66a   :  { %v7671_v42 = vpack.i.bf16 %v6081_v22, %v6013_v16  ;;  %v6149_v33 = vcombine.high %v10709_v62, %v10712_v52  ;;  %v10723_v48 = vrot.slane %v6184_v6, %v8457_v7  ;;  %v6269_v15 = vcombine.high %v10577_v23, %v10580_v24 }
 0x66b   :  { %v7676_v18 = vpack.i.bf16 %v6219_v10, %v6151_v39  ;;  %v10728_v45 = vrot.slane %v6200_v55, %v8457_v7  ;;  %v10731_v31 = vrot.slane %v6253_v56, %v8457_v7  ;;  %v6321_v30 = vcombine.high %v10629_v27, %v10632_v5 }
 0x66c   :  { %7672 = vrot.lane.b32.xlu1 %v7671_v42, %s7965_s2  ;;  %v10737_v58 = vrot.slane %v6269_v15, %v8457_v7  ;;  %v6337_v28 = vcombine.high %v10635_v47, %v10638_v61  ;;  %v6252_v12 = vcombine.low %v10571_v50, %v10574_v63  ;;  %v6268_v41 = vcombine.low %v10577_v23, %v10580_v24 }
 0x66d   :  { %7677 = vrot.lane.b32.xlu0 %v7676_v18, %s7965_s2  ;;  %v6217_v37 = vcombine.high %v10723_v48, %v10728_v45  ;;  %v10749_v17 = vrot.slane %v6321_v30, %v8457_v7  ;;  %v6320_v1 = vcombine.low %v10629_v27, %v10632_v5  ;;  %v6336_v60 = vcombine.low %v10635_v47, %v10638_v61 }
 0x66e   :  { %v6287_v50 = vcombine.high %v10731_v31, %v10737_v58  ;;  %v10758_v63 = vrot.slane %v6337_v28, %v8457_v7  ;;  %v10761_v23 = vrot.slane %v6252_v12, %v8457_v7  ;;  %v10764_v24 = vrot.slane %v6268_v41, %v8457_v7 }
 0x66f   :  { %v7681_v36 = vpack.i.bf16 %v6217_v37, %v6149_v33  ;;  %v10767_v13 = vrot.slane %v6320_v1, %v8457_v7  ;;  %v10770_v27 = vrot.slane %v6336_v60, %v8457_v7  ;;  %v5876_v5 = vcombine.low %v10545_v49, %v10560_v54 }
 0x670   :  { %v6355_v47 = vcombine.high %v10749_v17, %v10758_v63  ;;  %v6285_v61 = vcombine.high %v10761_v23, %v10764_v24  ;;  %v5944_v57 = vcombine.low %v10565_v11, %v10568_v35  ;;  %v5878_v29 = vcombine.low %v10527_v43, %v10530_v9 }
 0x671   :  { %7682 = vrot.lane.b32.xlu1 %v7681_v36, %s7965_s2  ;;  %v6353_v7 = vcombine.high %v10767_v13, %v10770_v27  ;;  %v5946_v49 = vcombine.low %v10539_v2, %v10542_v3  ;;  %v6014_v54 = vcombine.low %v10602_v8, %v10657_v51  ;;  %v6082_v14 = vcombine.low %v10660_v44, %v10663_v38 }
 0x672   :  { %v7686_v34 = vpack.i.bf16 %v6355_v47, %v6287_v50  ;;  %v6012_v11 = vcombine.low %v10666_v0, %v10681_v46  ;;  %v6080_v43 = vcombine.low %v10684_v32, %v10692_v40  ;;  %v6150_v9 = vcombine.low %v10695_v26, %v10698_v21 }
 0x673   :  { %v7691_v35 = vpack.i.bf16 %v6353_v7, %v6285_v61  ;;  %v6218_v2 = vcombine.low %v10701_v25, %v10704_v59  ;;  %v6148_v3 = vcombine.low %v10709_v62, %v10712_v52  ;;  %v6216_v8 = vcombine.low %v10723_v48, %v10728_v45 }
 0x674   :  { %7687 = vrot.lane.b32.xlu0 %v7686_v34, %s7965_s2  ;;  %v6286_v51 = vcombine.low %v10731_v31, %v10737_v58  ;;  %v6354_v44 = vcombine.low %v10749_v17, %v10758_v63  ;;  %v6284_v38 = vcombine.low %v10761_v23, %v10764_v24  ;;  %v6352_v0 = vcombine.low %v10767_v13, %v10770_v27 }
 0x675   :  { %7692 = vrot.lane.b32.xlu1 %v7691_v35, %s7965_s2  ;;  %v7933_v35 = vld [vmem:[%s11053_s0 + $0x8] sm:$0xff] }
 0x6c3   :  { %v7658_v46 = vpop.permute.xlu0 %7657 }
 0x6c4   :  { %v7660_v32 = vunpack.i.h.bf16 %v7658_v46  ;;  %v7659_v4 = vunpack.i.l.bf16 %v7658_v46 }
 0x6c6   :  { %v6428_v20 = vsel %vm3971_vm1, %v5878_v29, %v7659_v4  ;;  %v6429_v16 = vsel %vm3971_vm1, %v5946_v49, %v7660_v32  ;;  %v7934_v32 = vld [vmem:[%s11053_s0 + $0x10] sm:$0xff] }
 0x6c7   :  { %v7663_v40 = vpop.permute.xlu1 %7662  ;;  %v6437_v53 = vpack.c.bf16 %v6429_v16, %v6428_v20  ;;  %v7935_v16 = vld [vmem:[%s11053_s0 + $0x18] sm:$0xff] }
 0x6c8   :  { %v7665_v19 = vunpack.i.h.bf16 %v7663_v40  ;;  %v7664_v26 = vunpack.i.l.bf16 %v7663_v40 }
 0x6c9   :  { %6604 = vmatprep.mubr.bf16.mxu0 %v6437_v53 }
 0x6ca   :  { %v6420_v21 = vsel %vm3971_vm1, %v5876_v5, %v7664_v26  ;;  %v6421_v25 = vsel %vm3971_vm1, %v5944_v57, %v7665_v19 }
 0x6cb   :  { %v6436_v59 = vpack.c.bf16 %v6421_v25, %v6420_v21 }
 0x6cd   :  { %6605 = vmatmul.mubr.bf16.vlgmr.msra.gmra.mrb[60].mxu0 %v6436_v59 }
 0x6d8   :  { %v7668_v22 = vpop.permute.xlu1 %7667 }
 0x6d9   :  { %v7670_v62 = vunpack.i.h.bf16 %v7668_v22  ;;  %v7669_v52 = vunpack.i.l.bf16 %v7668_v22 }
 0x6db   :  { %v6430_v6 = vsel %vm3971_vm1, %v6014_v54, %v7669_v52  ;;  %v6431_v39 = vsel %vm3971_vm1, %v6082_v14, %v7670_v62  ;;  %v7936_v62 = vld [vmem:[%s11053_s0 + $0x20] sm:$0xff] }
 0x6dc   :  { %v6439_v10 = vpack.c.bf16 %v6431_v39, %v6430_v6  ;;  %v7937_v39 = vld [vmem:[%s11053_s0 + $0x28] sm:$0xff] }
 0x6de   :  { %v7673_v55 = vpop.permute.xlu1 %7672  ;;  %6612 = vmatprep.mubr.bf16.mxu0 %v6439_v10 }
 0x6df   :  { %v7675_v56 = vunpack.i.h.bf16 %v7673_v55  ;;  %v7674_v42 = vunpack.i.l.bf16 %v7673_v55  ;;  %v7678_v33 = vpop.permute.xlu0 %7677 }
 0x6e0   :  { %v7680_v48 = vunpack.i.h.bf16 %v7678_v33  ;;  %v7679_v15 = vunpack.i.l.bf16 %v7678_v33 }
 0x6e1   :  { %v6422_v18 = vsel %vm3971_vm1, %v6012_v11, %v7674_v42  ;;  %v6423_v45 = vsel %vm3971_vm1, %v6080_v43, %v7675_v56  ;;  %v7932_v11 = vld [vmem:[%s11053_s0] sm:$0xff] }
 0x6e2   :  { %v6438_v31 = vpack.c.bf16 %v6423_v45, %v6422_v18  ;;  %v6432_v30 = vsel %vm3971_vm1, %v6150_v9, %v7679_v15  ;;  %v6433_v58 = vsel %vm3971_vm1, %v6218_v2, %v7680_v48  ;;  %v7938_v45 = vld [vmem:[%s11053_s0 + $0x30] sm:$0xff] }
 0x6e3   :  { %v7683_v28 = vpop.permute.xlu1 %7682  ;;  %v6441_v12 = vpack.c.bf16 %v6433_v58, %v6432_v30  ;;  %v7939_v58 = vld [vmem:[%s11053_s0 + $0x38] sm:$0xff] }
 0x6e4   :  { %6613 = vmatmul.mubr.bf16.gmra.mrb[64].mxu0 %v6438_v31  ;;  %v7685_v41 = vunpack.i.h.bf16 %v7683_v28  ;;  %v7684_v37 = vunpack.i.l.bf16 %v7683_v28 }
 0x6e5   :  { %6620 = vmatprep.mubr.bf16.mxu0 %v6441_v12 }
 0x6e6   :  { %v7688_v17 = vpop.permute.xlu0 %7687  ;;  %v6424_v1 = vsel %vm3971_vm1, %v6148_v3, %v7684_v37  ;;  %v6425_v60 = vsel %vm3971_vm1, %v6216_v8, %v7685_v41 }
 0x6e7   :  { %v7693_v50 = vpop.permute.xlu1 %7692  ;;  %v7690_v63 = vunpack.i.h.bf16 %v7688_v17  ;;  %v7689_v23 = vunpack.i.l.bf16 %v7688_v17  ;;  %v6440_v24 = vpack.c.bf16 %v6425_v60, %v6424_v1 }
 0x6e8   :  { %v7695_v36 = vunpack.i.h.bf16 %v7693_v50  ;;  %v7694_v13 = vunpack.i.l.bf16 %v7693_v50 }
 0x6e9   :  { %v6434_v27 = vsel %vm3971_vm1, %v6286_v51, %v7689_v23  ;;  %v6435_v5 = vsel %vm3971_vm1, %v6354_v44, %v7690_v63 }
 0x6ea   :  { %v6443_v47 = vpack.c.bf16 %v6435_v5, %v6434_v27  ;;  %v6426_v61 = vsel %vm3971_vm1, %v6284_v38, %v7694_v13  ;;  %v6427_v57 = vsel %vm3971_vm1, %v6352_v0, %v7695_v36 }
 0x6eb   :  { %v6442_v29 = vpack.c.bf16 %v6427_v57, %v6426_v61 }
 0x6ec   :  { %6621 = vmatmul.mubr.bf16.gmra.mrb[68].mxu0 %v6440_v24 }
 0x6ed   :  { %6628 = vmatprep.mubr.bf16.mxu0 %v6443_v47 }
 0x6f4   :  { %6629 = vmatmul.mubr.bf16.gmra.mrb[72].mxu0 %v6442_v29 }
 0x7a0   :  { %v7427_v7 = vpop.f32.mrb[60].mxu0 }
 0x7a1   :  { %v7428_v49 = vpop.f32.mrb[61].mxu0 }
 0x7a2   :  { %v7429_v54 = vadd.f32 %v7428_v49, %v7427_v7  ;;  %v7430_v14 = vpop.f32.mrb[62].mxu0 }
 0x7a3   :  { %v7431_v34 = vpop.f32.mrb[63].mxu0 }
 0x7a4   :  { %v10832_v43 = vadd.f32 %v7932_v11, %v7429_v54  ;;  %v7432_v9 = vadd.f32 %v7431_v34, %v7430_v14 }
 0x7a6   :  { %v10837_v2 = vadd.f32 %v7933_v35, %v7432_v9  ;;  %v6646_v3 = vsel %vm40_vm0, %v10832_v43, 0.0 }
 0x7a7   :  { %6647 = vadd.xlane.f32.xlu0 %v6646_v3 }
 0x7a8   :  { %v6649_v8 = vsel %vm40_vm0, %v10837_v2, 0.0 }
 0x7a9   :  { %6650 = vadd.xlane.f32.xlu1 %v6649_v8 }
 0x7b7   :  { %v7433_v51 = vpop.f32.mrb[64].mxu0 }
 0x7b8   :  { %v7434_v44 = vpop.f32.mrb[65].mxu0 }
 0x7b9   :  { %v7435_v38 = vadd.f32 %v7434_v44, %v7433_v51  ;;  %v7436_v0 = vpop.f32.mrb[66].mxu0 }
 0x7ba   :  { %v7437_v46 = vpop.f32.mrb[67].mxu0 }
 0x7bb   :  { %v10846_v4 = vadd.f32 %v7934_v32, %v7435_v38  ;;  %v7438_v20 = vadd.f32 %v7437_v46, %v7436_v0 }
 0x7bd   :  { %v10851_v40 = vadd.f32 %v7935_v16, %v7438_v20  ;;  %v6652_v53 = vsel %vm40_vm0, %v10846_v4, 0.0 }
 0x7be   :  { %6653 = vadd.xlane.f32.xlu0 %v6652_v53 }
 0x7bf   :  { %v7439_v19 = vpop.f32.mrb[68].mxu0  ;;  %v6655_v21 = vsel %vm40_vm0, %v10851_v40, 0.0 }
 0x7c0   :  { %v7440_v26 = vpop.f32.mrb[69].mxu0 }
 0x7c1   :  { %v7441_v25 = vadd.f32 %v7440_v26, %v7439_v19  ;;  %v7442_v59 = vpop.f32.mrb[70].mxu0 }
 0x7c2   :  { %6656 = vadd.xlane.f32.xlu0 %v6655_v21  ;;  %v7443_v22 = vpop.f32.mrb[71].mxu0 }
 0x7c3   :  { %v10860_v52 = vadd.f32 %v7936_v62, %v7441_v25  ;;  %v7444_v6 = vadd.f32 %v7443_v22, %v7442_v59  ;;  %v7730_v22 = vld [vmem:[%s11058_s5] sm:$0xff]   ;;  %v7731_v62 = vld [vmem:[%s11058_s5 + $0x8] sm:$0xff]  }
 0x7c4   :  { %7597 = vmatprep.subr.bf16.mxu1 %v7730_v22 }
 0x7c5   :  { %v10865_v10 = vadd.f32 %v7937_v39, %v7444_v6  ;;  %v6658_v55 = vsel %vm40_vm0, %v10860_v52, 0.0  ;;  %7598 = vmatpush3.bf16.msra.mxu1 %v7730_v22 }
 0x7c6   :  { %6659 = vadd.xlane.f32.xlu0 %v6658_v55  ;;  %7599 = vmatprep.subr.bf16.mxu1 %v7731_v62 }
 0x7c7   :  { %v7445_v56 = vpop.f32.mrb[72].mxu0  ;;  %v6661_v42 = vsel %vm40_vm0, %v10865_v10, 0.0 }
 0x7c8   :  { %v7446_v33 = vpop.f32.mrb[73].mxu0  ;;  %6662 = vadd.xlane.f32.xlu1 %v6661_v42 }
 0x7c9   :  { %v7447_v48 = vadd.f32 %v7446_v33, %v7445_v56  ;;  %v7448_v15 = vpop.f32.mrb[74].mxu0  ;;  %7600 = vmatpush3.bf16.msra.mxu1 %v7731_v62 }
 0x7ca   :  { %v7449_v18 = vpop.f32.mrb[75].mxu0 }
 0x7cb   :  { %v10874_v31 = vadd.f32 %v7938_v45, %v7447_v48  ;;  %v7450_v30 = vadd.f32 %v7449_v18, %v7448_v15  ;;  %v7331_v45 = vld [vmem:[%s11057_s4] ss:$0 sm:$0xff] }
 0x7cd   :  { %v10879_v28 = vadd.f32 %v7939_v58, %v7450_v30  ;;  %v6664_v12 = vsel %vm40_vm0, %v10874_v31, 0.0 }
 0x7ce   :  { %6665 = vadd.xlane.f32.xlu0 %v6664_v12 }
 0x7cf   :  { %v6667_v41 = vsel %vm40_vm0, %v10879_v28, 0.0 }
 0x7d0   :  { %6668 = vadd.xlane.f32.xlu1 %v6667_v41 }
 0x834   :  { %v6648_v37 = vpop.xlane.xlu0 %6647 }
 0x835   :  { %v6670_v17 = vmul.f32 0.03125, %v6648_v37 }
 0x836   :  { %v6651_v1 = vpop.xlane.xlu1 %6650 }
 0x837   :  { %v6678_v60 = vsub.f32 %v10832_v43, %v6670_v17  ;;  %v6671_v50 = vmul.f32 0.03125, %v6651_v1 }
 0x839   :  { %v6679_v63 = vsub.f32 %v10837_v2, %v6671_v50  ;;  %v6686_v23 = vmul.f32 %v6678_v60, %v6678_v60 }
 0x83b   :  { %v6694_v24 = vsel %vm40_vm0, %v6686_v23, 0.0  ;;  %v6687_v36 = vmul.f32 %v6679_v63, %v6679_v63 }
 0x83c   :  { %6695 = vadd.xlane.f32.xlu0 %v6694_v24 }
 0x83d   :  { %v6697_v13 = vsel %vm40_vm0, %v6687_v36, 0.0 }
 0x83e   :  { %6698 = vadd.xlane.f32.xlu1 %v6697_v13 }
 0x84b   :  { %v6654_v27 = vpop.xlane.xlu0 %6653 }
 0x84c   :  { %v6672_v5 = vmul.f32 0.03125, %v6654_v27 }
 0x84e   :  { %v10890_v47 = vsub.f32 %v10846_v4, %v6672_v5 }
 0x84f   :  { %v6657_v61 = vpop.xlane.xlu0 %6656 }
 0x850   :  { %v6673_v57 = vmul.f32 0.03125, %v6657_v61  ;;  %v6688_v29 = vmul.f32 %v10890_v47, %v10890_v47 }
 0x852   :  { %v10895_v7 = vsub.f32 %v10851_v40, %v6673_v57  ;;  %v6700_v49 = vsel %vm40_vm0, %v6688_v29, 0.0 }
 0x853   :  { %6701 = vadd.xlane.f32.xlu0 %v6700_v49  ;;  %v6660_v54 = vpop.xlane.xlu0 %6659 }
 0x854   :  { %v6689_v14 = vmul.f32 %v10895_v7, %v10895_v7  ;;  %v6674_v34 = vmul.f32 0.03125, %v6660_v54 }
 0x855   :  { %v6663_v11 = vpop.xlane.xlu1 %6662 }
 0x856   :  { %v6703_v9 = vsel %vm40_vm0, %v6689_v14, 0.0  ;;  %v10902_v35 = vsub.f32 %v10860_v52, %v6674_v34  ;;  %v6675_v3 = vmul.f32 0.03125, %v6663_v11 }
 0x857   :  { %6704 = vadd.xlane.f32.xlu1 %v6703_v9 }
 0x858   :  { %v10905_v8 = vsub.f32 %v10865_v10, %v6675_v3  ;;  %v6690_v51 = vmul.f32 %v10902_v35, %v10902_v35 }
 0x85a   :  { %v6706_v44 = vsel %vm40_vm0, %v6690_v51, 0.0  ;;  %v6691_v38 = vmul.f32 %v10905_v8, %v10905_v8 }
 0x85b   :  { %6707 = vadd.xlane.f32.xlu0 %v6706_v44  ;;  %v6666_v0 = vpop.xlane.xlu0 %6665 }
 0x85c   :  { %v6676_v46 = vmul.f32 0.03125, %v6666_v0  ;;  %v6709_v32 = vsel %vm40_vm0, %v6691_v38, 0.0 }
 0x85d   :  { %v6669_v20 = vpop.xlane.xlu1 %6668  ;;  %6710 = vadd.xlane.f32.xlu1 %v6709_v32 }
 0x85e   :  { %v10914_v16 = vsub.f32 %v10874_v31, %v6676_v46  ;;  %v6677_v53 = vmul.f32 0.03125, %v6669_v20 }
 0x860   :  { %v10917_v19 = vsub.f32 %v10879_v28, %v6677_v53  ;;  %v6692_v26 = vmul.f32 %v10914_v16, %v10914_v16 }
 0x862   :  { %v6712_v21 = vsel %vm40_vm0, %v6692_v26, 0.0  ;;  %v6693_v25 = vmul.f32 %v10917_v19, %v10917_v19 }
 0x863   :  { %6713 = vadd.xlane.f32.xlu0 %v6712_v21 }
 0x864   :  { %v6715_v59 = vsel %vm40_vm0, %v6693_v25, 0.0 }
 0x865   :  { %6716 = vadd.xlane.f32.xlu1 %v6715_v59 }
 0x8c9   :  { %v6696_v6 = vpop.xlane.xlu0 %6695 }
 0x8ca   :  { %v6718_v39 = vmul.f32 0.03125, %v6696_v6 }
 0x8cb   :  { %v6699_v55 = vpop.xlane.xlu1 %6698 }
 0x8cc   :  { %v6726_v56 = vadd.f32 1e-05, %v6718_v39  ;;  %v6719_v42 = vmul.f32 0.03125, %v6699_v55 }
 0x8ce   :  { %7884 = vrsqrt.f32 %v6726_v56  ;;  %v6727_v33 = vadd.f32 1e-05, %v6719_v42 }
 0x8d0   :  { %7886 = vrsqrt.f32 %v6727_v33 }
 0x8d8   :  { %v7885_v48 = vpop.eup %7884 }
 0x8d9   :  { %v6742_v15 = vmul.f32 %v7885_v48, %v6678_v60 }
 0x8da   :  { %v7887_v18 = vpop.eup %7886 }
 0x8db   :  { %v6743_v30 = vmul.f32 %v7887_v18, %v6679_v63  ;;  %v6756_v58 = vmul.f32 %v7331_v45, %v6742_v15 }
 0x8dd   :  { %v6757_v12 = vmul.f32 %v7331_v45, %v6743_v30 }
 0x8df   :  { %v6764_v41 = vpack.c.bf16 %v6757_v12, %v6756_v58 }
 0x8e0   :  { %v6702_v37 = vpop.xlane.xlu0 %6701 }
 0x8e1   :  { %v6720_v17 = vmul.f32 0.03125, %v6702_v37  ;;  %7601 = vmatprep.mubr.msk.bf16.mxu1 %vm40_vm0, %v6764_v41 }
 0x8e3   :  { %v6728_v1 = vadd.f32 1e-05, %v6720_v17 }
 0x8e4   :  { %v6705_v50 = vpop.xlane.xlu1 %6704 }
 0x8e5   :  { %7888 = vrsqrt.f32 %v6728_v1  ;;  %v6721_v23 = vmul.f32 0.03125, %v6705_v50 }
 0x8e7   :  { %v6729_v24 = vadd.f32 1e-05, %v6721_v23 }
 0x8e8   :  { %v6708_v36 = vpop.xlane.xlu0 %6707 }
 0x8e9   :  { %7890 = vrsqrt.f32 %v6729_v24  ;;  %v6722_v60 = vmul.f32 0.03125, %v6708_v36 }
 0x8ea   :  { %v6711_v13 = vpop.xlane.xlu1 %6710 }
 0x8eb   :  { %v6730_v27 = vadd.f32 1e-05, %v6722_v60  ;;  %v6723_v5 = vmul.f32 0.03125, %v6711_v13 }
 0x8ed   :  { %7892 = vrsqrt.f32 %v6730_v27  ;;  %v6731_v63 = vadd.f32 1e-05, %v6723_v5 }
 0x8ef   :  { %v7889_v61 = vpop.eup %7888  ;;  %7894 = vrsqrt.f32 %v6731_v63 }
 0x8f0   :  { %v6714_v57 = vpop.xlane.xlu0 %6713  ;;  %v6744_v49 = vmul.f32 %v7889_v61, %v10890_v47 }
 0x8f1   :  { %v6724_v29 = vmul.f32 0.03125, %v6714_v57 }
 0x8f2   :  { %v6717_v54 = vpop.xlane.xlu1 %6716  ;;  %v6758_v51 = vmul.f32 %v7331_v45, %v6744_v49 }
 0x8f3   :  { %v7891_v14 = vpop.eup %7890  ;;  %v6732_v34 = vadd.f32 1e-05, %v6724_v29  ;;  %v6725_v11 = vmul.f32 0.03125, %v6717_v54 }
 0x8f4   :  { %v6745_v9 = vmul.f32 %v7891_v14, %v10895_v7 }
 0x8f5   :  { %7896 = vrsqrt.f32 %v6732_v34  ;;  %v6733_v3 = vadd.f32 1e-05, %v6725_v11 }
 0x8f6   :  { %v6759_v44 = vmul.f32 %v7331_v45, %v6745_v9 }
 0x8f7   :  { %v7893_v38 = vpop.eup %7892  ;;  %7898 = vrsqrt.f32 %v6733_v3 }
 0x8f8   :  { %v6765_v0 = vpack.c.bf16 %v6759_v44, %v6758_v51  ;;  %v6746_v46 = vmul.f32 %v7893_v38, %v10902_v35 }
 0x8f9   :  { %v7895_v32 = vpop.eup %7894 }
 0x8fa   :  { %7602 = vmatmul.mubr.msk.bf16.vlgmr.msra.gmra.mrb[52].mxu1 %vm40_vm0, %v6765_v0  ;;  %v6747_v47 = vmul.f32 %v7895_v32, %v10905_v8  ;;  %v6760_v20 = vmul.f32 %v7331_v45, %v6746_v46 }
 0x8fc   :  { %v6761_v53 = vmul.f32 %v7331_v45, %v6747_v47 }
 0x8fe   :  { %v6766_v26 = vpack.c.bf16 %v6761_v53, %v6760_v20 }
 0x8ff   :  { %v7897_v21 = vpop.eup %7896 }
 0x900   :  { %7605 = vmatprep.mubr.msk.bf16.mxu1 %vm40_vm0, %v6766_v26  ;;  %v6748_v7 = vmul.f32 %v7897_v21, %v10914_v16 }
 0x901   :  { %v7899_v25 = vpop.eup %7898 }
 0x902   :  { %v6749_v59 = vmul.f32 %v7899_v25, %v10917_v19  ;;  %v6762_v22 = vmul.f32 %v7331_v45, %v6748_v7 }
 0x904   :  { %v6763_v62 = vmul.f32 %v7331_v45, %v6749_v59 }
 0x906   :  { %v6767_v6 = vpack.c.bf16 %v6763_v62, %v6762_v22 }
 0x908   :  { %7606 = vmatmul.mubr.msk.bf16.gmra.mrb[56].mxu1 %vm40_vm0, %v6767_v6 }
 0x9cd   :  { %v10944_v35 = vpop.f32.mrb[52].mxu1 }
 0x9ce   :  { %v6871_v8 = vmul.f32 0.044715, %v10944_v35  ;;  %v6830_v39 = vpop.f32.mrb[53].mxu1 }
 0x9cf   :  { %v6869_v55 = vmul.f32 0.044715, %v6830_v39  ;;  %v10947_v56 = vpop.f32.mrb[54].mxu1  ;;  %v6861_v53 = vmul.f32 0.5, %v6830_v39 }
 0x9d0   :  { %v6879_v42 = vmul.f32 %v10944_v35, %v6871_v8  ;;  %v6872_v16 = vmul.f32 0.044715, %v10947_v56  ;;  %v6833_v33 = vpop.f32.mrb[55].mxu1 }
 0x9d1   :  { %v6877_v48 = vmul.f32 %v6869_v55, %v6830_v39  ;;  %v6870_v19 = vmul.f32 0.044715, %v6833_v33  ;;  %v6862_v59 = vmul.f32 0.5, %v6833_v33 }
 0x9d2   :  { %v6887_v15 = vmul.f32 %v10944_v35, %v6879_v42  ;;  %v6880_v18 = vmul.f32 %v10947_v56, %v6872_v16  ;;  %v6863_v16 = vmul.f32 0.5, %v10944_v35 }
 0x9d3   :  { %v6885_v45 = vmul.f32 %v6877_v48, %v6830_v39  ;;  %v6878_v30 = vmul.f32 %v6870_v19, %v6833_v33  ;;  %v6864_v19 = vmul.f32 0.5, %v10947_v56 }
 0x9d4   :  { %v6895_v58 = vadd.f32 %v10944_v35, %v6887_v15  ;;  %v6888_v12 = vmul.f32 %v10947_v56, %v6880_v18 }
 0x9d5   :  { %v6893_v41 = vadd.f32 %v6885_v45, %v6830_v39  ;;  %v6886_v37 = vmul.f32 %v6878_v30, %v6833_v33 }
 0x9d6   :  { %v6903_v17 = vmul.f32 0.7978846, %v6895_v58  ;;  %v6896_v1 = vadd.f32 %v10947_v56, %v6888_v12 }
 0x9d7   :  { %v6901_v50 = vmul.f32 0.7978846, %v6893_v41  ;;  %v6894_v23 = vadd.f32 %v6886_v37, %v6833_v33 }
 0x9d8   :  { %v6904_v24 = vmul.f32 0.7978846, %v6896_v1  ;;  %7900 = vtanh.f32 %v6903_v17 }
 0x9d9   :  { %v6902_v36 = vmul.f32 0.7978846, %v6894_v23  ;;  %7902 = vtanh.f32 %v6901_v50 }
 0x9da   :  { %7904 = vtanh.f32 %v6904_v24 }
 0x9db   :  { %v7607_v60 = vpop.f32.mrb[56].mxu1  ;;  %7906 = vtanh.f32 %v6902_v36 }
 0x9dc   :  { %v6875_v13 = vmul.f32 0.044715, %v7607_v60  ;;  %v6846_v27 = vpop.f32.mrb[57].mxu1  ;;  %v6867_v50 = vmul.f32 0.5, %v7607_v60 }
 0x9dd   :  { %v6873_v5 = vmul.f32 0.044715, %v6846_v27  ;;  %v7608_v63 = vpop.f32.mrb[58].mxu1  ;;  %v6865_v30 = vmul.f32 0.5, %v6846_v27 }
 0x9de   :  { %v6883_v61 = vmul.f32 %v7607_v60, %v6875_v13  ;;  %v6876_v57 = vmul.f32 0.044715, %v7608_v63  ;;  %v6849_v29 = vpop.f32.mrb[59].mxu1  ;;  %v6868_v56 = vmul.f32 0.5, %v7608_v63  ;;  %v7732_v13 = vld [vmem:[%s11060_s7] sm:$0xff]  }
 0x9df   :  { %v6881_v49 = vmul.f32 %v6873_v5, %v6846_v27  ;;  %v6874_v54 = vmul.f32 0.044715, %v6849_v29  ;;  %v6866_v37 = vmul.f32 0.5, %v6849_v29  ;;  %7609 = vmatprep.subr.bf16.mxu1 %v7732_v13 }
 0x9e0   :  { %v6891_v14 = vmul.f32 %v7607_v60, %v6883_v61  ;;  %v6884_v34 = vmul.f32 %v7608_v63, %v6876_v57  ;;  %7610 = vmatpush3.bf16.msra.mxu1 %v7732_v13 }
 0x9e1   :  { %v6889_v11 = vmul.f32 %v6881_v49, %v6846_v27  ;;  %v6882_v9 = vmul.f32 %v6874_v54, %v6849_v29 }
 0x9e2   :  { %v7901_v3 = vpop.eup %7900  ;;  %v6899_v51 = vadd.f32 %v7607_v60, %v6891_v14  ;;  %v6892_v44 = vmul.f32 %v7608_v63, %v6884_v34 }
 0x9e3   :  { %v7903_v38 = vpop.eup %7902  ;;  %v6897_v0 = vadd.f32 %v6889_v11, %v6846_v27  ;;  %v6890_v46 = vmul.f32 %v6882_v9, %v6849_v29  ;;  %v6919_v22 = vadd.f32 1.0, %v7901_v3  ;;  %v7733_v27 = vld [vmem:[%s11060_s7 + $0x8] sm:$0xff]  }
 0x9e4   :  { %v7905_v32 = vpop.eup %7904  ;;  %v6907_v47 = vmul.f32 0.7978846, %v6899_v51  ;;  %v6900_v20 = vadd.f32 %v7608_v63, %v6892_v44  ;;  %v6917_v26 = vadd.f32 1.0, %v7903_v38  ;;  %7611 = vmatprep.subr.bf16.mxu1 %v7733_v27 }
 0x9e5   :  { %v7907_v21 = vpop.eup %7906  ;;  %v6905_v7 = vmul.f32 0.7978846, %v6897_v0  ;;  %v6898_v25 = vadd.f32 %v6890_v46, %v6849_v29  ;;  %v6920_v48 = vadd.f32 1.0, %v7905_v32  ;;  %v6927_v39 = vmul.f32 %v6919_v22, %v6863_v16  ;;  %7612 = vmatpush3.bf16.msra.mxu1 %v7733_v27  ;;  %v7735_v16 = vld [vmem:[%s11060_s7 + $0x18] sm:$0xff]  }
 0x9e6   :  { %v6908_v62 = vmul.f32 0.7978846, %v6900_v20  ;;  %v6925_v6 = vmul.f32 %v6917_v26, %v6861_v53  ;;  %v6918_v8 = vadd.f32 1.0, %v7907_v21  ;;  %7908 = vtanh.f32 %v6907_v47 }
 0x9e7   :  { %v6906_v55 = vmul.f32 0.7978846, %v6898_v25  ;;  %7910 = vtanh.f32 %v6905_v7  ;;  %v6928_v33 = vmul.f32 %v6920_v48, %v6864_v19  ;;  %v7736_v48 = vld [vmem:[%s11060_s7 + $0x20] sm:$0xff]   ;;  %v7738_v19 = vld [vmem:[%s11060_s7 + $0x30] sm:$0xff]  }
 0x9e8   :  { %6934 = vadd.xlane.f32.xlu0 %v6925_v6  ;;  %v6926_v42 = vmul.f32 %v6918_v8, %v6862_v59  ;;  %7912 = vtanh.f32 %v6908_v62 }
 0x9e9   :  { %7914 = vtanh.f32 %v6906_v55 }
 0x9ea   :  { %6936 = vadd.xlane.f32.xlu1 %v6926_v42 }
 0x9ec   :  { %6938 = vadd.xlane.f32.xlu0 %v6927_v39 }
 0x9ee   :  { %6940 = vadd.xlane.f32.xlu1 %v6928_v33 }
 0x9f0   :  { %v7909_v15 = vpop.eup %7908 }
 0x9f1   :  { %v7911_v18 = vpop.eup %7910  ;;  %v6923_v35 = vadd.f32 1.0, %v7909_v15 }
 0x9f2   :  { %v7913_v45 = vpop.eup %7912  ;;  %v6921_v58 = vadd.f32 1.0, %v7911_v18 }
 0x9f3   :  { %v7915_v12 = vpop.eup %7914  ;;  %v6924_v23 = vadd.f32 1.0, %v7913_v45  ;;  %v6931_v24 = vmul.f32 %v6923_v35, %v6867_v50 }
 0x9f4   :  { %v6929_v41 = vmul.f32 %v6921_v58, %v6865_v30  ;;  %v6922_v17 = vadd.f32 1.0, %v7915_v12 }
 0x9f5   :  { %v6932_v36 = vmul.f32 %v6924_v23, %v6868_v56 }
 0x9f6   :  { %6942 = vadd.xlane.f32.xlu0 %v6929_v41  ;;  %v6930_v1 = vmul.f32 %v6922_v17, %v6866_v37 }
 0x9f8   :  { %6944 = vadd.xlane.f32.xlu1 %v6930_v1 }
 0x9fa   :  { %6946 = vadd.xlane.f32.xlu0 %v6931_v24 }
 0x9fc   :  { %6948 = vadd.xlane.f32.xlu1 %v6932_v36 }
 0xa75   :  { %v6935_v60 = vpop.xlane.xlu0 %6934 }
 0xa76   :  { %v6951_v5 = vmul.f32 0.0078125, %v6935_v60 }
 0xa77   :  { %v6937_v61 = vpop.xlane.xlu1 %6936 }
 0xa78   :  { %v10964_v57 = vsub.f32 %v6925_v6, %v6951_v5  ;;  %v6952_v63 = vmul.f32 0.0078125, %v6937_v61  ;;  %v7338_v61 = vld [vmem:[%s11059_s6] ss:$0 sm:$0xff]  ;;  %s7968_s6 = smov [#allocation2]  }
 0xa79   :  { %v6939_v29 = vpop.xlane.xlu0 %6938  ;;  %s7183_s20 = sshll.u32 %s7968_s6, 4  ;;  %s7184_s20 = int_to_ptr.vmem [resolvable:$true] %s7183_s20 }
 0xa7a   :  { %v10966_v49 = vsub.f32 %v6926_v42, %v6952_v63  ;;  %v6953_v54 = vmul.f32 0.0078125, %v6939_v29  ;;  %v6967_v14 = vmul.f32 %v10964_v57, %v10964_v57  ;;  %v7734_v42 = vld [vmem:[%s11060_s7 + $0x10] sm:$0xff]   ;;  %s7940_s21 = scalar_lea.vmem %s7184_s20, 1024  ;;  %p7945_p1 = scmp.lt.s32.totalorder %s7184_s20, %s7184_s20 }
 0xa7b   :  { %v6941_v34 = vpop.xlane.xlu1 %6940  ;;  %7613 = vmatprep.subr.bf16.mxu1 %v7734_v42  ;;  %p7941_p0 = scmp.ne.s32.totalorder %s7184_s20, %s7940_s21  ;;  %p7946_p2 = scmp.lt.s32.totalorder %s7940_s21, %s7940_s21 }
 0xa7c   :  { %v10970_v11 = vsub.f32 %v6927_v39, %v6953_v54  ;;  %v6954_v9 = vmul.f32 0.0078125, %v6941_v34  ;;  %6975 = vadd.xlane.f32.xlu0 %v6967_v14  ;;  %v6968_v3 = vmul.f32 %v10966_v49, %v10966_v49  ;;  %7614 = vmatpush3.bf16.msra.mxu1 %v7734_v42  ;;  %v7737_v39 = vld [vmem:[%s11060_s7 + $0x28] sm:$0xff]  }
 0xa7d   :  { %7615 = vmatprep.subr.bf16.mxu1 %v7735_v16  ;;  %p7947_p3 = por %p7946_p2, %p7945_p1 }
 0xa7e   :  { %v10974_v51 = vsub.f32 %v6928_v33, %v6954_v9  ;;  %6977 = vadd.xlane.f32.xlu1 %v6968_v3  ;;  %v6969_v44 = vmul.f32 %v10970_v11, %v10970_v11  ;;  %v7739_v33 = vld [vmem:[%s11060_s7 + $0x38] sm:$0xff]  }
 0xa7f   :  { %p7948_p4 = pnand %p7947_p3, %p7941_p0 }
 0xa80   :  { %6979 = vadd.xlane.f32.xlu0 %v6969_v44  ;;  %v6970_v38 = vmul.f32 %v10974_v51, %v10974_v51  ;;  %7616 = vmatpush3.bf16.msra.mxu1 %v7735_v16 }
 0xa81   :  { %7617 = vmatprep.subr.bf16.mxu1 %v7736_v48 }
 0xa82   :  { %6981 = vadd.xlane.f32.xlu1 %v6970_v38 }
 0xa83   :  { %v6943_v0 = vpop.xlane.xlu0 %6942 }
 0xa84   :  { %v6955_v46 = vmul.f32 0.0078125, %v6943_v0  ;;  %7618 = vmatpush3.bf16.msra.mxu1 %v7736_v48 }
 0xa85   :  { %v6945_v32 = vpop.xlane.xlu1 %6944  ;;  %7619 = vmatprep.subr.bf16.mxu1 %v7737_v39 }
 0xa86   :  { %v10980_v47 = vsub.f32 %v6929_v41, %v6955_v46  ;;  %v6956_v20 = vmul.f32 0.0078125, %v6945_v32 }
 0xa87   :  { %v6947_v53 = vpop.xlane.xlu0 %6946 }
 0xa88   :  { %v10982_v26 = vsub.f32 %v6930_v1, %v6956_v20  ;;  %v6957_v21 = vmul.f32 0.0078125, %v6947_v53  ;;  %v6971_v7 = vmul.f32 %v10980_v47, %v10980_v47  ;;  %7620 = vmatpush3.bf16.msra.mxu1 %v7737_v39 }
 0xa89   :  { %v6949_v25 = vpop.xlane.xlu1 %6948  ;;  %7621 = vmatprep.subr.bf16.mxu1 %v7738_v19 }
 0xa8a   :  { %v10986_v59 = vsub.f32 %v6931_v24, %v6957_v21  ;;  %v6958_v22 = vmul.f32 0.0078125, %v6949_v25  ;;  %6983 = vadd.xlane.f32.xlu0 %v6971_v7  ;;  %v6972_v62 = vmul.f32 %v10982_v26, %v10982_v26 }
 0xa8c   :  { %v10990_v6 = vsub.f32 %v6932_v36, %v6958_v22  ;;  %6985 = vadd.xlane.f32.xlu1 %v6972_v62  ;;  %v6973_v8 = vmul.f32 %v10986_v59, %v10986_v59  ;;  %7622 = vmatpush3.bf16.msra.mxu1 %v7738_v19 }
 0xa8d   :  { %7623 = vmatprep.subr.bf16.mxu1 %v7739_v33 }
 0xa8e   :  { %6987 = vadd.xlane.f32.xlu0 %v6973_v8  ;;  %v6974_v55 = vmul.f32 %v10990_v6, %v10990_v6 }
 0xa90   :  { %6989 = vadd.xlane.f32.xlu1 %v6974_v55  ;;  %7624 = vmatpush3.bf16.msra.mxu1 %v7739_v33 }
 0xb09   :  { %v6976_v15 = vpop.xlane.xlu0 %6975 }
 0xb0a   :  { %v6991_v18 = vmul.f32 0.0078125, %v6976_v15 }
 0xb0b   :  { %v6978_v45 = vpop.xlane.xlu1 %6977 }
 0xb0c   :  { %v6999_v30 = vadd.f32 1e-05, %v6991_v18  ;;  %v6992_v58 = vmul.f32 0.0078125, %v6978_v45 }
 0xb0d   :  { %v6980_v12 = vpop.xlane.xlu0 %6979 }
 0xb0e   :  { %7916 = vrsqrt.f32 %v6999_v30  ;;  %v7000_v41 = vadd.f32 1e-05, %v6992_v58  ;;  %v6993_v37 = vmul.f32 0.0078125, %v6980_v12 }
 0xb0f   :  { %v6982_v17 = vpop.xlane.xlu1 %6981 }
 0xb10   :  { %7918 = vrsqrt.f32 %v7000_v41  ;;  %v7001_v35 = vadd.f32 1e-05, %v6993_v37  ;;  %v6994_v1 = vmul.f32 0.0078125, %v6982_v17 }
 0xb12   :  { %7920 = vrsqrt.f32 %v7001_v35  ;;  %v7002_v50 = vadd.f32 1e-05, %v6994_v1 }
 0xb14   :  { %7922 = vrsqrt.f32 %v7002_v50 }
 0xb17   :  { %v6984_v23 = vpop.xlane.xlu0 %6983 }
 0xb18   :  { %v7917_v24 = vpop.eup %7916  ;;  %v6995_v56 = vmul.f32 0.0078125, %v6984_v23 }
 0xb19   :  { %v6986_v36 = vpop.xlane.xlu1 %6985  ;;  %v7015_v13 = vmul.f32 %v7917_v24, %v10964_v57 }
 0xb1a   :  { %v7919_v27 = vpop.eup %7918  ;;  %v7003_v60 = vadd.f32 1e-05, %v6995_v56  ;;  %v6996_v5 = vmul.f32 0.0078125, %v6986_v36 }
 0xb1b   :  { %v7016_v63 = vmul.f32 %v7919_v27, %v10966_v49  ;;  %v6988_v29 = vpop.xlane.xlu0 %6987  ;;  %v7029_v3 = vmul.f32 %v7338_v61, %v7015_v13 }
 0xb1c   :  { %v7921_v54 = vpop.eup %7920  ;;  %7924 = vrsqrt.f32 %v7003_v60  ;;  %v7004_v14 = vadd.f32 1e-05, %v6996_v5  ;;  %v6997_v34 = vmul.f32 0.0078125, %v6988_v29 }
 0xb1d   :  { %v7017_v9 = vmul.f32 %v7921_v54, %v10970_v11  ;;  %v7030_v44 = vmul.f32 %v7338_v61, %v7016_v63  ;;  %v6990_v38 = vpop.xlane.xlu1 %6989 }
 0xb1e   :  { %v7923_v57 = vpop.eup %7922  ;;  %7926 = vrsqrt.f32 %v7004_v14  ;;  %v7005_v0 = vadd.f32 1e-05, %v6997_v34  ;;  %v6998_v46 = vmul.f32 0.0078125, %v6990_v38 }
 0xb1f   :  { %v7018_v32 = vmul.f32 %v7923_v57, %v10974_v51  ;;  %v7037_v20 = vpack.c.bf16 %v7030_v44, %v7029_v3  ;;  %v7031_v49 = vmul.f32 %v7338_v61, %v7017_v9 }
 0xb20   :  { %7928 = vrsqrt.f32 %v7005_v0  ;;  %v7006_v53 = vadd.f32 1e-05, %v6998_v46 }
 0xb21   :  { %7625 = vmatprep.mubr.bf16.mxu1 %v7037_v20  ;;  %v7032_v21 = vmul.f32 %v7338_v61, %v7018_v32 }
 0xb22   :  { %7930 = vrsqrt.f32 %v7006_v53 }
 0xb23   :  { %v7038_v7 = vpack.c.bf16 %v7032_v21, %v7031_v49 }
 0xb25   :  { %7626 = vmatmul.mubr.bf16.vlgmr.msra.gmra.mrb[60].mxu1 %v7038_v7 }
 0xb26   :  { %v7925_v25 = vpop.eup %7924 }
 0xb27   :  { %v7019_v11 = vmul.f32 %v7925_v25, %v10980_v47 }
 0xb28   :  { %v7927_v22 = vpop.eup %7926 }
 0xb29   :  { %v7020_v62 = vmul.f32 %v7927_v22, %v10982_v26  ;;  %v7033_v55 = vmul.f32 %v7338_v61, %v7019_v11 }
 0xb2a   :  { %v7929_v8 = vpop.eup %7928 }
 0xb2b   :  { %v7034_v42 = vmul.f32 %v7338_v61, %v7020_v62  ;;  %v7021_v51 = vmul.f32 %v7929_v8, %v10986_v59 }
 0xb2c   :  { %v7931_v16 = vpop.eup %7930 }
 0xb2d   :  { %v7039_v48 = vpack.c.bf16 %v7034_v42, %v7033_v55  ;;  %v7022_v39 = vmul.f32 %v7931_v16, %v10990_v6  ;;  %v7035_v19 = vmul.f32 %v7338_v61, %v7021_v51 }
 0xb2f   :  { %7629 = vmatprep.mubr.bf16.mxu1 %v7039_v48  ;;  %v7036_v33 = vmul.f32 %v7338_v61, %v7022_v39 }
 0xb31   :  { %v7040_v15 = vpack.c.bf16 %v7036_v33, %v7035_v19 }
 0xb33   :  { %7630 = vmatmul.mubr.bf16.gmra.mrb[64].mxu1 %v7040_v15 }
 0xbf8   :  { %v7627_v18 = vpop.f32.mrb[60].mxu1 }
 0xbf9   :  { %v7148_v47 = vadd.f32 %v7627_v18, %v10846_v4  ;;  %v7139_v45 = vpop.f32.mrb[61].mxu1 }
 0xbfa   :  { %v7140_v26 = vadd.f32 %v7139_v45, %v10832_v43  ;;  %v7628_v30 = vpop.f32.mrb[62].mxu1 }
 0xbfb   :  { %7172 = vst.msk [vmem:[#allocation2 + $0x10] sm:$0xff] %vm40_vm0, %v7148_v47  ;;  %v7151_v59 = vadd.f32 %v7628_v30, %v10851_v40  ;;  %v7142_v58 = vpop.f32.mrb[63].mxu1 }
 0xbfc   :  { %7170 = vst.msk [vmem:[#allocation2] sm:$0xff] %vm40_vm0, %v7140_v26  ;;  %v7143_v6 = vadd.f32 %v7142_v58, %v10837_v2 }
 0xbfd   :  { %7173 = vst.msk [vmem:[#allocation2 + $0x18] sm:$0xff] %vm40_vm0, %v7151_v59 }
 0xbfe   :  { %7171 = vst.msk [vmem:[#allocation2 + $0x8] sm:$0xff] %vm40_vm0, %v7143_v6 }
 0xc06   :  { %v7631_v12 = vpop.f32.mrb[64].mxu1 }
 0xc07   :  { %v7164_v4 = vadd.f32 %v7631_v12, %v10874_v31  ;;  %v7155_v41 = vpop.f32.mrb[65].mxu1 }
 0xc08   :  { %v7156_v43 = vadd.f32 %v7155_v41, %v10860_v52  ;;  %v7632_v37 = vpop.f32.mrb[66].mxu1 }
 0xc09   :  { %7176 = vst.msk [vmem:[#allocation2 + $0x30] sm:$0xff] %vm40_vm0, %v7164_v4  ;;  %v7167_v40 = vadd.f32 %v7632_v37, %v10879_v28  ;;  %v7158_v17 = vpop.f32.mrb[67].mxu1 }
 0xc0a   :  { %7174 = vst.msk [vmem:[#allocation2 + $0x20] sm:$0xff] %vm40_vm0, %v7156_v43  ;;  %v7159_v2 = vadd.f32 %v7158_v17, %v10865_v10 }
 0xc0b   :  { %7177 = vst.msk [vmem:[#allocation2 + $0x38] sm:$0xff] %vm40_vm0, %v7167_v40 }
 0xc0c   :  { %7175 = vst.msk [vmem:[#allocation2 + $0x28] sm:$0xff] %vm40_vm0, %v7159_v2 }
 0xc0d   :  { %7951 = shalt.err (!%p7948_p4)
}
 0xc0e   :  { %s7952_s23 = scalar_lea.hbm %s11061_s8, 1024 }
 0xc0f   :  { %p7953_p5 = scmp.ne.s32.totalorder %s11061_s8, %s7952_s23  ;;  %p7956_p6 = scmp.lt.u32.totalorder %s7952_s23, %s11061_s8 }
 0xc11   :  { %p7958_p7 = pnand %p7956_p6, %p7953_p5 }
 0xc13   :  { %7961 = shalt.err (!%p7958_p7)
}
 0xc14   :  { %s7969_s27 = smov 128   ;;  %s7970_s28 = smov 8  }
 0xc15   :  { %7189 = dma.vmem_to_hbm [thread:$0]  %s7184_s20, 1024, %s11061_s8, [#allocation3], %s7969_s27, %s7969_s27, %s7970_s28  }
 0xc16   :  { %7962 = dma.done.wait [#allocation3], 1024  }
 0xc17   :  { %7963 = vsyncadd [#allocation3], 4294966272 }
 0xc18   :  { %7193 = vsyncpa [#allocation3], 1 }

</bundles_post_ra>
